<compile_context>
chip_gen: v6e
topology: v6e:2x2x1
jax: 0.10.0
libtpu: 0.0.40
codegen_flags: <defaults>
</compile_context>

<pallas_src>
import functools

import jax
import jax.numpy as jnp
import numpy as np
from jax.experimental import pallas as pl
from jax.experimental.pallas import tpu as pltpu

NEG_SLOPE = 0.01  # nn.LeakyReLU() default negative_slope


# ---------------------------------------------------------------------------
# helpers
# ---------------------------------------------------------------------------
def _round_up(x, m):
    return (x + m - 1) // m * m


def _nbytes(a):
    return int(np.prod(a.shape)) * jnp.dtype(a.dtype).itemsize


def feature_hw(spatial):
    s1 = (spatial - 8) // 4 + 1
    s2 = (s1 - 4) // 2 + 1
    s3 = (s2 - 3) // 1 + 1
    return s1, s2, s3


def _make_selection(h_in, w_in, kh, kw, stride):
    """Constant 0/1 gather matrices: S[t, out_pos, in_pos] for tap t=(i*kw+j)."""
    oh = (h_in - kh) // stride + 1
    ow = (w_in - kw) // stride + 1
    s = np.zeros((kh * kw, oh * ow, h_in * w_in), np.float32)
    for i in range(kh):
        for j in range(kw):
            t = i * kw + j
            for py in range(oh):
                for px in range(ow):
                    r = (stride * py + i) * w_in + (stride * px + j)
                    s[t, py * ow + px, r] = 1.0
    return s


# ---------------------------------------------------------------------------
# fused CnnDQN kernel (one grid step == one sample)
# ---------------------------------------------------------------------------
def _leaky(y):
    return jnp.maximum(y, NEG_SLOPE * y)   # vmul + vmax, no cmp/select


def _conv_block(x, s_ref, w_ref, b_ref):
    """One VALID conv layer on a single sample, fully in vregs.

    x      : (P_in, Cin)          bf16 value (rows = spatial positions)
    s_ref  : (taps, P_out, P_in)  bf16 0/1 patch-row selection per (kh,kw) tap
    w_ref  : (taps, Cin, Cout)    bf16 per-tap channel-mixing weights
    b_ref  : (1, Cout)            f32
    """
    acc = None
    for t in range(s_ref.shape[0]):
        g = jnp.dot(s_ref[t], x, preferred_element_type=jnp.float32)
        g = g.astype(jnp.bfloat16)                      # exact: pure row selection
        d = jnp.dot(g, w_ref[t], preferred_element_type=jnp.float32)
        acc = d if acc is None else acc + d
    return _leaky(acc + b_ref[...]).astype(jnp.bfloat16)


def _cnn_dqn_kernel(x_ref,
                    s1_ref, w1_ref, b1_ref,
                    s2_ref, w2_ref, b2_ref,
                    s3_ref, w3_ref, b3_ref,
                    wf1_ref, bf1_ref, wf2_ref, bf2_ref,
                    o_ref):
    x0 = x_ref[0]                                     # (P0, 16*Cin) bf16 (s2d input)
    x1 = _conv_block(x0, s1_ref, w1_ref, b1_ref)      # conv1: k8/s4 -> k2/s1 via s2d
    x2 = _conv_block(x1, s2_ref, w2_ref, b2_ref)      # conv2: k4/s2
    x3 = _conv_block(x2, s3_ref, w3_ref, b3_ref)      # conv3: k3/s1 -> (P3, 64)

    # fc1: sum over spatial positions of (1,64)@(64,512) — avoids a
    # lane-changing flatten; torch NCHW-flatten order folded into wf1 rows.
    acc = None
    for p in range(wf1_ref.shape[0]):
        d = jnp.dot(x3[p:p + 1, :], wf1_ref[p], preferred_element_type=jnp.float32)
        acc = d if acc is None else acc + d
    h = _leaky(acc + bf1_ref[...]).astype(jnp.bfloat16)

    # fc2 (output padded to 128 lanes -> lane-dense store)
    y = jnp.dot(h, wf2_ref[...], preferred_element_type=jnp.float32) + bf2_ref[...]
    o_ref[...] = y.astype(o_ref.dtype).reshape(o_ref.shape)


# ---------------------------------------------------------------------------
# parameters (torch-like layout) + one-time TPU preparation
# ---------------------------------------------------------------------------
def init_params(key, in_channels, spatial, num_actions):
    ks = jax.random.split(key, 10)

    def w(k, shape, fan_in):
        return jax.random.normal(k, shape, jnp.float32) / jnp.sqrt(fan_in)

    _, _, sp3 = feature_hw(spatial)
    feat = 64 * sp3 * sp3
    return {
        "c1_w": w(ks[0], (32, in_channels, 8, 8), in_channels * 64),
        "c1_b": w(ks[1], (32,), 32),
        "c2_w": w(ks[2], (64, 32, 4, 4), 32 * 16),
        "c2_b": w(ks[3], (64,), 64),
        "c3_w": w(ks[4], (64, 64, 3, 3), 64 * 9),
        "c3_b": w(ks[5], (64,), 64),
        "fc1_w": w(ks[6], (feat, 512), feat),
        "fc1_b": w(ks[7], (512,), 512),
        "fc2_w": w(ks[8], (512, num_actions), 512),
        "fc2_b": w(ks[9], (num_actions,), num_actions),
    }


def prepare_params(params, spatial):
    """One-time weight preparation (plain numpy/XLA, no per-forward cost):
       * conv1 stride folded away via space-to-depth(4); weights -> (4, 16*Cin, 32)
       * every conv: per-tap (Cin,Cout) slabs + constant 0/1 selection matrices
       * fc1 rows permuted from torch NCHW-flatten to our (h,w,c) order, split
         per spatial position; fc2 zero-padded to 128 output lanes."""
    sp1, sp2, sp3 = feature_hw(spatial)
    assert spatial % 4 == 0 and sp1 >= 4 and sp2 >= 3, "unsupported spatial size"
    cin = params["c1_w"].shape[1]
    h0 = spatial // 4
    bf16, f32 = jnp.bfloat16, jnp.float32
    prep = {}

    # conv1 (k=8, s=4)  ->  space-to-depth(4) + k=2/s=1 conv
    w1 = params["c1_w"].reshape(32, cin, 2, 4, 2, 4)       # (co, c, a, dh, b, dw)
    w1 = jnp.transpose(w1, (2, 4, 3, 5, 1, 0)).reshape(4, 16 * cin, 32)
    prep["s1"] = jnp.asarray(_make_selection(h0, h0, 2, 2, 1), bf16)
    prep["w1"] = w1.astype(bf16)
    prep["b1"] = params["c1_b"].astype(f32).reshape(1, -1)

    # conv2 (k=4, s=2)
    prep["s2"] = jnp.asarray(_make_selection(sp1, sp1, 4, 4, 2), bf16)
    prep["w2"] = jnp.transpose(params["c2_w"], (2, 3, 1, 0)).reshape(16, 32, 64).astype(bf16)
    prep["b2"] = params["c2_b"].astype(f32).reshape(1, -1)

    # conv3 (k=3, s=1)
    prep["s3"] = jnp.asarray(_make_selection(sp2, sp2, 3, 3, 1), bf16)
    prep["w3"] = jnp.transpose(params["c3_w"], (2, 3, 1, 0)).reshape(9, 64, 64).astype(bf16)
    prep["b3"] = params["c3_b"].astype(f32).reshape(1, -1)

    # fc head
    feat = 64 * sp3 * sp3
    idx = jnp.arange(feat).reshape(64, sp3, sp3)           # torch (c, h, w) flatten
    perm = jnp.transpose(idx, (1, 2, 0)).reshape(-1)       # our  (h, w, c) order
    prep["wf1"] = params["fc1_w"][perm, :].reshape(sp3 * sp3, 64, 512).astype(bf16)
    prep["bf1"] = params["fc1_b"].astype(f32).reshape(1, -1)

    na = params["fc2_w"].shape[1]
    nap = _round_up(na, 128)
    prep["wf2"] = jnp.pad(params["fc2_w"], ((0, 0), (0, nap - na))).astype(bf16)
    prep["bf2"] = jnp.pad(params["fc2_b"], (0, nap - na)).astype(f32).reshape(1, -1)
    return prep


# ---------------------------------------------------------------------------
# forward (config.choice == 'none')
# ---------------------------------------------------------------------------
@functools.partial(jax.jit, static_argnames=("num_actions",))
def cnn_dqn_forward(prep, x_nchw, num_actions):
    B, C, H, W = x_nchw.shape
    h0, w0 = H // 4, W // 4

    # Space-to-depth(4) relabel of the raw input (pure permute, no amplification):
    # the k=8/s=4 conv1 becomes a k=2/s=1 conv over (h0*w0 positions, 16*C ch).
    x = jnp.transpose(x_nchw, (0, 2, 3, 1))                 # NHWC
    x = x.reshape(B, h0, 4, w0, 4, C)
    x = jnp.transpose(x, (0, 1, 3, 2, 4, 5))
    x = x.reshape(B, h0 * w0, 16 * C).astype(jnp.bfloat16)

    weight_names = ("s1", "w1", "b1", "s2", "w2", "b2",
                    "s3", "w3", "b3", "wf1", "bf1", "wf2", "bf2")
    weights = [prep[n] for n in weight_names]
    nap = prep["wf2"].shape[1]

    def resident(a):                       # full block, constant index -> VMEM-resident
        nd = a.ndim
        return pl.BlockSpec(a.shape, lambda b, _nd=nd: (0,) * _nd)

    # advisory cost estimate
    flops = 0
    for sn, wn in (("s1", "w1"), ("s2", "w2"), ("s3", "w3")):
        taps, po, pi = prep[sn].shape
        _, ci, co = prep[wn].shape
        flops += 2 * taps * (po * pi * ci + po * ci * co)
    p3, c3, hid = prep["wf1"].shape
    flops += 2 * p3 * c3 * hid + 2 * hid * nap
    flops *= B

    weights_bytes = sum(_nbytes(a) for a in weights)
    blk_bytes = x.shape[1] * x.shape[2] * 2 + nap * 4
    # ~1 MiB actually needed; keep limit = need + headroom (safe on v5e/v6e/v7x).
    vmem_limit = int(2 * (weights_bytes + blk_bytes) + (8 << 20))

    out = pl.pallas_call(
        _cnn_dqn_kernel,
        out_shape=jax.ShapeDtypeStruct((B, 1, nap), jnp.float32),
        grid_spec=pltpu.PrefetchScalarGridSpec(
            num_scalar_prefetch=0,
            grid=(B,),
            in_specs=[pl.BlockSpec((1, x.shape[1], x.shape[2]), lambda b: (b, 0, 0))]
                     + [resident(a) for a in weights],
            out_specs=pl.BlockSpec((1, 1, nap), lambda b: (b, 0, 0)),
        ),
        compiler_params=pltpu.CompilerParams(
            dimension_semantics=("parallel",),     # batch over both TCs on v7x
            vmem_limit_bytes=vmem_limit,
        ),
        cost_estimate=pl.CostEstimate(
            flops=flops, transcendentals=0,
            bytes_accessed=_nbytes(x) + weights_bytes + B * nap * 4),
    )(x, *weights)
    return out[:, 0, :num_actions]


# ---------------------------------------------------------------------------
# pure-XLA reference (f32 activations, bf16-rounded weights/input) for checking
# ---------------------------------------------------------------------------
@jax.jit
def reference_forward(params, x_nchw):
    r = lambda a: a.astype(jnp.bfloat16).astype(jnp.float32)

    def conv(x, w, b, stride):
        y = jax.lax.conv_general_dilated(
            x, r(w), window_strides=(stride, stride), padding="VALID",
            dimension_numbers=("NCHW", "OIHW", "NCHW"))
        return _leaky(y + b.reshape(1, -1, 1, 1))

    x = r(x_nchw)
    x = conv(x, params["c1_w"], params["c1_b"], 4)
    x = conv(x, params["c2_w"], params["c2_b"], 2)
    x = conv(x, params["c3_w"], params["c3_b"], 1)
    x = x.reshape(x.shape[0], -1)                           # torch NCHW flatten
    x = _leaky(x @ r(params["fc1_w"]) + params["fc1_b"])
    return x @ r(params["fc2_w"]) + params["fc2_b"]


if __name__ == "__main__":
    key = jax.random.PRNGKey(0)
    k_x, k_p = jax.random.split(key)

    batch, channels, spatial, num_actions = 2, 4, 36, 6
    x = jax.random.normal(k_x, (batch, channels, spatial, spatial), jnp.float32)

    params = init_params(k_p, channels, spatial, num_actions)
    prep = prepare_params(params, spatial)

    out = cnn_dqn_forward(prep, x, num_actions=num_actions)
    out = jax.block_until_ready(out)
    assert out.shape == (batch, num_actions), out.shape
    assert out.dtype == jnp.float32

    ref = jax.block_until_ready(reference_forward(params, x))
    rel_err = float(jnp.max(jnp.abs(out - ref)) / (jnp.max(jnp.abs(ref)) + 1e-6))
    assert rel_err < 0.1, f"mismatch vs reference: rel_err={rel_err}"
    print("KERNEL_OK")
</pallas_src>

<mosaic_0001>
module attributes {stable_mosaic.version = 11 : i64} {
  func.func @_cnn_dqn_kernel(%arg0: i32, %arg1: memref<1x81x64xbf16, #tpu.memory_space<vmem>>, %arg2: memref<4x64x81xbf16, #tpu.memory_space<vmem>>, %arg3: memref<4x64x32xbf16, #tpu.memory_space<vmem>>, %arg4: memref<1x32xf32, #tpu.memory_space<vmem>>, %arg5: memref<16x9x64xbf16, #tpu.memory_space<vmem>>, %arg6: memref<16x32x64xbf16, #tpu.memory_space<vmem>>, %arg7: memref<1x64xf32, #tpu.memory_space<vmem>>, %arg8: memref<9x1x9xbf16, #tpu.memory_space<vmem>>, %arg9: memref<9x64x64xbf16, #tpu.memory_space<vmem>>, %arg10: memref<1x64xf32, #tpu.memory_space<vmem>>, %arg11: memref<1x64x512xbf16, #tpu.memory_space<vmem>>, %arg12: memref<1x512xf32, #tpu.memory_space<vmem>>, %arg13: memref<512x128xbf16, #tpu.memory_space<vmem>>, %arg14: memref<1x128xf32, #tpu.memory_space<vmem>>, %arg15: memref<1x1x128xf32, #tpu.memory_space<vmem>>) attributes {dimension_semantics = [#tpu.dimension_semantics<parallel>], iteration_bounds = array<i64: 2>, scalar_prefetch = 0 : i64, scratch_operands = 0 : i64, tpu.core_type = #tpu.core_type<tc>, window_params = [{transform_indices = @transform_0, window_bounds = array<i64: 1, 81, 64>}, {pipeline_mode = #tpu.pipeline_mode<synchronous>, transform_indices = @transform_1, window_bounds = array<i64: 4, 64, 81>}, {pipeline_mode = #tpu.pipeline_mode<synchronous>, transform_indices = @transform_2, window_bounds = array<i64: 4, 64, 32>}, {pipeline_mode = #tpu.pipeline_mode<synchronous>, transform_indices = @transform_3, window_bounds = array<i64: 1, 32>}, {pipeline_mode = #tpu.pipeline_mode<synchronous>, transform_indices = @transform_4, window_bounds = array<i64: 16, 9, 64>}, {pipeline_mode = #tpu.pipeline_mode<synchronous>, transform_indices = @transform_5, window_bounds = array<i64: 16, 32, 64>}, {pipeline_mode = #tpu.pipeline_mode<synchronous>, transform_indices = @transform_6, window_bounds = array<i64: 1, 64>}, {pipeline_mode = #tpu.pipeline_mode<synchronous>, transform_indices = @transform_7, window_bounds = array<i64: 9, 1, 9>}, {pipeline_mode = #tpu.pipeline_mode<synchronous>, transform_indices = @transform_8, window_bounds = array<i64: 9, 64, 64>}, {pipeline_mode = #tpu.pipeline_mode<synchronous>, transform_indices = @transform_9, window_bounds = array<i64: 1, 64>}, {pipeline_mode = #tpu.pipeline_mode<synchronous>, transform_indices = @transform_10, window_bounds = array<i64: 1, 64, 512>}, {pipeline_mode = #tpu.pipeline_mode<synchronous>, transform_indices = @transform_11, window_bounds = array<i64: 1, 512>}, {pipeline_mode = #tpu.pipeline_mode<synchronous>, transform_indices = @transform_12, window_bounds = array<i64: 512, 128>}, {pipeline_mode = #tpu.pipeline_mode<synchronous>, transform_indices = @transform_13, window_bounds = array<i64: 1, 128>}, {transform_indices = @transform_14, window_bounds = array<i64: 1, 1, 128>}]} {
    %c0 = arith.constant 0 : index
    %c0_0 = arith.constant 0 : index
    %c0_1 = arith.constant 0 : index
    %0 = vector.load %arg1[%c0, %c0_0, %c0_1] : memref<1x81x64xbf16, #tpu.memory_space<vmem>>, vector<1x81x64xbf16>
    %1 = vector.shape_cast %0 : vector<1x81x64xbf16> to vector<81x64xbf16>
    %c0_2 = arith.constant 0 : index
    %c0_3 = arith.constant 0 : index
    %c0_4 = arith.constant 0 : index
    %2 = vector.load %arg2[%c0_2, %c0_3, %c0_4] : memref<4x64x81xbf16, #tpu.memory_space<vmem>>, vector<1x64x81xbf16>
    %3 = vector.shape_cast %2 : vector<1x64x81xbf16> to vector<64x81xbf16>
    %cst = arith.constant dense<0.000000e+00> : vector<64x64xf32>
    %4 = tpu.matmul %3, %1, %cst {dimension_numbers = #tpu.dot_dimension_numbers<[1], [0], [0], [1], [0, 0, 1, 1], [], []>} : vector<64x81xbf16>, vector<81x64xbf16>, vector<64x64xf32> -> vector<64x64xf32>
    %5 = arith.truncf %4 : vector<64x64xf32> to vector<64x64xbf16>
    %c0_5 = arith.constant 0 : index
    %c0_6 = arith.constant 0 : index
    %c0_7 = arith.constant 0 : index
    %6 = vector.load %arg3[%c0_5, %c0_6, %c0_7] : memref<4x64x32xbf16, #tpu.memory_space<vmem>>, vector<1x64x32xbf16>
    %7 = vector.shape_cast %6 : vector<1x64x32xbf16> to vector<64x32xbf16>
    %cst_8 = arith.constant dense<0.000000e+00> : vector<64x32xf32>
    %8 = tpu.matmul %5, %7, %cst_8 {dimension_numbers = #tpu.dot_dimension_numbers<[1], [0], [0], [1], [0, 0, 1, 1], [], []>} : vector<64x64xbf16>, vector<64x32xbf16>, vector<64x32xf32> -> vector<64x32xf32>
    %c1 = arith.constant 1 : index
    %c0_9 = arith.constant 0 : index
    %c0_10 = arith.constant 0 : index
    %9 = vector.load %arg2[%c1, %c0_9, %c0_10] : memref<4x64x81xbf16, #tpu.memory_space<vmem>>, vector<1x64x81xbf16>
    %10 = vector.shape_cast %9 : vector<1x64x81xbf16> to vector<64x81xbf16>
    %cst_11 = arith.constant dense<0.000000e+00> : vector<64x64xf32>
    %11 = tpu.matmul %10, %1, %cst_11 {dimension_numbers = #tpu.dot_dimension_numbers<[1], [0], [0], [1], [0, 0, 1, 1], [], []>} : vector<64x81xbf16>, vector<81x64xbf16>, vector<64x64xf32> -> vector<64x64xf32>
    %12 = arith.truncf %11 : vector<64x64xf32> to vector<64x64xbf16>
    %c1_12 = arith.constant 1 : index
    %c0_13 = arith.constant 0 : index
    %c0_14 = arith.constant 0 : index
    %13 = vector.load %arg3[%c1_12, %c0_13, %c0_14] : memref<4x64x32xbf16, #tpu.memory_space<vmem>>, vector<1x64x32xbf16>
    %14 = vector.shape_cast %13 : vector<1x64x32xbf16> to vector<64x32xbf16>
    %cst_15 = arith.constant dense<0.000000e+00> : vector<64x32xf32>
    %15 = tpu.matmul %12, %14, %cst_15 {dimension_numbers = #tpu.dot_dimension_numbers<[1], [0], [0], [1], [0, 0, 1, 1], [], []>} : vector<64x64xbf16>, vector<64x32xbf16>, vector<64x32xf32> -> vector<64x32xf32>
    %16 = arith.addf %8, %15 : vector<64x32xf32>
    %c2 = arith.constant 2 : index
    %c0_16 = arith.constant 0 : index
    %c0_17 = arith.constant 0 : index
    %17 = vector.load %arg2[%c2, %c0_16, %c0_17] : memref<4x64x81xbf16, #tpu.memory_space<vmem>>, vector<1x64x81xbf16>
    %18 = vector.shape_cast %17 : vector<1x64x81xbf16> to vector<64x81xbf16>
    %cst_18 = arith.constant dense<0.000000e+00> : vector<64x64xf32>
    %19 = tpu.matmul %18, %1, %cst_18 {dimension_numbers = #tpu.dot_dimension_numbers<[1], [0], [0], [1], [0, 0, 1, 1], [], []>} : vector<64x81xbf16>, vector<81x64xbf16>, vector<64x64xf32> -> vector<64x64xf32>
    %20 = arith.truncf %19 : vector<64x64xf32> to vector<64x64xbf16>
    %c2_19 = arith.constant 2 : index
    %c0_20 = arith.constant 0 : index
    %c0_21 = arith.constant 0 : index
    %21 = vector.load %arg3[%c2_19, %c0_20, %c0_21] : memref<4x64x32xbf16, #tpu.memory_space<vmem>>, vector<1x64x32xbf16>
    %22 = vector.shape_cast %21 : vector<1x64x32xbf16> to vector<64x32xbf16>
    %cst_22 = arith.constant dense<0.000000e+00> : vector<64x32xf32>
    %23 = tpu.matmul %20, %22, %cst_22 {dimension_numbers = #tpu.dot_dimension_numbers<[1], [0], [0], [1], [0, 0, 1, 1], [], []>} : vector<64x64xbf16>, vector<64x32xbf16>, vector<64x32xf32> -> vector<64x32xf32>
    %24 = arith.addf %16, %23 : vector<64x32xf32>
    %c3 = arith.constant 3 : index
    %c0_23 = arith.constant 0 : index
    %c0_24 = arith.constant 0 : index
    %25 = vector.load %arg2[%c3, %c0_23, %c0_24] : memref<4x64x81xbf16, #tpu.memory_space<vmem>>, vector<1x64x81xbf16>
    %26 = vector.shape_cast %25 : vector<1x64x81xbf16> to vector<64x81xbf16>
    %cst_25 = arith.constant dense<0.000000e+00> : vector<64x64xf32>
    %27 = tpu.matmul %26, %1, %cst_25 {dimension_numbers = #tpu.dot_dimension_numbers<[1], [0], [0], [1], [0, 0, 1, 1], [], []>} : vector<64x81xbf16>, vector<81x64xbf16>, vector<64x64xf32> -> vector<64x64xf32>
    %28 = arith.truncf %27 : vector<64x64xf32> to vector<64x64xbf16>
    %c3_26 = arith.constant 3 : index
    %c0_27 = arith.constant 0 : index
    %c0_28 = arith.constant 0 : index
    %29 = vector.load %arg3[%c3_26, %c0_27, %c0_28] : memref<4x64x32xbf16, #tpu.memory_space<vmem>>, vector<1x64x32xbf16>
    %30 = vector.shape_cast %29 : vector<1x64x32xbf16> to vector<64x32xbf16>
    %cst_29 = arith.constant dense<0.000000e+00> : vector<64x32xf32>
    %31 = tpu.matmul %28, %30, %cst_29 {dimension_numbers = #tpu.dot_dimension_numbers<[1], [0], [0], [1], [0, 0, 1, 1], [], []>} : vector<64x64xbf16>, vector<64x32xbf16>, vector<64x32xf32> -> vector<64x32xf32>
    %32 = arith.addf %24, %31 : vector<64x32xf32>
    %c0_30 = arith.constant 0 : index
    %c0_31 = arith.constant 0 : index
    %33 = vector.load %arg4[%c0_30, %c0_31] : memref<1x32xf32, #tpu.memory_space<vmem>>, vector<1x32xf32>
    %34 = vector.broadcast %33 : vector<1x32xf32> to vector<64x32xf32>
    %35 = arith.addf %32, %34 : vector<64x32xf32>
    %cst_32 = arith.constant 0.00999999977 : f32
    %36 = vector.broadcast %cst_32 : f32 to vector<64x32xf32>
    %37 = arith.mulf %36, %35 : vector<64x32xf32>
    %38 = arith.maximumf %35, %37 : vector<64x32xf32>
    %39 = arith.truncf %38 : vector<64x32xf32> to vector<64x32xbf16>
    %c0_33 = arith.constant 0 : index
    %c0_34 = arith.constant 0 : index
    %c0_35 = arith.constant 0 : index
    %40 = vector.load %arg5[%c0_33, %c0_34, %c0_35] : memref<16x9x64xbf16, #tpu.memory_space<vmem>>, vector<1x9x64xbf16>
    %41 = vector.shape_cast %40 : vector<1x9x64xbf16> to vector<9x64xbf16>
    %cst_36 = arith.constant dense<0.000000e+00> : vector<9x32xf32>
    %42 = tpu.matmul %41, %39, %cst_36 {dimension_numbers = #tpu.dot_dimension_numbers<[1], [0], [0], [1], [0, 0, 1, 1], [], []>} : vector<9x64xbf16>, vector<64x32xbf16>, vector<9x32xf32> -> vector<9x32xf32>
    %43 = arith.truncf %42 : vector<9x32xf32> to vector<9x32xbf16>
    %c0_37 = arith.constant 0 : index
    %c0_38 = arith.constant 0 : index
    %c0_39 = arith.constant 0 : index
    %44 = vector.load %arg6[%c0_37, %c0_38, %c0_39] : memref<16x32x64xbf16, #tpu.memory_space<vmem>>, vector<1x32x64xbf16>
    %45 = vector.shape_cast %44 : vector<1x32x64xbf16> to vector<32x64xbf16>
    %cst_40 = arith.constant dense<0.000000e+00> : vector<9x64xf32>
    %46 = tpu.matmul %43, %45, %cst_40 {dimension_numbers = #tpu.dot_dimension_numbers<[1], [0], [0], [1], [0, 0, 1, 1], [], []>} : vector<9x32xbf16>, vector<32x64xbf16>, vector<9x64xf32> -> vector<9x64xf32>
    %c1_41 = arith.constant 1 : index
    %c0_42 = arith.constant 0 : index
    %c0_43 = arith.constant 0 : index
    %47 = vector.load %arg5[%c1_41, %c0_42, %c0_43] : memref<16x9x64xbf16, #tpu.memory_space<vmem>>, vector<1x9x64xbf16>
    %48 = vector.shape_cast %47 : vector<1x9x64xbf16> to vector<9x64xbf16>
    %cst_44 = arith.constant dense<0.000000e+00> : vector<9x32xf32>
    %49 = tpu.matmul %48, %39, %cst_44 {dimension_numbers = #tpu.dot_dimension_numbers<[1], [0], [0], [1], [0, 0, 1, 1], [], []>} : vector<9x64xbf16>, vector<64x32xbf16>, vector<9x32xf32> -> vector<9x32xf32>
    %50 = arith.truncf %49 : vector<9x32xf32> to vector<9x32xbf16>
    %c1_45 = arith.constant 1 : index
    %c0_46 = arith.constant 0 : index
    %c0_47 = arith.constant 0 : index
    %51 = vector.load %arg6[%c1_45, %c0_46, %c0_47] : memref<16x32x64xbf16, #tpu.memory_space<vmem>>, vector<1x32x64xbf16>
    %52 = vector.shape_cast %51 : vector<1x32x64xbf16> to vector<32x64xbf16>
    %cst_48 = arith.constant dense<0.000000e+00> : vector<9x64xf32>
    %53 = tpu.matmul %50, %52, %cst_48 {dimension_numbers = #tpu.dot_dimension_numbers<[1], [0], [0], [1], [0, 0, 1, 1], [], []>} : vector<9x32xbf16>, vector<32x64xbf16>, vector<9x64xf32> -> vector<9x64xf32>
    %54 = arith.addf %46, %53 : vector<9x64xf32>
    %c2_49 = arith.constant 2 : index
    %c0_50 = arith.constant 0 : index
    %c0_51 = arith.constant 0 : index
    %55 = vector.load %arg5[%c2_49, %c0_50, %c0_51] : memref<16x9x64xbf16, #tpu.memory_space<vmem>>, vector<1x9x64xbf16>
    %56 = vector.shape_cast %55 : vector<1x9x64xbf16> to vector<9x64xbf16>
    %cst_52 = arith.constant dense<0.000000e+00> : vector<9x32xf32>
    %57 = tpu.matmul %56, %39, %cst_52 {dimension_numbers = #tpu.dot_dimension_numbers<[1], [0], [0], [1], [0, 0, 1, 1], [], []>} : vector<9x64xbf16>, vector<64x32xbf16>, vector<9x32xf32> -> vector<9x32xf32>
    %58 = arith.truncf %57 : vector<9x32xf32> to vector<9x32xbf16>
    %c2_53 = arith.constant 2 : index
    %c0_54 = arith.constant 0 : index
    %c0_55 = arith.constant 0 : index
    %59 = vector.load %arg6[%c2_53, %c0_54, %c0_55] : memref<16x32x64xbf16, #tpu.memory_space<vmem>>, vector<1x32x64xbf16>
    %60 = vector.shape_cast %59 : vector<1x32x64xbf16> to vector<32x64xbf16>
    %cst_56 = arith.constant dense<0.000000e+00> : vector<9x64xf32>
    %61 = tpu.matmul %58, %60, %cst_56 {dimension_numbers = #tpu.dot_dimension_numbers<[1], [0], [0], [1], [0, 0, 1, 1], [], []>} : vector<9x32xbf16>, vector<32x64xbf16>, vector<9x64xf32> -> vector<9x64xf32>
    %62 = arith.addf %54, %61 : vector<9x64xf32>
    %c3_57 = arith.constant 3 : index
    %c0_58 = arith.constant 0 : index
    %c0_59 = arith.constant 0 : index
    %63 = vector.load %arg5[%c3_57, %c0_58, %c0_59] : memref<16x9x64xbf16, #tpu.memory_space<vmem>>, vector<1x9x64xbf16>
    %64 = vector.shape_cast %63 : vector<1x9x64xbf16> to vector<9x64xbf16>
    %cst_60 = arith.constant dense<0.000000e+00> : vector<9x32xf32>
    %65 = tpu.matmul %64, %39, %cst_60 {dimension_numbers = #tpu.dot_dimension_numbers<[1], [0], [0], [1], [0, 0, 1, 1], [], []>} : vector<9x64xbf16>, vector<64x32xbf16>, vector<9x32xf32> -> vector<9x32xf32>
    %66 = arith.truncf %65 : vector<9x32xf32> to vector<9x32xbf16>
    %c3_61 = arith.constant 3 : index
    %c0_62 = arith.constant 0 : index
    %c0_63 = arith.constant 0 : index
    %67 = vector.load %arg6[%c3_61, %c0_62, %c0_63] : memref<16x32x64xbf16, #tpu.memory_space<vmem>>, vector<1x32x64xbf16>
    %68 = vector.shape_cast %67 : vector<1x32x64xbf16> to vector<32x64xbf16>
    %cst_64 = arith.constant dense<0.000000e+00> : vector<9x64xf32>
    %69 = tpu.matmul %66, %68, %cst_64 {dimension_numbers = #tpu.dot_dimension_numbers<[1], [0], [0], [1], [0, 0, 1, 1], [], []>} : vector<9x32xbf16>, vector<32x64xbf16>, vector<9x64xf32> -> vector<9x64xf32>
    %70 = arith.addf %62, %69 : vector<9x64xf32>
    %c4 = arith.constant 4 : index
    %c0_65 = arith.constant 0 : index
    %c0_66 = arith.constant 0 : index
    %71 = vector.load %arg5[%c4, %c0_65, %c0_66] : memref<16x9x64xbf16, #tpu.memory_space<vmem>>, vector<1x9x64xbf16>
    %72 = vector.shape_cast %71 : vector<1x9x64xbf16> to vector<9x64xbf16>
    %cst_67 = arith.constant dense<0.000000e+00> : vector<9x32xf32>
    %73 = tpu.matmul %72, %39, %cst_67 {dimension_numbers = #tpu.dot_dimension_numbers<[1], [0], [0], [1], [0, 0, 1, 1], [], []>} : vector<9x64xbf16>, vector<64x32xbf16>, vector<9x32xf32> -> vector<9x32xf32>
    %74 = arith.truncf %73 : vector<9x32xf32> to vector<9x32xbf16>
    %c4_68 = arith.constant 4 : index
    %c0_69 = arith.constant 0 : index
    %c0_70 = arith.constant 0 : index
    %75 = vector.load %arg6[%c4_68, %c0_69, %c0_70] : memref<16x32x64xbf16, #tpu.memory_space<vmem>>, vector<1x32x64xbf16>
    %76 = vector.shape_cast %75 : vector<1x32x64xbf16> to vector<32x64xbf16>
    %cst_71 = arith.constant dense<0.000000e+00> : vector<9x64xf32>
    %77 = tpu.matmul %74, %76, %cst_71 {dimension_numbers = #tpu.dot_dimension_numbers<[1], [0], [0], [1], [0, 0, 1, 1], [], []>} : vector<9x32xbf16>, vector<32x64xbf16>, vector<9x64xf32> -> vector<9x64xf32>
    %78 = arith.addf %70, %77 : vector<9x64xf32>
    %c5 = arith.constant 5 : index
    %c0_72 = arith.constant 0 : index
    %c0_73 = arith.constant 0 : index
    %79 = vector.load %arg5[%c5, %c0_72, %c0_73] : memref<16x9x64xbf16, #tpu.memory_space<vmem>>, vector<1x9x64xbf16>
    %80 = vector.shape_cast %79 : vector<1x9x64xbf16> to vector<9x64xbf16>
    %cst_74 = arith.constant dense<0.000000e+00> : vector<9x32xf32>
    %81 = tpu.matmul %80, %39, %cst_74 {dimension_numbers = #tpu.dot_dimension_numbers<[1], [0], [0], [1], [0, 0, 1, 1], [], []>} : vector<9x64xbf16>, vector<64x32xbf16>, vector<9x32xf32> -> vector<9x32xf32>
    %82 = arith.truncf %81 : vector<9x32xf32> to vector<9x32xbf16>
    %c5_75 = arith.constant 5 : index
    %c0_76 = arith.constant 0 : index
    %c0_77 = arith.constant 0 : index
    %83 = vector.load %arg6[%c5_75, %c0_76, %c0_77] : memref<16x32x64xbf16, #tpu.memory_space<vmem>>, vector<1x32x64xbf16>
    %84 = vector.shape_cast %83 : vector<1x32x64xbf16> to vector<32x64xbf16>
    %cst_78 = arith.constant dense<0.000000e+00> : vector<9x64xf32>
    %85 = tpu.matmul %82, %84, %cst_78 {dimension_numbers = #tpu.dot_dimension_numbers<[1], [0], [0], [1], [0, 0, 1, 1], [], []>} : vector<9x32xbf16>, vector<32x64xbf16>, vector<9x64xf32> -> vector<9x64xf32>
    %86 = arith.addf %78, %85 : vector<9x64xf32>
    %c6 = arith.constant 6 : index
    %c0_79 = arith.constant 0 : index
    %c0_80 = arith.constant 0 : index
    %87 = vector.load %arg5[%c6, %c0_79, %c0_80] : memref<16x9x64xbf16, #tpu.memory_space<vmem>>, vector<1x9x64xbf16>
    %88 = vector.shape_cast %87 : vector<1x9x64xbf16> to vector<9x64xbf16>
    %cst_81 = arith.constant dense<0.000000e+00> : vector<9x32xf32>
    %89 = tpu.matmul %88, %39, %cst_81 {dimension_numbers = #tpu.dot_dimension_numbers<[1], [0], [0], [1], [0, 0, 1, 1], [], []>} : vector<9x64xbf16>, vector<64x32xbf16>, vector<9x32xf32> -> vector<9x32xf32>
    %90 = arith.truncf %89 : vector<9x32xf32> to vector<9x32xbf16>
    %c6_82 = arith.constant 6 : index
    %c0_83 = arith.constant 0 : index
    %c0_84 = arith.constant 0 : index
    %91 = vector.load %arg6[%c6_82, %c0_83, %c0_84] : memref<16x32x64xbf16, #tpu.memory_space<vmem>>, vector<1x32x64xbf16>
    %92 = vector.shape_cast %91 : vector<1x32x64xbf16> to vector<32x64xbf16>
    %cst_85 = arith.constant dense<0.000000e+00> : vector<9x64xf32>
    %93 = tpu.matmul %90, %92, %cst_85 {dimension_numbers = #tpu.dot_dimension_numbers<[1], [0], [0], [1], [0, 0, 1, 1], [], []>} : vector<9x32xbf16>, vector<32x64xbf16>, vector<9x64xf32> -> vector<9x64xf32>
    %94 = arith.addf %86, %93 : vector<9x64xf32>
    %c7 = arith.constant 7 : index
    %c0_86 = arith.constant 0 : index
    %c0_87 = arith.constant 0 : index
    %95 = vector.load %arg5[%c7, %c0_86, %c0_87] : memref<16x9x64xbf16, #tpu.memory_space<vmem>>, vector<1x9x64xbf16>
    %96 = vector.shape_cast %95 : vector<1x9x64xbf16> to vector<9x64xbf16>
    %cst_88 = arith.constant dense<0.000000e+00> : vector<9x32xf32>
    %97 = tpu.matmul %96, %39, %cst_88 {dimension_numbers = #tpu.dot_dimension_numbers<[1], [0], [0], [1], [0, 0, 1, 1], [], []>} : vector<9x64xbf16>, vector<64x32xbf16>, vector<9x32xf32> -> vector<9x32xf32>
    %98 = arith.truncf %97 : vector<9x32xf32> to vector<9x32xbf16>
    %c7_89 = arith.constant 7 : index
    %c0_90 = arith.constant 0 : index
    %c0_91 = arith.constant 0 : index
    %99 = vector.load %arg6[%c7_89, %c0_90, %c0_91] : memref<16x32x64xbf16, #tpu.memory_space<vmem>>, vector<1x32x64xbf16>
    %100 = vector.shape_cast %99 : vector<1x32x64xbf16> to vector<32x64xbf16>
    %cst_92 = arith.constant dense<0.000000e+00> : vector<9x64xf32>
    %101 = tpu.matmul %98, %100, %cst_92 {dimension_numbers = #tpu.dot_dimension_numbers<[1], [0], [0], [1], [0, 0, 1, 1], [], []>} : vector<9x32xbf16>, vector<32x64xbf16>, vector<9x64xf32> -> vector<9x64xf32>
    %102 = arith.addf %94, %101 : vector<9x64xf32>
    %c8 = arith.constant 8 : index
    %c0_93 = arith.constant 0 : index
    %c0_94 = arith.constant 0 : index
    %103 = vector.load %arg5[%c8, %c0_93, %c0_94] : memref<16x9x64xbf16, #tpu.memory_space<vmem>>, vector<1x9x64xbf16>
    %104 = vector.shape_cast %103 : vector<1x9x64xbf16> to vector<9x64xbf16>
    %cst_95 = arith.constant dense<0.000000e+00> : vector<9x32xf32>
    %105 = tpu.matmul %104, %39, %cst_95 {dimension_numbers = #tpu.dot_dimension_numbers<[1], [0], [0], [1], [0, 0, 1, 1], [], []>} : vector<9x64xbf16>, vector<64x32xbf16>, vector<9x32xf32> -> vector<9x32xf32>
    %106 = arith.truncf %105 : vector<9x32xf32> to vector<9x32xbf16>
    %c8_96 = arith.constant 8 : index
    %c0_97 = arith.constant 0 : index
    %c0_98 = arith.constant 0 : index
    %107 = vector.load %arg6[%c8_96, %c0_97, %c0_98] : memref<16x32x64xbf16, #tpu.memory_space<vmem>>, vector<1x32x64xbf16>
    %108 = vector.shape_cast %107 : vector<1x32x64xbf16> to vector<32x64xbf16>
    %cst_99 = arith.constant dense<0.000000e+00> : vector<9x64xf32>
    %109 = tpu.matmul %106, %108, %cst_99 {dimension_numbers = #tpu.dot_dimension_numbers<[1], [0], [0], [1], [0, 0, 1, 1], [], []>} : vector<9x32xbf16>, vector<32x64xbf16>, vector<9x64xf32> -> vector<9x64xf32>
    %110 = arith.addf %102, %109 : vector<9x64xf32>
    %c9 = arith.constant 9 : index
    %c0_100 = arith.constant 0 : index
    %c0_101 = arith.constant 0 : index
    %111 = vector.load %arg5[%c9, %c0_100, %c0_101] : memref<16x9x64xbf16, #tpu.memory_space<vmem>>, vector<1x9x64xbf16>
    %112 = vector.shape_cast %111 : vector<1x9x64xbf16> to vector<9x64xbf16>
    %cst_102 = arith.constant dense<0.000000e+00> : vector<9x32xf32>
    %113 = tpu.matmul %112, %39, %cst_102 {dimension_numbers = #tpu.dot_dimension_numbers<[1], [0], [0], [1], [0, 0, 1, 1], [], []>} : vector<9x64xbf16>, vector<64x32xbf16>, vector<9x32xf32> -> vector<9x32xf32>
    %114 = arith.truncf %113 : vector<9x32xf32> to vector<9x32xbf16>
    %c9_103 = arith.constant 9 : index
    %c0_104 = arith.constant 0 : index
    %c0_105 = arith.constant 0 : index
    %115 = vector.load %arg6[%c9_103, %c0_104, %c0_105] : memref<16x32x64xbf16, #tpu.memory_space<vmem>>, vector<1x32x64xbf16>
    %116 = vector.shape_cast %115 : vector<1x32x64xbf16> to vector<32x64xbf16>
    %cst_106 = arith.constant dense<0.000000e+00> : vector<9x64xf32>
    %117 = tpu.matmul %114, %116, %cst_106 {dimension_numbers = #tpu.dot_dimension_numbers<[1], [0], [0], [1], [0, 0, 1, 1], [], []>} : vector<9x32xbf16>, vector<32x64xbf16>, vector<9x64xf32> -> vector<9x64xf32>
    %118 = arith.addf %110, %117 : vector<9x64xf32>
    %c10 = arith.constant 10 : index
    %c0_107 = arith.constant 0 : index
    %c0_108 = arith.constant 0 : index
    %119 = vector.load %arg5[%c10, %c0_107, %c0_108] : memref<16x9x64xbf16, #tpu.memory_space<vmem>>, vector<1x9x64xbf16>
    %120 = vector.shape_cast %119 : vector<1x9x64xbf16> to vector<9x64xbf16>
    %cst_109 = arith.constant dense<0.000000e+00> : vector<9x32xf32>
    %121 = tpu.matmul %120, %39, %cst_109 {dimension_numbers = #tpu.dot_dimension_numbers<[1], [0], [0], [1], [0, 0, 1, 1], [], []>} : vector<9x64xbf16>, vector<64x32xbf16>, vector<9x32xf32> -> vector<9x32xf32>
    %122 = arith.truncf %121 : vector<9x32xf32> to vector<9x32xbf16>
    %c10_110 = arith.constant 10 : index
    %c0_111 = arith.constant 0 : index
    %c0_112 = arith.constant 0 : index
    %123 = vector.load %arg6[%c10_110, %c0_111, %c0_112] : memref<16x32x64xbf16, #tpu.memory_space<vmem>>, vector<1x32x64xbf16>
    %124 = vector.shape_cast %123 : vector<1x32x64xbf16> to vector<32x64xbf16>
    %cst_113 = arith.constant dense<0.000000e+00> : vector<9x64xf32>
    %125 = tpu.matmul %122, %124, %cst_113 {dimension_numbers = #tpu.dot_dimension_numbers<[1], [0], [0], [1], [0, 0, 1, 1], [], []>} : vector<9x32xbf16>, vector<32x64xbf16>, vector<9x64xf32> -> vector<9x64xf32>
    %126 = arith.addf %118, %125 : vector<9x64xf32>
    %c11 = arith.constant 11 : index
    %c0_114 = arith.constant 0 : index
    %c0_115 = arith.constant 0 : index
    %127 = vector.load %arg5[%c11, %c0_114, %c0_115] : memref<16x9x64xbf16, #tpu.memory_space<vmem>>, vector<1x9x64xbf16>
    %128 = vector.shape_cast %127 : vector<1x9x64xbf16> to vector<9x64xbf16>
    %cst_116 = arith.constant dense<0.000000e+00> : vector<9x32xf32>
    %129 = tpu.matmul %128, %39, %cst_116 {dimension_numbers = #tpu.dot_dimension_numbers<[1], [0], [0], [1], [0, 0, 1, 1], [], []>} : vector<9x64xbf16>, vector<64x32xbf16>, vector<9x32xf32> -> vector<9x32xf32>
    %130 = arith.truncf %129 : vector<9x32xf32> to vector<9x32xbf16>
    %c11_117 = arith.constant 11 : index
    %c0_118 = arith.constant 0 : index
    %c0_119 = arith.constant 0 : index
    %131 = vector.load %arg6[%c11_117, %c0_118, %c0_119] : memref<16x32x64xbf16, #tpu.memory_space<vmem>>, vector<1x32x64xbf16>
    %132 = vector.shape_cast %131 : vector<1x32x64xbf16> to vector<32x64xbf16>
    %cst_120 = arith.constant dense<0.000000e+00> : vector<9x64xf32>
    %133 = tpu.matmul %130, %132, %cst_120 {dimension_numbers = #tpu.dot_dimension_numbers<[1], [0], [0], [1], [0, 0, 1, 1], [], []>} : vector<9x32xbf16>, vector<32x64xbf16>, vector<9x64xf32> -> vector<9x64xf32>
    %134 = arith.addf %126, %133 : vector<9x64xf32>
    %c12 = arith.constant 12 : index
    %c0_121 = arith.constant 0 : index
    %c0_122 = arith.constant 0 : index
    %135 = vector.load %arg5[%c12, %c0_121, %c0_122] : memref<16x9x64xbf16, #tpu.memory_space<vmem>>, vector<1x9x64xbf16>
    %136 = vector.shape_cast %135 : vector<1x9x64xbf16> to vector<9x64xbf16>
    %cst_123 = arith.constant dense<0.000000e+00> : vector<9x32xf32>
    %137 = tpu.matmul %136, %39, %cst_123 {dimension_numbers = #tpu.dot_dimension_numbers<[1], [0], [0], [1], [0, 0, 1, 1], [], []>} : vector<9x64xbf16>, vector<64x32xbf16>, vector<9x32xf32> -> vector<9x32xf32>
    %138 = arith.truncf %137 : vector<9x32xf32> to vector<9x32xbf16>
    %c12_124 = arith.constant 12 : index
    %c0_125 = arith.constant 0 : index
    %c0_126 = arith.constant 0 : index
    %139 = vector.load %arg6[%c12_124, %c0_125, %c0_126] : memref<16x32x64xbf16, #tpu.memory_space<vmem>>, vector<1x32x64xbf16>
    %140 = vector.shape_cast %139 : vector<1x32x64xbf16> to vector<32x64xbf16>
    %cst_127 = arith.constant dense<0.000000e+00> : vector<9x64xf32>
    %141 = tpu.matmul %138, %140, %cst_127 {dimension_numbers = #tpu.dot_dimension_numbers<[1], [0], [0], [1], [0, 0, 1, 1], [], []>} : vector<9x32xbf16>, vector<32x64xbf16>, vector<9x64xf32> -> vector<9x64xf32>
    %142 = arith.addf %134, %141 : vector<9x64xf32>
    %c13 = arith.constant 13 : index
    %c0_128 = arith.constant 0 : index
    %c0_129 = arith.constant 0 : index
    %143 = vector.load %arg5[%c13, %c0_128, %c0_129] : memref<16x9x64xbf16, #tpu.memory_space<vmem>>, vector<1x9x64xbf16>
    %144 = vector.shape_cast %143 : vector<1x9x64xbf16> to vector<9x64xbf16>
    %cst_130 = arith.constant dense<0.000000e+00> : vector<9x32xf32>
    %145 = tpu.matmul %144, %39, %cst_130 {dimension_numbers = #tpu.dot_dimension_numbers<[1], [0], [0], [1], [0, 0, 1, 1], [], []>} : vector<9x64xbf16>, vector<64x32xbf16>, vector<9x32xf32> -> vector<9x32xf32>
    %146 = arith.truncf %145 : vector<9x32xf32> to vector<9x32xbf16>
    %c13_131 = arith.constant 13 : index
    %c0_132 = arith.constant 0 : index
    %c0_133 = arith.constant 0 : index
    %147 = vector.load %arg6[%c13_131, %c0_132, %c0_133] : memref<16x32x64xbf16, #tpu.memory_space<vmem>>, vector<1x32x64xbf16>
    %148 = vector.shape_cast %147 : vector<1x32x64xbf16> to vector<32x64xbf16>
    %cst_134 = arith.constant dense<0.000000e+00> : vector<9x64xf32>
    %149 = tpu.matmul %146, %148, %cst_134 {dimension_numbers = #tpu.dot_dimension_numbers<[1], [0], [0], [1], [0, 0, 1, 1], [], []>} : vector<9x32xbf16>, vector<32x64xbf16>, vector<9x64xf32> -> vector<9x64xf32>
    %150 = arith.addf %142, %149 : vector<9x64xf32>
    %c14 = arith.constant 14 : index
    %c0_135 = arith.constant 0 : index
    %c0_136 = arith.constant 0 : index
    %151 = vector.load %arg5[%c14, %c0_135, %c0_136] : memref<16x9x64xbf16, #tpu.memory_space<vmem>>, vector<1x9x64xbf16>
    %152 = vector.shape_cast %151 : vector<1x9x64xbf16> to vector<9x64xbf16>
    %cst_137 = arith.constant dense<0.000000e+00> : vector<9x32xf32>
    %153 = tpu.matmul %152, %39, %cst_137 {dimension_numbers = #tpu.dot_dimension_numbers<[1], [0], [0], [1], [0, 0, 1, 1], [], []>} : vector<9x64xbf16>, vector<64x32xbf16>, vector<9x32xf32> -> vector<9x32xf32>
    %154 = arith.truncf %153 : vector<9x32xf32> to vector<9x32xbf16>
    %c14_138 = arith.constant 14 : index
    %c0_139 = arith.constant 0 : index
    %c0_140 = arith.constant 0 : index
    %155 = vector.load %arg6[%c14_138, %c0_139, %c0_140] : memref<16x32x64xbf16, #tpu.memory_space<vmem>>, vector<1x32x64xbf16>
    %156 = vector.shape_cast %155 : vector<1x32x64xbf16> to vector<32x64xbf16>
    %cst_141 = arith.constant dense<0.000000e+00> : vector<9x64xf32>
    %157 = tpu.matmul %154, %156, %cst_141 {dimension_numbers = #tpu.dot_dimension_numbers<[1], [0], [0], [1], [0, 0, 1, 1], [], []>} : vector<9x32xbf16>, vector<32x64xbf16>, vector<9x64xf32> -> vector<9x64xf32>
    %158 = arith.addf %150, %157 : vector<9x64xf32>
    %c15 = arith.constant 15 : index
    %c0_142 = arith.constant 0 : index
    %c0_143 = arith.constant 0 : index
    %159 = vector.load %arg5[%c15, %c0_142, %c0_143] : memref<16x9x64xbf16, #tpu.memory_space<vmem>>, vector<1x9x64xbf16>
    %160 = vector.shape_cast %159 : vector<1x9x64xbf16> to vector<9x64xbf16>
    %cst_144 = arith.constant dense<0.000000e+00> : vector<9x32xf32>
    %161 = tpu.matmul %160, %39, %cst_144 {dimension_numbers = #tpu.dot_dimension_numbers<[1], [0], [0], [1], [0, 0, 1, 1], [], []>} : vector<9x64xbf16>, vector<64x32xbf16>, vector<9x32xf32> -> vector<9x32xf32>
    %162 = arith.truncf %161 : vector<9x32xf32> to vector<9x32xbf16>
    %c15_145 = arith.constant 15 : index
    %c0_146 = arith.constant 0 : index
    %c0_147 = arith.constant 0 : index
    %163 = vector.load %arg6[%c15_145, %c0_146, %c0_147] : memref<16x32x64xbf16, #tpu.memory_space<vmem>>, vector<1x32x64xbf16>
    %164 = vector.shape_cast %163 : vector<1x32x64xbf16> to vector<32x64xbf16>
    %cst_148 = arith.constant dense<0.000000e+00> : vector<9x64xf32>
    %165 = tpu.matmul %162, %164, %cst_148 {dimension_numbers = #tpu.dot_dimension_numbers<[1], [0], [0], [1], [0, 0, 1, 1], [], []>} : vector<9x32xbf16>, vector<32x64xbf16>, vector<9x64xf32> -> vector<9x64xf32>
    %166 = arith.addf %158, %165 : vector<9x64xf32>
    %c0_149 = arith.constant 0 : index
    %c0_150 = arith.constant 0 : index
    %167 = vector.load %arg7[%c0_149, %c0_150] : memref<1x64xf32, #tpu.memory_space<vmem>>, vector<1x64xf32>
    %168 = vector.broadcast %167 : vector<1x64xf32> to vector<9x64xf32>
    %169 = arith.addf %166, %168 : vector<9x64xf32>
    %cst_151 = arith.constant 0.00999999977 : f32
    %170 = vector.broadcast %cst_151 : f32 to vector<9x64xf32>
    %171 = arith.mulf %170, %169 : vector<9x64xf32>
    %172 = arith.maximumf %169, %171 : vector<9x64xf32>
    %173 = arith.truncf %172 : vector<9x64xf32> to vector<9x64xbf16>
    %c0_152 = arith.constant 0 : index
    %c0_153 = arith.constant 0 : index
    %c0_154 = arith.constant 0 : index
    %174 = vector.load %arg8[%c0_152, %c0_153, %c0_154] : memref<9x1x9xbf16, #tpu.memory_space<vmem>>, vector<1x1x9xbf16>
    %175 = vector.shape_cast %174 : vector<1x1x9xbf16> to vector<1x9xbf16>
    %cst_155 = arith.constant dense<0.000000e+00> : vector<1x64xf32>
    %176 = tpu.matmul %175, %173, %cst_155 {dimension_numbers = #tpu.dot_dimension_numbers<[1], [0], [0], [1], [0, 0, 1, 1], [], []>} : vector<1x9xbf16>, vector<9x64xbf16>, vector<1x64xf32> -> vector<1x64xf32>
    %177 = arith.truncf %176 : vector<1x64xf32> to vector<1x64xbf16>
    %c0_156 = arith.constant 0 : index
    %c0_157 = arith.constant 0 : index
    %c0_158 = arith.constant 0 : index
    %178 = vector.load %arg9[%c0_156, %c0_157, %c0_158] : memref<9x64x64xbf16, #tpu.memory_space<vmem>>, vector<1x64x64xbf16>
    %179 = vector.shape_cast %178 : vector<1x64x64xbf16> to vector<64x64xbf16>
    %cst_159 = arith.constant dense<0.000000e+00> : vector<1x64xf32>
    %180 = tpu.matmul %177, %179, %cst_159 {dimension_numbers = #tpu.dot_dimension_numbers<[1], [0], [0], [1], [0, 0, 1, 1], [], []>} : vector<1x64xbf16>, vector<64x64xbf16>, vector<1x64xf32> -> vector<1x64xf32>
    %c1_160 = arith.constant 1 : index
    %c0_161 = arith.constant 0 : index
    %c0_162 = arith.constant 0 : index
    %181 = vector.load %arg8[%c1_160, %c0_161, %c0_162] : memref<9x1x9xbf16, #tpu.memory_space<vmem>>, vector<1x1x9xbf16>
    %182 = vector.shape_cast %181 : vector<1x1x9xbf16> to vector<1x9xbf16>
    %cst_163 = arith.constant dense<0.000000e+00> : vector<1x64xf32>
    %183 = tpu.matmul %182, %173, %cst_163 {dimension_numbers = #tpu.dot_dimension_numbers<[1], [0], [0], [1], [0, 0, 1, 1], [], []>} : vector<1x9xbf16>, vector<9x64xbf16>, vector<1x64xf32> -> vector<1x64xf32>
    %184 = arith.truncf %183 : vector<1x64xf32> to vector<1x64xbf16>
    %c1_164 = arith.constant 1 : index
    %c0_165 = arith.constant 0 : index
    %c0_166 = arith.constant 0 : index
    %185 = vector.load %arg9[%c1_164, %c0_165, %c0_166] : memref<9x64x64xbf16, #tpu.memory_space<vmem>>, vector<1x64x64xbf16>
    %186 = vector.shape_cast %185 : vector<1x64x64xbf16> to vector<64x64xbf16>
    %cst_167 = arith.constant dense<0.000000e+00> : vector<1x64xf32>
    %187 = tpu.matmul %184, %186, %cst_167 {dimension_numbers = #tpu.dot_dimension_numbers<[1], [0], [0], [1], [0, 0, 1, 1], [], []>} : vector<1x64xbf16>, vector<64x64xbf16>, vector<1x64xf32> -> vector<1x64xf32>
    %188 = arith.addf %180, %187 : vector<1x64xf32>
    %c2_168 = arith.constant 2 : index
    %c0_169 = arith.constant 0 : index
    %c0_170 = arith.constant 0 : index
    %189 = vector.load %arg8[%c2_168, %c0_169, %c0_170] : memref<9x1x9xbf16, #tpu.memory_space<vmem>>, vector<1x1x9xbf16>
    %190 = vector.shape_cast %189 : vector<1x1x9xbf16> to vector<1x9xbf16>
    %cst_171 = arith.constant dense<0.000000e+00> : vector<1x64xf32>
    %191 = tpu.matmul %190, %173, %cst_171 {dimension_numbers = #tpu.dot_dimension_numbers<[1], [0], [0], [1], [0, 0, 1, 1], [], []>} : vector<1x9xbf16>, vector<9x64xbf16>, vector<1x64xf32> -> vector<1x64xf32>
    %192 = arith.truncf %191 : vector<1x64xf32> to vector<1x64xbf16>
    %c2_172 = arith.constant 2 : index
    %c0_173 = arith.constant 0 : index
    %c0_174 = arith.constant 0 : index
    %193 = vector.load %arg9[%c2_172, %c0_173, %c0_174] : memref<9x64x64xbf16, #tpu.memory_space<vmem>>, vector<1x64x64xbf16>
    %194 = vector.shape_cast %193 : vector<1x64x64xbf16> to vector<64x64xbf16>
    %cst_175 = arith.constant dense<0.000000e+00> : vector<1x64xf32>
    %195 = tpu.matmul %192, %194, %cst_175 {dimension_numbers = #tpu.dot_dimension_numbers<[1], [0], [0], [1], [0, 0, 1, 1], [], []>} : vector<1x64xbf16>, vector<64x64xbf16>, vector<1x64xf32> -> vector<1x64xf32>
    %196 = arith.addf %188, %195 : vector<1x64xf32>
    %c3_176 = arith.constant 3 : index
    %c0_177 = arith.constant 0 : index
    %c0_178 = arith.constant 0 : index
    %197 = vector.load %arg8[%c3_176, %c0_177, %c0_178] : memref<9x1x9xbf16, #tpu.memory_space<vmem>>, vector<1x1x9xbf16>
    %198 = vector.shape_cast %197 : vector<1x1x9xbf16> to vector<1x9xbf16>
    %cst_179 = arith.constant dense<0.000000e+00> : vector<1x64xf32>
    %199 = tpu.matmul %198, %173, %cst_179 {dimension_numbers = #tpu.dot_dimension_numbers<[1], [0], [0], [1], [0, 0, 1, 1], [], []>} : vector<1x9xbf16>, vector<9x64xbf16>, vector<1x64xf32> -> vector<1x64xf32>
    %200 = arith.truncf %199 : vector<1x64xf32> to vector<1x64xbf16>
    %c3_180 = arith.constant 3 : index
    %c0_181 = arith.constant 0 : index
    %c0_182 = arith.constant 0 : index
    %201 = vector.load %arg9[%c3_180, %c0_181, %c0_182] : memref<9x64x64xbf16, #tpu.memory_space<vmem>>, vector<1x64x64xbf16>
    %202 = vector.shape_cast %201 : vector<1x64x64xbf16> to vector<64x64xbf16>
    %cst_183 = arith.constant dense<0.000000e+00> : vector<1x64xf32>
    %203 = tpu.matmul %200, %202, %cst_183 {dimension_numbers = #tpu.dot_dimension_numbers<[1], [0], [0], [1], [0, 0, 1, 1], [], []>} : vector<1x64xbf16>, vector<64x64xbf16>, vector<1x64xf32> -> vector<1x64xf32>
    %204 = arith.addf %196, %203 : vector<1x64xf32>
    %c4_184 = arith.constant 4 : index
    %c0_185 = arith.constant 0 : index
    %c0_186 = arith.constant 0 : index
    %205 = vector.load %arg8[%c4_184, %c0_185, %c0_186] : memref<9x1x9xbf16, #tpu.memory_space<vmem>>, vector<1x1x9xbf16>
    %206 = vector.shape_cast %205 : vector<1x1x9xbf16> to vector<1x9xbf16>
    %cst_187 = arith.constant dense<0.000000e+00> : vector<1x64xf32>
    %207 = tpu.matmul %206, %173, %cst_187 {dimension_numbers = #tpu.dot_dimension_numbers<[1], [0], [0], [1], [0, 0, 1, 1], [], []>} : vector<1x9xbf16>, vector<9x64xbf16>, vector<1x64xf32> -> vector<1x64xf32>
    %208 = arith.truncf %207 : vector<1x64xf32> to vector<1x64xbf16>
    %c4_188 = arith.constant 4 : index
    %c0_189 = arith.constant 0 : index
    %c0_190 = arith.constant 0 : index
    %209 = vector.load %arg9[%c4_188, %c0_189, %c0_190] : memref<9x64x64xbf16, #tpu.memory_space<vmem>>, vector<1x64x64xbf16>
    %210 = vector.shape_cast %209 : vector<1x64x64xbf16> to vector<64x64xbf16>
    %cst_191 = arith.constant dense<0.000000e+00> : vector<1x64xf32>
    %211 = tpu.matmul %208, %210, %cst_191 {dimension_numbers = #tpu.dot_dimension_numbers<[1], [0], [0], [1], [0, 0, 1, 1], [], []>} : vector<1x64xbf16>, vector<64x64xbf16>, vector<1x64xf32> -> vector<1x64xf32>
    %212 = arith.addf %204, %211 : vector<1x64xf32>
    %c5_192 = arith.constant 5 : index
    %c0_193 = arith.constant 0 : index
    %c0_194 = arith.constant 0 : index
    %213 = vector.load %arg8[%c5_192, %c0_193, %c0_194] : memref<9x1x9xbf16, #tpu.memory_space<vmem>>, vector<1x1x9xbf16>
    %214 = vector.shape_cast %213 : vector<1x1x9xbf16> to vector<1x9xbf16>
    %cst_195 = arith.constant dense<0.000000e+00> : vector<1x64xf32>
    %215 = tpu.matmul %214, %173, %cst_195 {dimension_numbers = #tpu.dot_dimension_numbers<[1], [0], [0], [1], [0, 0, 1, 1], [], []>} : vector<1x9xbf16>, vector<9x64xbf16>, vector<1x64xf32> -> vector<1x64xf32>
    %216 = arith.truncf %215 : vector<1x64xf32> to vector<1x64xbf16>
    %c5_196 = arith.constant 5 : index
    %c0_197 = arith.constant 0 : index
    %c0_198 = arith.constant 0 : index
    %217 = vector.load %arg9[%c5_196, %c0_197, %c0_198] : memref<9x64x64xbf16, #tpu.memory_space<vmem>>, vector<1x64x64xbf16>
    %218 = vector.shape_cast %217 : vector<1x64x64xbf16> to vector<64x64xbf16>
    %cst_199 = arith.constant dense<0.000000e+00> : vector<1x64xf32>
    %219 = tpu.matmul %216, %218, %cst_199 {dimension_numbers = #tpu.dot_dimension_numbers<[1], [0], [0], [1], [0, 0, 1, 1], [], []>} : vector<1x64xbf16>, vector<64x64xbf16>, vector<1x64xf32> -> vector<1x64xf32>
    %220 = arith.addf %212, %219 : vector<1x64xf32>
    %c6_200 = arith.constant 6 : index
    %c0_201 = arith.constant 0 : index
    %c0_202 = arith.constant 0 : index
    %221 = vector.load %arg8[%c6_200, %c0_201, %c0_202] : memref<9x1x9xbf16, #tpu.memory_space<vmem>>, vector<1x1x9xbf16>
    %222 = vector.shape_cast %221 : vector<1x1x9xbf16> to vector<1x9xbf16>
    %cst_203 = arith.constant dense<0.000000e+00> : vector<1x64xf32>
    %223 = tpu.matmul %222, %173, %cst_203 {dimension_numbers = #tpu.dot_dimension_numbers<[1], [0], [0], [1], [0, 0, 1, 1], [], []>} : vector<1x9xbf16>, vector<9x64xbf16>, vector<1x64xf32> -> vector<1x64xf32>
    %224 = arith.truncf %223 : vector<1x64xf32> to vector<1x64xbf16>
    %c6_204 = arith.constant 6 : index
    %c0_205 = arith.constant 0 : index
    %c0_206 = arith.constant 0 : index
    %225 = vector.load %arg9[%c6_204, %c0_205, %c0_206] : memref<9x64x64xbf16, #tpu.memory_space<vmem>>, vector<1x64x64xbf16>
    %226 = vector.shape_cast %225 : vector<1x64x64xbf16> to vector<64x64xbf16>
    %cst_207 = arith.constant dense<0.000000e+00> : vector<1x64xf32>
    %227 = tpu.matmul %224, %226, %cst_207 {dimension_numbers = #tpu.dot_dimension_numbers<[1], [0], [0], [1], [0, 0, 1, 1], [], []>} : vector<1x64xbf16>, vector<64x64xbf16>, vector<1x64xf32> -> vector<1x64xf32>
    %228 = arith.addf %220, %227 : vector<1x64xf32>
    %c7_208 = arith.constant 7 : index
    %c0_209 = arith.constant 0 : index
    %c0_210 = arith.constant 0 : index
    %229 = vector.load %arg8[%c7_208, %c0_209, %c0_210] : memref<9x1x9xbf16, #tpu.memory_space<vmem>>, vector<1x1x9xbf16>
    %230 = vector.shape_cast %229 : vector<1x1x9xbf16> to vector<1x9xbf16>
    %cst_211 = arith.constant dense<0.000000e+00> : vector<1x64xf32>
    %231 = tpu.matmul %230, %173, %cst_211 {dimension_numbers = #tpu.dot_dimension_numbers<[1], [0], [0], [1], [0, 0, 1, 1], [], []>} : vector<1x9xbf16>, vector<9x64xbf16>, vector<1x64xf32> -> vector<1x64xf32>
    %232 = arith.truncf %231 : vector<1x64xf32> to vector<1x64xbf16>
    %c7_212 = arith.constant 7 : index
    %c0_213 = arith.constant 0 : index
    %c0_214 = arith.constant 0 : index
    %233 = vector.load %arg9[%c7_212, %c0_213, %c0_214] : memref<9x64x64xbf16, #tpu.memory_space<vmem>>, vector<1x64x64xbf16>
    %234 = vector.shape_cast %233 : vector<1x64x64xbf16> to vector<64x64xbf16>
    %cst_215 = arith.constant dense<0.000000e+00> : vector<1x64xf32>
    %235 = tpu.matmul %232, %234, %cst_215 {dimension_numbers = #tpu.dot_dimension_numbers<[1], [0], [0], [1], [0, 0, 1, 1], [], []>} : vector<1x64xbf16>, vector<64x64xbf16>, vector<1x64xf32> -> vector<1x64xf32>
    %236 = arith.addf %228, %235 : vector<1x64xf32>
    %c8_216 = arith.constant 8 : index
    %c0_217 = arith.constant 0 : index
    %c0_218 = arith.constant 0 : index
    %237 = vector.load %arg8[%c8_216, %c0_217, %c0_218] : memref<9x1x9xbf16, #tpu.memory_space<vmem>>, vector<1x1x9xbf16>
    %238 = vector.shape_cast %237 : vector<1x1x9xbf16> to vector<1x9xbf16>
    %cst_219 = arith.constant dense<0.000000e+00> : vector<1x64xf32>
    %239 = tpu.matmul %238, %173, %cst_219 {dimension_numbers = #tpu.dot_dimension_numbers<[1], [0], [0], [1], [0, 0, 1, 1], [], []>} : vector<1x9xbf16>, vector<9x64xbf16>, vector<1x64xf32> -> vector<1x64xf32>
    %240 = arith.truncf %239 : vector<1x64xf32> to vector<1x64xbf16>
    %c8_220 = arith.constant 8 : index
    %c0_221 = arith.constant 0 : index
    %c0_222 = arith.constant 0 : index
    %241 = vector.load %arg9[%c8_220, %c0_221, %c0_222] : memref<9x64x64xbf16, #tpu.memory_space<vmem>>, vector<1x64x64xbf16>
    %242 = vector.shape_cast %241 : vector<1x64x64xbf16> to vector<64x64xbf16>
    %cst_223 = arith.constant dense<0.000000e+00> : vector<1x64xf32>
    %243 = tpu.matmul %240, %242, %cst_223 {dimension_numbers = #tpu.dot_dimension_numbers<[1], [0], [0], [1], [0, 0, 1, 1], [], []>} : vector<1x64xbf16>, vector<64x64xbf16>, vector<1x64xf32> -> vector<1x64xf32>
    %244 = arith.addf %236, %243 : vector<1x64xf32>
    %c0_224 = arith.constant 0 : index
    %c0_225 = arith.constant 0 : index
    %245 = vector.load %arg10[%c0_224, %c0_225] : memref<1x64xf32, #tpu.memory_space<vmem>>, vector<1x64xf32>
    %246 = arith.addf %244, %245 : vector<1x64xf32>
    %cst_226 = arith.constant 0.00999999977 : f32
    %247 = vector.broadcast %cst_226 : f32 to vector<1x64xf32>
    %248 = arith.mulf %247, %246 : vector<1x64xf32>
    %249 = arith.maximumf %246, %248 : vector<1x64xf32>
    %250 = arith.truncf %249 : vector<1x64xf32> to vector<1x64xbf16>
    %c0_227 = arith.constant 0 : index
    %c0_228 = arith.constant 0 : index
    %c0_229 = arith.constant 0 : index
    %251 = vector.load %arg11[%c0_227, %c0_228, %c0_229] : memref<1x64x512xbf16, #tpu.memory_space<vmem>>, vector<1x64x512xbf16>
    %252 = vector.shape_cast %251 : vector<1x64x512xbf16> to vector<64x512xbf16>
    %cst_230 = arith.constant dense<0.000000e+00> : vector<1x512xf32>
    %253 = tpu.matmul %250, %252, %cst_230 {dimension_numbers = #tpu.dot_dimension_numbers<[1], [0], [0], [1], [0, 0, 1, 1], [], []>} : vector<1x64xbf16>, vector<64x512xbf16>, vector<1x512xf32> -> vector<1x512xf32>
    %c0_231 = arith.constant 0 : index
    %c0_232 = arith.constant 0 : index
    %254 = vector.load %arg12[%c0_231, %c0_232] : memref<1x512xf32, #tpu.memory_space<vmem>>, vector<1x512xf32>
    %255 = arith.addf %253, %254 : vector<1x512xf32>
    %cst_233 = arith.constant 0.00999999977 : f32
    %256 = vector.broadcast %cst_233 : f32 to vector<1x512xf32>
    %257 = arith.mulf %256, %255 : vector<1x512xf32>
    %258 = arith.maximumf %255, %257 : vector<1x512xf32>
    %259 = arith.truncf %258 : vector<1x512xf32> to vector<1x512xbf16>
    %c0_234 = arith.constant 0 : index
    %c0_235 = arith.constant 0 : index
    %260 = vector.load %arg13[%c0_234, %c0_235] : memref<512x128xbf16, #tpu.memory_space<vmem>>, vector<512x128xbf16>
    %cst_236 = arith.constant dense<0.000000e+00> : vector<1x128xf32>
    %261 = tpu.matmul %259, %260, %cst_236 {dimension_numbers = #tpu.dot_dimension_numbers<[1], [0], [0], [1], [0, 0, 1, 1], [], []>} : vector<1x512xbf16>, vector<512x128xbf16>, vector<1x128xf32> -> vector<1x128xf32>
    %c0_237 = arith.constant 0 : index
    %c0_238 = arith.constant 0 : index
    %262 = vector.load %arg14[%c0_237, %c0_238] : memref<1x128xf32, #tpu.memory_space<vmem>>, vector<1x128xf32>
    %263 = arith.addf %261, %262 : vector<1x128xf32>
    %264 = vector.shape_cast %263 : vector<1x128xf32> to vector<1x1x128xf32>
    %c0_239 = arith.constant 0 : index
    %c0_240 = arith.constant 0 : index
    %c0_241 = arith.constant 0 : index
    %265 = vector.load %arg15[%c0_239, %c0_240, %c0_241] : memref<1x1x128xf32, #tpu.memory_space<vmem>>, vector<1x1x128xf32>
    tpu.vector_store %arg15[%c0_239, %c0_240, %c0_241], %264 {strides = array<i32>} : memref<1x1x128xf32, #tpu.memory_space<vmem>>, vector<1x1x128xf32>,
    return
  }
  func.func @transform_0(%arg0: i32) -> (i32, i32, i32) {
    %c0_i32 = arith.constant 0 : i32
    %c0_i32_0 = arith.constant 0 : i32
    %c0_i32_1 = arith.constant 0 : i32
    return %arg0, %c0_i32, %c0_i32_0 : i32, i32, i32
  }
  func.func @transform_1(%arg0: i32) -> (i32, i32, i32) {
    %c0_i32 = arith.constant 0 : i32
    %c0_i32_0 = arith.constant 0 : i32
    %c0_i32_1 = arith.constant 0 : i32
    %c0_i32_2 = arith.constant 0 : i32
    return %c0_i32, %c0_i32_0, %c0_i32_1 : i32, i32, i32
  }
  func.func @transform_2(%arg0: i32) -> (i32, i32, i32) {
    %c0_i32 = arith.constant 0 : i32
    %c0_i32_0 = arith.constant 0 : i32
    %c0_i32_1 = arith.constant 0 : i32
    %c0_i32_2 = arith.constant 0 : i32
    return %c0_i32, %c0_i32_0, %c0_i32_1 : i32, i32, i32
  }
  func.func @transform_3(%arg0: i32) -> (i32, i32) {
    %c0_i32 = arith.constant 0 : i32
    %c0_i32_0 = arith.constant 0 : i32
    %c0_i32_1 = arith.constant 0 : i32
    return %c0_i32, %c0_i32_0 : i32, i32
  }
  func.func @transform_4(%arg0: i32) -> (i32, i32, i32) {
    %c0_i32 = arith.constant 0 : i32
    %c0_i32_0 = arith.constant 0 : i32
    %c0_i32_1 = arith.constant 0 : i32
    %c0_i32_2 = arith.constant 0 : i32
    return %c0_i32, %c0_i32_0, %c0_i32_1 : i32, i32, i32
  }
  func.func @transform_5(%arg0: i32) -> (i32, i32, i32) {
    %c0_i32 = arith.constant 0 : i32
    %c0_i32_0 = arith.constant 0 : i32
    %c0_i32_1 = arith.constant 0 : i32
    %c0_i32_2 = arith.constant 0 : i32
    return %c0_i32, %c0_i32_0, %c0_i32_1 : i32, i32, i32
  }
  func.func @transform_6(%arg0: i32) -> (i32, i32) {
    %c0_i32 = arith.constant 0 : i32
    %c0_i32_0 = arith.constant 0 : i32
    %c0_i32_1 = arith.constant 0 : i32
    return %c0_i32, %c0_i32_0 : i32, i32
  }
  func.func @transform_7(%arg0: i32) -> (i32, i32, i32) {
    %c0_i32 = arith.constant 0 : i32
    %c0_i32_0 = arith.constant 0 : i32
    %c0_i32_1 = arith.constant 0 : i32
    %c0_i32_2 = arith.constant 0 : i32
    return %c0_i32, %c0_i32_0, %c0_i32_1 : i32, i32, i32
  }
  func.func @transform_8(%arg0: i32) -> (i32, i32, i32) {
    %c0_i32 = arith.constant 0 : i32
    %c0_i32_0 = arith.constant 0 : i32
    %c0_i32_1 = arith.constant 0 : i32
    %c0_i32_2 = arith.constant 0 : i32
    return %c0_i32, %c0_i32_0, %c0_i32_1 : i32, i32, i32
  }
  func.func @transform_9(%arg0: i32) -> (i32, i32) {
    %c0_i32 = arith.constant 0 : i32
    %c0_i32_0 = arith.constant 0 : i32
    %c0_i32_1 = arith.constant 0 : i32
    return %c0_i32, %c0_i32_0 : i32, i32
  }
  func.func @transform_10(%arg0: i32) -> (i32, i32, i32) {
    %c0_i32 = arith.constant 0 : i32
    %c0_i32_0 = arith.constant 0 : i32
    %c0_i32_1 = arith.constant 0 : i32
    %c0_i32_2 = arith.constant 0 : i32
    return %c0_i32, %c0_i32_0, %c0_i32_1 : i32, i32, i32
  }
  func.func @transform_11(%arg0: i32) -> (i32, i32) {
    %c0_i32 = arith.constant 0 : i32
    %c0_i32_0 = arith.constant 0 : i32
    %c0_i32_1 = arith.constant 0 : i32
    return %c0_i32, %c0_i32_0 : i32, i32
  }
  func.func @transform_12(%arg0: i32) -> (i32, i32) {
    %c0_i32 = arith.constant 0 : i32
    %c0_i32_0 = arith.constant 0 : i32
    %c0_i32_1 = arith.constant 0 : i32
    return %c0_i32, %c0_i32_0 : i32, i32
  }
  func.func @transform_13(%arg0: i32) -> (i32, i32) {
    %c0_i32 = arith.constant 0 : i32
    %c0_i32_0 = arith.constant 0 : i32
    %c0_i32_1 = arith.constant 0 : i32
    return %c0_i32, %c0_i32_0 : i32, i32
  }
  func.func @transform_14(%arg0: i32) -> (i32, i32, i32) {
    %c0_i32 = arith.constant 0 : i32
    %c0_i32_0 = arith.constant 0 : i32
    %c0_i32_1 = arith.constant 0 : i32
    return %arg0, %c0_i32, %c0_i32_0 : i32, i32, i32
  }
}

</mosaic_0001>

<bundles_post_ra>
// kernel: cnn_dqn_forward.1
= control target key start
LH: loop header
LB: loop body
LE: loop exit
PB: predicated region body
PF: predicated region fallthrough
CT: control target
= control target key end

     0   :  { %s7939_s0 = inlined_call_operand.vmem [shape: bf16[2,81,64], index: 0, kind: input, shape index: {}]   ;;  %s7940_s1 = inlined_call_operand.vmem [shape: bf16[4,64,81], index: 1, kind: input, shape index: {}]   ;;  %s7941_s2 = inlined_call_operand.vmem [shape: bf16[4,64,32], index: 2, kind: input, shape index: {}]   ;;  %s7942_s3 = inlined_call_operand.vmem [shape: f32[1,32], index: 3, kind: input, shape index: {}]   ;;  %s7943_s4 = inlined_call_operand.vmem [shape: bf16[16,9,64], index: 4, kind: input, shape index: {}]   ;;  %s7944_s5 = inlined_call_operand.vmem [shape: bf16[16,32,64], index: 5, kind: input, shape index: {}]   ;;  %s7945_s6 = inlined_call_operand.vmem [shape: f32[1,64], index: 6, kind: input, shape index: {}]   ;;  %s7946_s7 = inlined_call_operand.vmem [shape: bf16[9,1,9], index: 7, kind: input, shape index: {}]   ;;  %s7947_s8 = inlined_call_operand.vmem [shape: bf16[9,64,64], index: 8, kind: input, shape index: {}]   ;;  %s7948_s9 = inlined_call_operand.vmem [shape: f32[1,64], index: 9, kind: input, shape index: {}]   ;;  %s7949_s10 = inlined_call_operand.vmem [shape: bf16[1,64,512], index: 10, kind: input, shape index: {}]   ;;  %s7950_s11 = inlined_call_operand.vmem [shape: f32[1,512], index: 11, kind: input, shape index: {}]   ;;  %s7951_s12 = inlined_call_operand.vmem [shape: bf16[512,128], index: 12, kind: input, shape index: {}]   ;;  %s7952_s13 = inlined_call_operand.vmem [shape: f32[1,128], index: 13, kind: input, shape index: {}]   ;;  %s7953_s14 = inlined_call_operand.hbm [shape: f32[2,1,128], index: 14, kind: output, shape index: {}]  }
   0x1   :  { %7955 = sst [smem:[#allocation7_spill]] %s7939_s0 }
   0x2   :  { %7956 = sst [smem:[#allocation8_spill]] %s7940_s1 }
   0x3   :  { %7957 = sst [smem:[#allocation9_spill]] %s7941_s2 }
   0x4   :  { %19 = vsyncpa [#allocation3], 0 }
   0x5   :  { %21 = vsyncpa [#allocation3 + $0x1], 0  ;;  %s6820_s29 = smov 0   ;;  %s6822_s30 = smov 0  }
   0x6   :  { %s6824_s15 = smov 0   ;;  %s6826_s16 = smov 0  }
   0x7 LB: > { %7958 = sst [smem:[#allocation5_spill]] %s6734_s15  ;;  %s6841_s17 = sadd.s32 4294967295, %s6738_s16   ;;  %s6738_s16 = sphi %s6826_s16, %s7969_s16   ;;  %s6734_s15 = sphi %s6824_s15, %s7966_s15   ;;  %s6730_s30 = sphi %s6822_s30, %s7968_s30   ;;  %s6726_s29 = sphi %s6820_s29, %s7967_s29  }
   0x8   : > { %s5049_s18 = sadd.s32 4294967294, %s6738_s16   ;;  %s6845_s19 = sadd.s32 1, %s6738_s16  }
   0x9   : > { %s333_s20 = sadd.s32 1, %s6734_s15  ;;  %s330_s21 = ssub.s32 %s6738_s16, %s6845_s19 }
   0xa   : > { %p343_p0 = scmp.ne.s32.totalorder %s6734_s15, %s6730_s30  ;;  %p331_p1 = scmp.eq.s32.totalorder %s330_s21, 0 }
   0xb   : > { %p344_p2 = scmp.eq.s32.totalorder %s6841_s17, 1  ;;  %p349_p3 = scmp.ne.s32.totalorder %s6730_s30, %s6726_s29 }
   0xc   : > { %p350_p4 = scmp.eq.s32.totalorder %s5049_s18, 1  ;;  %p5052_p7 = scmp.ge.s32.totalorder %s6738_s16, 1 }
   0xd   : > { %s6856_s22 = scalar_select %p331_p1, %s6734_s15, %s333_s20  }
   0xe   : > { %p6858_p5 = por %p344_p2, %p343_p0  ;;  %p6862_p6 = por %p350_p4, %p349_p3 }
   0xf   : > { %7959 = sst [smem:[#allocation6_spill]] %s6856_s22  ;;  %p415_p8 = scmp.lt.s32.totalorder %s6738_s16, 3 }
  0x11   : > { %p416_p9 = pnand %p5052_p7, %p415_p8 }
  0x12   : > { %p460_p10 = scmp.lt.s32.totalorder (!%p416_p9), %s6841_s17, 1  ;;  %s7962_s1 = sld [smem:[#allocation8_spill]] (!%p416_p9) }
  0x13   : > { %419 = sbr.rel (%p416_p9) target bundleno = 5989 (0x1765), region = 76  ;;  %s7963_s0 = sld [smem:[#allocation7_spill]] (!%p416_p9) }
  0x14   : > { %s7964_s2 = sld [smem:[#allocation9_spill]] (!%p416_p9)  ;;  %s458_s22 = sand.u32 (!%p416_p9), 1, %s6730_s30  }
  0x15   : > { %s4982_s21 = scalar_lea.sflag (!%p416_p9), [#allocation3], %s458_s22 }
  0x18   : > { %v6506_v0 = vld [vmem:[%s7962_s1] sm:$0xff]   ;;  %vm538_vm0 = vcmask 662528   ;;  %s461_s27 = scalar_select %p460_p10, %s6841_s17, 1  ;;  %vm551_vm1 = vcmask 1040384   ;;  %v6740_v2 = vmov 0   ;;  %v6508_v13 = vld [vmem:[%s7962_s1 + $0x8] sm:$0xff]  }
  0x19   : > { %5842 = vmatprep.mubr.msk.bf16.mxu0 %vm538_vm0, %v6506_v0  ;;  %v6507_v1 = vld [vmem:[%s7962_s1 + $0x20] sm:$0xff]   ;;  %v553_v3 = vsel %vm551_vm1, 65535, %v6740_v2  ;;  %v6509_v14 = vld [vmem:[%s7962_s1 + $0x28] sm:$0xff]   ;;  %v6510_v15 = vld [vmem:[%s7962_s1 + $0x10] sm:$0xff]   ;;  %vm777_vm2 = vcmask 523264   ;;  %vm6742_vm3 = vmmov 0  }
  0x1a   : > { %s6456_s20 = smul.u32 44, %s461_s27  ;;  %5862 = vmatprep.mubr.msk.bf16.mxu1 %vm538_vm0, %v6507_v1  ;;  %v6514_v11 = vld [vmem:[%s7964_s2 + $0x38] sm:$0xff]   ;;  %v6511_v16 = vld [vmem:[%s7962_s1 + $0x30] sm:$0xff]   ;;  %v6518_v21 = vld [vmem:[%s7964_s2 + $0x28] sm:$0xff]   ;;  %vm1573_vm4 = vcmask 261120   ;;  %vm3317_vm5 = vcmask 1043456  }
  0x1b   : > { %v6515_v12 = vld [vmem:[%s7964_s2 + $0x18] sm:$0xff]   ;;  %v6516_v17 = vld [vmem:[%s7964_s2 + $0x30] sm:$0xff]   ;;  %v6519_v22 = vld [vmem:[%s7964_s2 + $0x8] sm:$0xff]   ;;  %vm3318_vm6 = vcmask 1044480   ;;  %vm3313_vm7 = vcmask 72704   ;;  %s5520_s27 = sshll.u32 %s6841_s17, 4 }
  0x1c   : > { %s464_s15 = scalar_lea.vmem %s7963_s0, %s6456_s20  ;;  %v6517_v18 = vld [vmem:[%s7964_s2 + $0x10] sm:$0xff]   ;;  %v6512_v19 = vld [vmem:[%s7962_s1 + $0x18] sm:$0xff]   ;;  %v6520_v23 = vld [vmem:[%s7964_s2 + $0x20] sm:$0xff]   ;;  %s4992_s0 = scalar_lea.hbm %s7953_s14, %s5520_s27 }
  0x1d   : > { %v6500_v4 = vld [vmem:[%s464_s15 + $0x28] ss:$0 sps:$4 sm:$0x11]   ;;  %v6884_v6 = vld [vmem:[%s464_s15 + $0x20] sm:$0xff]   ;;  %v6892_v7 = vld [vmem:[%s464_s15 + $0x18] sm:$0xff]   ;;  %s6744_s17 = smov [#allocation2]  }
  0x1e   : > { %v6882_v5 = vand.u32 %v6500_v4, %v553_v3  ;;  %v6898_v8 = vld [vmem:[%s464_s15 + $0x10] sm:$0xff]   ;;  %v6900_v9 = vld [vmem:[%s464_s15 + $0x8] sm:$0xff]   ;;  %v6906_v10 = vld [vmem:[%s464_s15] sm:$0xff]   ;;  %s459_s15 = scalar_lea.vmem [#allocation2], %s458_s22  ;;  %s6682_s26 = sshll.u32 %s6744_s17, 4  ;;  %s6683_s26 = int_to_ptr.vmem [resolvable:$false] %s6682_s26 }
  0x1f   : > { %v6513_v20 = vld [vmem:[%s7962_s1 + $0x38] sm:$0xff]   ;;  %v6521_v24 = vld [vmem:[%s7964_s2] sm:$0xff]   ;;  %v6523_v50 = vld [vmem:[%s7962_s1 + $0x48] sm:$0xff]   ;;  %s4994_s28 = sshll.u32 %s459_s15, 4  ;;  %s4995_s28 = int_to_ptr.vmem [resolvable:$true] %s4994_s28 }
  0x20   : > { %5830 = vmatprep.subr.bf16.mxu0 %v6882_v5  ;;  %5850 = vmatprep.subr.bf16.mxu1 %v6882_v5  ;;  %v6522_v49 = vld [vmem:[%s7962_s1 + $0x40] sm:$0xff]   ;;  %v6524_v51 = vld [vmem:[%s7962_s1 + $0x50] sm:$0xff]   ;;  %v6525_v52 = vld [vmem:[%s7962_s1 + $0x58] sm:$0xff]   ;;  %s6678_s25 = scalar_lea.vmem %s4995_s28, 16  ;;  %p6685_p0 = scmp.lt.s32.totalorder %s4995_s28, %s6683_s26 }
  0x21   : > { %5831 = vmatpush3.bf16.msra.mxu0 %v6882_v5  ;;  %5851 = vmatpush3.bf16.msra.mxu1 %v6882_v5  ;;  %v6526_v53 = vld [vmem:[%s7964_s2 + $0x58] sm:$0xff]   ;;  %v6527_v54 = vld [vmem:[%s7964_s2 + $0x50] sm:$0xff]   ;;  %v6528_v55 = vld [vmem:[%s7964_s2 + $0x48] sm:$0xff]   ;;  %p6679_p11 = scmp.ne.s32.totalorder %s4995_s28, %s6678_s25 }
  0x22   : > { %5832 = vmatprep.subr.bf16.mxu0 %v6884_v6  ;;  %5852 = vmatprep.subr.bf16.mxu1 %v6884_v6  ;;  %v6529_v56 = vld [vmem:[%s7964_s2 + $0x40] sm:$0xff]  }
  0x23   : > { %p6680_p12 = pnand %p6679_p11, %p6858_p5 }
  0x25   : > { %5833 = vmatpush3.bf16.msra.mxu0 %v6884_v6  ;;  %5853 = vmatpush3.bf16.msra.mxu1 %v6884_v6  ;;  %p6681_p13 = pneg %p6680_p12 }
  0x26   : > { %5834 = vmatprep.subr.bf16.mxu0 %v6892_v7  ;;  %5854 = vmatprep.subr.bf16.mxu1 %v6892_v7 }
  0x29   : > { %5835 = vmatpush3.bf16.msra.mxu0 %v6892_v7  ;;  %5855 = vmatpush3.bf16.msra.mxu1 %v6892_v7 }
  0x2a   : > { %5836 = vmatprep.subr.bf16.mxu0 %v6898_v8  ;;  %5856 = vmatprep.subr.bf16.mxu1 %v6898_v8 }
  0x2d   : > { %5837 = vmatpush3.bf16.msra.mxu0 %v6898_v8  ;;  %5857 = vmatpush3.bf16.msra.mxu1 %v6898_v8 }
  0x2e   : > { %5838 = vmatprep.subr.bf16.mxu0 %v6900_v9  ;;  %5858 = vmatprep.subr.bf16.mxu1 %v6900_v9 }
  0x31   : > { %5839 = vmatpush3.bf16.msra.mxu0 %v6900_v9  ;;  %5859 = vmatpush3.bf16.msra.mxu1 %v6900_v9 }
  0x32   : > { %5840 = vmatprep.subr.bf16.mxu0 %v6906_v10  ;;  %5860 = vmatprep.subr.bf16.mxu1 %v6906_v10 }
  0x35   : > { %5841 = vmatpush3.bf16.msra.mxu0 %v6906_v10  ;;  %5861 = vmatpush3.bf16.msra.mxu1 %v6906_v10 }
  0x36   : > { %5870 = vmatprep.subr.bf16.mxu0 %v6514_v11  ;;  %5886 = vmatprep.subr.bf16.mxu1 %v6515_v12 }
  0x38   : > { %5843 = vmatmul.mubr.msk.bf16.vlgmr.msra.gmra.mxu0 %vm538_vm0, %v6508_v13  ;;  %5863 = vmatmul.mubr.msk.bf16.vlgmr.msra.gmra.mxu1 %vm538_vm0, %v6509_v14 }
  0x39   : > { %5846 = vmatprep.mubr.msk.bf16.mxu0 %vm538_vm0, %v6510_v15  ;;  %5866 = vmatprep.mubr.msk.bf16.mxu1 %vm538_vm0, %v6511_v16 }
  0x3a   : > { %5871 = vmatpush3.bf16.msra.mxu0 %v6514_v11  ;;  %5887 = vmatpush3.bf16.msra.mxu1 %v6515_v12 }
  0x3b   : > { %5872 = vmatprep.subr.bf16.mxu0 %v6516_v17  ;;  %5888 = vmatprep.subr.bf16.mxu1 %v6517_v18 }
  0x3e   : > { %5873 = vmatpush3.bf16.msra.mxu0 %v6516_v17  ;;  %5889 = vmatpush3.bf16.msra.mxu1 %v6517_v18 }
  0x3f   : > { %5874 = vmatprep.subr.bf16.mxu0 %v6518_v21  ;;  %5890 = vmatprep.subr.bf16.mxu1 %v6519_v22 }
  0x40   : > { %5847 = vmatmul.mubr.msk.bf16.gmra.mxu0 %vm538_vm0, %v6512_v19  ;;  %5867 = vmatmul.mubr.msk.bf16.gmra.mxu1 %vm538_vm0, %v6513_v20 }
  0x42   : > { %5875 = vmatpush3.bf16.msra.mxu0 %v6518_v21  ;;  %5891 = vmatpush3.bf16.msra.mxu1 %v6519_v22 }
  0x43   : > { %5876 = vmatprep.subr.bf16.mxu0 %v6520_v23  ;;  %5892 = vmatprep.subr.bf16.mxu1 %v6521_v24 }
  0x46   : > { %5877 = vmatpush3.bf16.msra.mxu0 %v6520_v23  ;;  %5893 = vmatpush3.bf16.msra.mxu1 %v6521_v24 }
  0x47   : > { %5902 = vmatprep.subr.bf16.mxu0 %v6882_v5  ;;  %5922 = vmatprep.subr.bf16.mxu1 %v6526_v53 }
  0xf8   : > { %v5844_v25 = vpop.f32.mrf.mxu0  ;;  %v5864_v26 = vpop.f32.mrf.mxu1 }
  0xfa   : > { %v591_v27 = vpop.f32.mrf.mxu0  ;;  %v709_v28 = vpop.f32.mrf.mxu1 }
  0xfc   : > { %v5845_v29 = vpop.f32.mrf.mxu0  ;;  %v5865_v30 = vpop.f32.mrf.mxu1 }
  0xfd   : > { %v623_v31 = vpack.c.bf16 %v5845_v29, %v5844_v25  ;;  %v741_v36 = vpack.c.bf16 %v5865_v30, %v5864_v26 }
  0xfe   : > { %v594_v32 = vpop.f32.mrf.mxu0  ;;  %v712_v33 = vpop.f32.mrf.mxu1 }
  0xff   : > { %v622_v34 = vpack.c.bf16 %v594_v32, %v591_v27  ;;  %v740_v35 = vpack.c.bf16 %v712_v33, %v709_v28  ;;  %v6530_v33 = vld [vmem:[%s7962_s1 + $0x60] sm:$0xff]  }
 0x100   : > { %v5848_v37 = vpop.f32.mrf.mxu0  ;;  %v5868_v38 = vpop.f32.mrf.mxu1 }
 0x101   : > { %5878 = vmatprep.mubr.msk.bf16.mxu0 %vm777_vm2, %v740_v35  ;;  %5894 = vmatprep.mubr.msk.bf16.mxu1 %vm777_vm2, %v622_v34  ;;  %v6537_v34 = vld [vmem:[%s7964_s2 + $0x60] sm:$0xff]  }
 0x102   : > { %v607_v39 = vpop.f32.mrf.mxu0  ;;  %v725_v40 = vpop.f32.mrf.mxu1  ;;  %5879 = vmatmul.mubr.msk.bf16.vlgmr.msra.gmra.mxu0 %vm777_vm2, %v741_v36  ;;  %5895 = vmatmul.mubr.msk.bf16.vlgmr.msra.gmra.mxu1 %vm777_vm2, %v623_v31 }
 0x103   : > { %5903 = vmatpush3.bf16.msra.mxu0 %v6882_v5  ;;  %5923 = vmatpush3.bf16.msra.mxu1 %v6526_v53 }
 0x104   : > { %v5849_v41 = vpop.f32.mrf.mxu0  ;;  %v5869_v42 = vpop.f32.mrf.mxu1  ;;  %5904 = vmatprep.subr.bf16.mxu0 %v6884_v6  ;;  %5924 = vmatprep.subr.bf16.mxu1 %v6527_v54 }
 0x105   : > { %v625_v43 = vpack.c.bf16 %v5849_v41, %v5848_v37  ;;  %v743_v44 = vpack.c.bf16 %v5869_v42, %v5868_v38 }
 0x106   : > { %v610_v45 = vpop.f32.mrf.mxu0  ;;  %v728_v46 = vpop.f32.mrf.mxu1 }
 0x107   : > { %v624_v47 = vpack.c.bf16 %v610_v45, %v607_v39  ;;  %v742_v48 = vpack.c.bf16 %v728_v46, %v725_v40  ;;  %5905 = vmatpush3.bf16.msra.mxu0 %v6884_v6  ;;  %5925 = vmatpush3.bf16.msra.mxu1 %v6527_v54 }
 0x108   : > { %5906 = vmatprep.subr.bf16.mxu0 %v6892_v7  ;;  %5926 = vmatprep.subr.bf16.mxu1 %v6528_v55 }
 0x109   : > { %5882 = vmatprep.mubr.msk.bf16.mxu0 %vm777_vm2, %v742_v48  ;;  %5898 = vmatprep.mubr.msk.bf16.mxu1 %vm777_vm2, %v624_v47 }
 0x10a   : > { %5883 = vmatmul.mubr.msk.bf16.gmra.mxu0 %vm777_vm2, %v743_v44  ;;  %5899 = vmatmul.mubr.msk.bf16.gmra.mxu1 %vm777_vm2, %v625_v43 }
 0x10b   : > { %5907 = vmatpush3.bf16.msra.mxu0 %v6892_v7  ;;  %5914 = vmatprep.mubr.msk.bf16.mxu0 %vm538_vm0, %v6522_v49 }
 0x10c   : > { %5908 = vmatprep.subr.bf16.mxu0 %v6898_v8  ;;  %5927 = vmatpush3.bf16.msra.mxu1 %v6528_v55 }
 0x10d   : > { %5928 = vmatprep.subr.bf16.mxu1 %v6529_v56 }
 0x10f   : > { %5909 = vmatpush3.bf16.msra.mxu0 %v6898_v8 }
 0x110   : > { %5910 = vmatprep.subr.bf16.mxu0 %v6900_v9  ;;  %5929 = vmatpush3.bf16.msra.mxu1 %v6529_v56 }
 0x111   : > { %5938 = vmatprep.subr.bf16.mxu1 %v6882_v5 }
 0x113   : > { %5911 = vmatpush3.bf16.msra.mxu0 %v6900_v9 }
 0x114   : > { %5912 = vmatprep.subr.bf16.mxu0 %v6906_v10 }
 0x117   : > { %5913 = vmatpush3.bf16.msra.mxu0 %v6906_v10 }
 0x11a   : > { %5915 = vmatmul.mubr.msk.bf16.vlgmr.msra.gmra.mxu0 %vm538_vm0, %v6523_v50 }
 0x11b   : > { %5918 = vmatprep.mubr.msk.bf16.mxu0 %vm538_vm0, %v6524_v51 }
 0x122   : > { %5919 = vmatmul.mubr.msk.bf16.gmra.mxu0 %vm538_vm0, %v6525_v52 }
 0x1c2   : > { %v5880_v57 = vpop.f32.mrf.mxu0  ;;  %v5896_v58 = vpop.f32.mrf.mxu1 }
 0x1c3   : > { %v7015_v59 = vadd.f32 %v5896_v58, %v5880_v57 }
 0x1c4   : > { %v824_v60 = vpop.f32.mrf.mxu0  ;;  %v925_v61 = vpop.f32.mrf.mxu1 }
 0x1c5   : > { %v7017_v62 = vadd.f32 %v925_v61, %v824_v60 }
 0x1c6   : > { %v5881_v63 = vpop.f32.mrf.mxu0  ;;  %v5897_v0 = vpop.f32.mrf.mxu1 }
 0x1c7   : > { %v7019_v1 = vadd.f32 %v5897_v0, %v5881_v63  ;;  %v5172_v0 = vld [vmem:[%s7942_s3] ss:$0 sm:$0xff] }
 0x1c8   : > { %v7021_v3 = vpop.f32.mrf.mxu0  ;;  %v7023_v4 = vpop.f32.mrf.mxu1 }
 0x1ca   : > { %v5884_v11 = vpop.f32.mrf.mxu0  ;;  %v5900_v12 = vpop.f32.mrf.mxu1 }
 0x1cb   : > { %v7025_v13 = vadd.f32 %v5900_v12, %v5884_v11 }
 0x1cc   : > { %v840_v14 = vpop.f32.mrf.mxu0  ;;  %v941_v15 = vpop.f32.mrf.mxu1 }
 0x1cd   : > { %v7027_v16 = vadd.f32 %v941_v15, %v840_v14 }
 0x1ce   : > { %v5885_v17 = vpop.f32.mrf.mxu0  ;;  %v5901_v18 = vpop.f32.mrf.mxu1 }
 0x1cf   : > { %v953_v19 = vadd.f32 %v5901_v18, %v5885_v17 }
 0x1d0   : > { %v7029_v20 = vpop.f32.mrf.mxu0  ;;  %v944_v35 = vpop.f32.mrf.mxu1 }
 0x1da   : > { %v5916_v21 = vpop.f32.mrf.mxu0 }
 0x1dc   : > { %v1031_v22 = vpop.f32.mrf.mxu0 }
 0x1de   : > { %v5917_v23 = vpop.f32.mrf.mxu0 }
 0x1df   : > { %v1063_v26 = vpack.c.bf16 %v5917_v23, %v5916_v21  ;;  %v945_v23 = vadd.f32 %v944_v35, %v7029_v20 }
 0x1e0   : > { %v1034_v24 = vpop.f32.mrf.mxu0 }
 0x1e1   : > { %v1062_v25 = vpack.c.bf16 %v1034_v24, %v1031_v22 }
 0x1e2   : > { %v5920_v27 = vpop.f32.mrf.mxu0 }
 0x1e3   : > { %5930 = vmatprep.mubr.msk.bf16.mxu1 %vm777_vm2, %v1062_v25 }
 0x1e4   : > { %v1047_v28 = vpop.f32.mrf.mxu0  ;;  %5931 = vmatmul.mubr.msk.bf16.vlgmr.msra.gmra.mxu1 %vm777_vm2, %v1063_v26 }
 0x1e5   : > { %5939 = vmatpush3.bf16.msra.mxu1 %v6882_v5  ;;  %v6531_v5 = vld [vmem:[%s7962_s1 + $0x68] sm:$0xff]  }
 0x1e6   : > { %v5921_v29 = vpop.f32.mrf.mxu0  ;;  %5940 = vmatprep.subr.bf16.mxu1 %v6884_v6 }
 0x1e7   : > { %v1065_v30 = vpack.c.bf16 %v5921_v29, %v5920_v27 }
 0x1e8   : > { %v1050_v31 = vpop.f32.mrf.mxu0 }
 0x1e9   : > { %v1064_v32 = vpack.c.bf16 %v1050_v31, %v1047_v28  ;;  %5941 = vmatpush3.bf16.msra.mxu1 %v6884_v6  ;;  %v6532_v6 = vld [vmem:[%s7962_s1 + $0x70] sm:$0xff]   ;;  %v929_v31 = vadd.f32 %v7023_v4, %v7021_v3 }
 0x1ea   : > { %5942 = vmatprep.subr.bf16.mxu1 %v6892_v7 }
 0x1eb   : > { %5934 = vmatprep.mubr.msk.bf16.mxu1 %vm777_vm2, %v1064_v32 }
 0x1ec   : > { %5935 = vmatmul.mubr.msk.bf16.gmra.mxu1 %vm777_vm2, %v1065_v30 }
 0x1ed   : > { %5943 = vmatpush3.bf16.msra.mxu1 %v6892_v7  ;;  %5950 = vmatprep.mubr.msk.bf16.mxu1 %vm538_vm0, %v6530_v33  ;;  %v6533_v7 = vld [vmem:[%s7962_s1 + $0x78] sm:$0xff]   ;;  %s6684_s1 = scalar_lea.vmem %s6683_s26, 32 }
 0x1ee   : > { %5944 = vmatprep.subr.bf16.mxu1 %v6898_v8  ;;  %p6686_p1 = scmp.lt.s32.totalorder %s6684_s1, %s6678_s25 }
 0x1f0   : > { %p6687_p2 = por %p6686_p1, %p6685_p0 }
 0x1f1   : > { %5945 = vmatpush3.bf16.msra.mxu1 %v6898_v8  ;;  %v6534_v8 = vld [vmem:[%s7964_s2 + $0x78] sm:$0xff]  }
 0x1f2   : > { %5946 = vmatprep.subr.bf16.mxu1 %v6900_v9  ;;  %5958 = vmatprep.subr.bf16.mxu0 %v6534_v8  ;;  %p6688_p3 = pnand %p6687_p2, %p6681_p13 }
 0x1f3   : > { %5959 = vmatpush3.bf16.msra.mxu0 %v6534_v8 }
 0x1f5   : > { %5947 = vmatpush3.bf16.msra.mxu1 %v6900_v9  ;;  %v6535_v9 = vld [vmem:[%s7964_s2 + $0x70] sm:$0xff]  }
 0x1f6   : > { %5948 = vmatprep.subr.bf16.mxu1 %v6906_v10  ;;  %5960 = vmatprep.subr.bf16.mxu0 %v6535_v9 }
 0x1f7   : > { %5961 = vmatpush3.bf16.msra.mxu0 %v6535_v9 }
 0x1f9   : > { %5949 = vmatpush3.bf16.msra.mxu1 %v6906_v10  ;;  %v6536_v10 = vld [vmem:[%s7964_s2 + $0x68] sm:$0xff]  }
 0x1fa   : > { %5962 = vmatprep.subr.bf16.mxu0 %v6536_v10 }
 0x1fb   : > { %5963 = vmatpush3.bf16.msra.mxu0 %v6536_v10 }
 0x1fc   : > { %5951 = vmatmul.mubr.msk.bf16.vlgmr.msra.gmra.mxu1 %vm538_vm0, %v6531_v5  ;;  %5964 = vmatprep.subr.bf16.mxu0 %v6537_v34 }
 0x1fd   : > { %5954 = vmatprep.mubr.msk.bf16.mxu1 %vm538_vm0, %v6532_v6 }
 0x1ff   : > { %5965 = vmatpush3.bf16.msra.mxu0 %v6537_v34 }
 0x204   : > { %5955 = vmatmul.mubr.msk.bf16.gmra.mxu1 %vm538_vm0, %v6533_v7 }
 0x2a4   : > { %v5932_v36 = vpop.f32.mrf.mxu1 }
 0x2a5   : > { %v1178_v37 = vadd.f32 %v5932_v36, %v7015_v59 }
 0x2a6   : > { %v1145_v38 = vpop.f32.mrf.mxu1 }
 0x2a7   : > { %v7076_v39 = vadd.f32 %v1145_v38, %v7017_v62  ;;  %v6741_v62 = vmov 0.0  }
 0x2a8   : > { %v5933_v40 = vpop.f32.mrf.mxu1  ;;  %5974 = vmatprep.subr.bf16.mxu0 %v6741_v62  ;;  %5986 = vmatprep.subr.bf16.mxu1 %v6741_v62 }
 0x2a9   : > { %v1179_v41 = vadd.f32 %v5933_v40, %v7019_v1  ;;  %5994 = vmatprep.mubr.msk.bf16.mxu1 %vm6742_vm3, %v6741_v62 }
 0x2aa   : > { %v1148_v42 = vpop.f32.mrf.mxu1 }
 0x2ab   : > { %v1177_v6 = vadd.f32 %v1148_v42, %v929_v31  ;;  %v6547_v31 = vld [vmem:[%s7943_s4 + $0x18] sm:$0x1f]  }
 0x2ac   : > { %v5936_v43 = vpop.f32.mrf.mxu1 }
 0x2ad   : > { %v1182_v44 = vadd.f32 %v5936_v43, %v7025_v13 }
 0x2ae   : > { %v1161_v45 = vpop.f32.mrf.mxu1 }
 0x2af   : > { %v1180_v46 = vadd.f32 %v1161_v45, %v7027_v16 }
 0x2b0   : > { %v5937_v47 = vpop.f32.mrf.mxu1 }
 0x2b1   : > { %v1183_v48 = vadd.f32 %v5937_v47, %v953_v19 }
 0x2b2   : > { %v1164_v49 = vpop.f32.mrf.mxu1 }
 0x2b3   : > { %v1181_v29 = vadd.f32 %v1164_v49, %v945_v23  ;;  %v6538_v49 = vld [vmem:[%s7943_s4] sm:$0x1f]  }
 0x2bc   : > { %v5952_v50 = vpop.f32.mrf.mxu1 }
 0x2be   : > { %v1259_v51 = vpop.f32.mrf.mxu1 }
 0x2c0   : > { %v5953_v52 = vpop.f32.mrf.mxu1 }
 0x2c1   : > { %v1291_v55 = vpack.c.bf16 %v5953_v52, %v5952_v50  ;;  %v6539_v50 = vld [vmem:[%s7943_s4 + $0x8] sm:$0x1f]  }
 0x2c2   : > { %v1262_v53 = vpop.f32.mrf.mxu1  ;;  %v6541_v52 = vld [vmem:[%s7944_s5 + $0x8] sm:$0xff]  }
 0x2c3   : > { %v1290_v54 = vpack.c.bf16 %v1262_v53, %v1259_v51  ;;  %v6540_v51 = vld [vmem:[%s7944_s5 + $0x18] sm:$0xff]   ;;  %v6542_v53 = vld [vmem:[%s7944_s5 + $0x10] sm:$0xff]  }
 0x2c4   : > { %v5956_v56 = vpop.f32.mrf.mxu1 }
 0x2c5   : > { %5966 = vmatprep.mubr.msk.bf16.mxu0 %vm777_vm2, %v1290_v54  ;;  %v6543_v54 = vld [vmem:[%s7944_s5] sm:$0xff]  }
 0x2c6   : > { %v1275_v57 = vpop.f32.mrf.mxu1  ;;  %5967 = vmatmul.mubr.msk.bf16.vlgmr.msra.gmra.mxu0 %vm777_vm2, %v1291_v55 }
 0x2c8   : > { %v5957_v58 = vpop.f32.mrf.mxu1 }
 0x2c9   : > { %v1293_v61 = vpack.c.bf16 %v5957_v58, %v5956_v56 }
 0x2ca   : > { %v1278_v59 = vpop.f32.mrf.mxu1 }
 0x2cb   : > { %v1292_v60 = vpack.c.bf16 %v1278_v59, %v1275_v57 }
 0x2cd   : > { %5970 = vmatprep.mubr.msk.bf16.mxu0 %vm777_vm2, %v1292_v60 }
 0x2ce   : > { %5971 = vmatmul.mubr.msk.bf16.gmra.mxu0 %vm777_vm2, %v1293_v61 }
 0x2cf   : > { %5982 = vmatprep.mubr.msk.bf16.mxu0 %vm6742_vm3, %v6741_v62 }
 0x386   : > { %v5968_v63 = vpop.f32.mrf.mxu0 }
 0x387   : > { %v1406_v1 = vadd.f32 %v5968_v63, %v1178_v37 }
 0x388   : > { %v1373_v11 = vpop.f32.mrf.mxu0 }
 0x389   : > { %v1421_v12 = vadd.f32 %v5172_v0, %v1406_v1  ;;  %v1404_v36 = vadd.f32 %v1373_v11, %v7076_v39  ;;  %v6544_v11 = vld [vmem:[%s7943_s4 + $0x10] sm:$0x1f]  }
 0x38a   : > { %v5969_v13 = vpop.f32.mrf.mxu0 }
 0x38b   : > { %v1407_v14 = vadd.f32 %v5969_v13, %v1179_v41  ;;  %v1429_v16 = vmul.f32 0.01, %v1421_v12  ;;  %v1419_v4 = vadd.f32 %v5172_v0, %v1404_v36  ;;  %v6546_v13 = vld [vmem:[%s7944_s5 + $0x20] sm:$0xff]  }
 0x38c   : > { %v1376_v15 = vpop.f32.mrf.mxu0 }
 0x38d   : > { %v1422_v17 = vadd.f32 %v5172_v0, %v1407_v14  ;;  %v1437_v24 = vmax.f32 %v1421_v12, %v1429_v16  ;;  %v1405_v20 = vadd.f32 %v1376_v15, %v1177_v6  ;;  %v1427_v39 = vmul.f32 0.01, %v1419_v4  ;;  %v6545_v12 = vld [vmem:[%s7944_s5 + $0x28] sm:$0xff]  }
 0x38e   : > { %v5972_v18 = vpop.f32.mrf.mxu0 }
 0x38f   : > { %v1430_v19 = vmul.f32 0.01, %v1422_v17  ;;  %v1410_v21 = vadd.f32 %v5972_v18, %v1182_v44  ;;  %v1420_v41 = vadd.f32 %v5172_v0, %v1405_v20  ;;  %v1435_v47 = vmax.f32 %v1419_v4, %v1427_v39 }
 0x390   : > { %v1389_v22 = vpop.f32.mrf.mxu0 }
 0x391   : > { %v1438_v25 = vmax.f32 %v1422_v17, %v1430_v19  ;;  %v1425_v26 = vadd.f32 %v5172_v0, %v1410_v21  ;;  %v1408_v27 = vadd.f32 %v1389_v22, %v1180_v46  ;;  %v1428_v42 = vmul.f32 0.01, %v1420_v41 }
 0x392   : > { %v5973_v28 = vpop.f32.mrf.mxu0 }
 0x393   : > { %v7095_v30 = vpack.c.bf16 %v1438_v25, %v1437_v24  ;;  %v1411_v32 = vadd.f32 %v5973_v28, %v1183_v48  ;;  %v1433_v7 = vmul.f32 0.01, %v1425_v26  ;;  %v1423_v8 = vadd.f32 %v5172_v0, %v1408_v27 }
 0x394   : > { %v1392_v33 = vpop.f32.mrf.mxu0  ;;  %v1436_v46 = vmax.f32 %v1420_v41, %v1428_v42  ;;  %v6552_v41 = vld [vmem:[%s7944_s5 + $0x40] sm:$0xff]  }
 0x395   : > { %v1409_v5 = vadd.f32 %v1392_v33, %v1181_v29  ;;  %v1426_v9 = vadd.f32 %v5172_v0, %v1411_v32  ;;  %v1441_v37 = vmax.f32 %v1425_v26, %v1433_v7  ;;  %v1431_v38 = vmul.f32 0.01, %v1423_v8  ;;  %v6548_v32 = vld [vmem:[%s7944_s5 + $0x38] sm:$0xff]   ;;  %v6549_v33 = vld [vmem:[%s7944_s5 + $0x30] sm:$0xff]  }
 0x396   : > { %v7116_v48 = vpack.c.bf16 %v1436_v46, %v1435_v47 }
 0x397   : > { %v1424_v10 = vadd.f32 %v5172_v0, %v1409_v5  ;;  %v1434_v34 = vmul.f32 0.01, %v1426_v9  ;;  %v1439_v44 = vmax.f32 %v1423_v8, %v1431_v38  ;;  %v6550_v38 = vld [vmem:[%s7943_s4 + $0x20] sm:$0x1f]  }
 0x399   : > { %v1432_v35 = vmul.f32 0.01, %v1424_v10  ;;  %v1442_v40 = vmax.f32 %v1426_v9, %v1434_v34 }
 0x39b   : > { %v7100_v43 = vpack.c.bf16 %v1442_v40, %v1441_v37  ;;  %v1440_v3 = vmax.f32 %v1424_v10, %v1432_v35  ;;  %v6551_v40 = vld [vmem:[%s7944_s5 + $0x48] sm:$0xff]  }
 0x39d   : > { %5975 = vmatpush3.bf16.msra.mxu0 %v7100_v43  ;;  %5987 = vmatpush3.bf16.msra.mxu1 %v7100_v43  ;;  %v7106_v45 = vpack.c.bf16 %v1440_v3, %v1439_v44 }
 0x39e   : > { %5976 = vmatprep.subr.bf16.mxu0 %v6741_v62  ;;  %5988 = vmatprep.subr.bf16.mxu1 %v6741_v62 }
 0x3a1   : > { %5977 = vmatpush3.bf16.msra.mxu0 %v7106_v45  ;;  %5989 = vmatpush3.bf16.msra.mxu1 %v7106_v45 }
 0x3a2   : > { %5978 = vmatprep.subr.bf16.mxu0 %v6741_v62  ;;  %5990 = vmatprep.subr.bf16.mxu1 %v6741_v62 }
 0x3a5   : > { %5979 = vmatpush3.bf16.msra.mxu0 %v7095_v30  ;;  %5991 = vmatpush3.bf16.msra.mxu1 %v7095_v30 }
 0x3a6   : > { %5980 = vmatprep.subr.bf16.mxu0 %v6741_v62  ;;  %5992 = vmatprep.subr.bf16.mxu1 %v6741_v62 }
 0x3a9   : > { %5981 = vmatpush3.bf16.msra.mxu0 %v7116_v48  ;;  %5993 = vmatpush3.bf16.msra.mxu1 %v7116_v48 }
 0x3aa   : > { %5998 = vmatprep.subr.bf16.mxu0 %v6741_v62  ;;  %6006 = vmatprep.subr.bf16.mxu1 %v6741_v62 }
 0x3ac   : > { %5983 = vmatmul.mubr.msk.bf16.vlgmr.msra.gmra.mxu0 %vm777_vm2, %v6538_v49  ;;  %5995 = vmatmul.mubr.msk.bf16.vlgmr.msra.gmra.mxu1 %vm777_vm2, %v6539_v50 }
 0x3ad   : > { %5999 = vmatpush3.bf16.msra.mxu0 %v6540_v51  ;;  %6002 = vmatprep.mubr.msk.bf16.mxu0 %vm6742_vm3, %v6741_v62 }
 0x3ae   : > { %6000 = vmatprep.subr.bf16.mxu0 %v6741_v62  ;;  %6010 = vmatprep.mubr.msk.bf16.mxu1 %vm6742_vm3, %v6741_v62 }
 0x3af   : > { %6007 = vmatpush3.bf16.msra.mxu1 %v6541_v52 }
 0x3b0   : > { %6008 = vmatprep.subr.bf16.mxu1 %v6741_v62 }
 0x3b1   : > { %6001 = vmatpush3.bf16.msra.mxu0 %v6542_v53  ;;  %v6553_v53 = vld [vmem:[%s7943_s4 + $0x28] sm:$0x1f]  }
 0x3b2   : > { %6014 = vmatprep.subr.bf16.mxu0 %v6741_v62 }
 0x3b3   : > { %6009 = vmatpush3.bf16.msra.mxu1 %v6543_v54  ;;  %v6554_v54 = vld [vmem:[%s7944_s5 + $0x58] sm:$0xff]  }
 0x3b4   : > { %6026 = vmatprep.subr.bf16.mxu1 %v6741_v62 }
 0x46c   : > { %v1491_v55 = vpop.f32.mrf.mxu0  ;;  %v1548_v56 = vpop.f32.mrf.mxu1 }
 0x46e   : > { %v5984_v57 = vpop.f32.mrf.mxu0  ;;  %v5996_v58 = vpop.f32.mrf.mxu1 }
 0x470   : > { %v1494_v59 = vpop.f32.mrf.mxu0  ;;  %v1551_v60 = vpop.f32.mrf.mxu1 }
 0x471   : > { %v1498_v61 = vpack.c.bf16 %v1494_v59, %v1491_v55  ;;  %v1555_v63 = vpack.c.bf16 %v1551_v60, %v1548_v56  ;;  %v6555_v55 = vld [vmem:[%s7944_s5 + $0x50] sm:$0xff]  }
 0x472   : > { %v5997_v0 = vpop.f32.mrf.mxu1  ;;  %v5985_v1 = vpop.f32.mrf.mxu0 }
 0x473   : > { %6003 = vmatmul.mubr.msk.bf16.vlgmr.msra.gmra.mxu0 %vm1573_vm4, %v1555_v63  ;;  %6011 = vmatmul.mubr.msk.bf16.vlgmr.msra.gmra.mxu1 %vm1573_vm4, %v1498_v61 }
 0x474   : > { %6015 = vmatpush3.bf16.msra.mxu0 %v7100_v43  ;;  %6022 = vmatprep.mubr.msk.bf16.mxu0 %vm6742_vm3, %v6741_v62 }
 0x475   : > { %6016 = vmatprep.subr.bf16.mxu0 %v6741_v62  ;;  %6030 = vmatprep.mubr.msk.bf16.mxu1 %vm6742_vm3, %v6741_v62 }
 0x476   : > { %6027 = vmatpush3.bf16.msra.mxu1 %v6545_v12 }
 0x477   : > { %6028 = vmatprep.subr.bf16.mxu1 %v6741_v62 }
 0x478   : > { %6017 = vmatpush3.bf16.msra.mxu0 %v7106_v45 }
 0x479   : > { %6018 = vmatprep.subr.bf16.mxu0 %v6741_v62 }
 0x47a   : > { %6029 = vmatpush3.bf16.msra.mxu1 %v6546_v13  ;;  %v6556_v13 = vld [vmem:[%s7943_s4 + $0x30] sm:$0x1f]  }
 0x47b   : > { %6034 = vmatprep.subr.bf16.mxu1 %v6741_v62 }
 0x47c   : > { %6019 = vmatpush3.bf16.msra.mxu0 %v7095_v30 }
 0x47d   : > { %6020 = vmatprep.subr.bf16.mxu0 %v6741_v62 }
 0x480   : > { %6021 = vmatpush3.bf16.msra.mxu0 %v7116_v48 }
 0x481   : > { %6046 = vmatprep.subr.bf16.mxu0 %v6741_v62 }
 0x483   : > { %6023 = vmatmul.mubr.msk.bf16.vlgmr.msra.gmra.mxu0 %vm777_vm2, %v6544_v11 }
 0x484   : > { %6050 = vmatprep.mubr.msk.bf16.mxu0 %vm6742_vm3, %v6741_v62  ;;  %6047 = vmatpush3.bf16.msra.mxu0 %v6548_v32 }
 0x485   : > { %6048 = vmatprep.subr.bf16.mxu0 %v6741_v62 }
 0x488   : > { %6049 = vmatpush3.bf16.msra.mxu0 %v6549_v33 }
 0x489   : > { %6054 = vmatprep.subr.bf16.mxu0 %v6741_v62 }
 0x533   : > { %v1611_v14 = vpop.f32.mrf.mxu0  ;;  %v1667_v15 = vpop.f32.mrf.mxu1 }
 0x534   : > { %v1668_v16 = vadd.f32 %v1667_v15, %v1611_v14  ;;  %v6557_v14 = vld [vmem:[%s7944_s5 + $0x68] sm:$0xff]   ;;  %v6558_v15 = vld [vmem:[%s7944_s5 + $0x60] sm:$0xff]  }
 0x535   : > { %v6004_v17 = vpop.f32.mrf.mxu0  ;;  %v6012_v18 = vpop.f32.mrf.mxu1 }
 0x537   : > { %v1614_v19 = vpop.f32.mrf.mxu0  ;;  %v1670_v21 = vpop.f32.mrf.mxu1 }
 0x538   : > { %v1671_v22 = vadd.f32 %v1670_v21, %v1614_v19 }
 0x539   : > { %v6005_v23 = vpop.f32.mrf.mxu0  ;;  %v6013_v24 = vpop.f32.mrf.mxu1 }
 0x543   : > { %v1719_v25 = vpop.f32.mrf.mxu0 }
 0x545   : > { %v6024_v26 = vpop.f32.mrf.mxu0 }
 0x547   : > { %v1722_v27 = vpop.f32.mrf.mxu0 }
 0x548   : > { %v1726_v28 = vpack.c.bf16 %v1722_v27, %v1719_v25 }
 0x549   : > { %v6025_v29 = vpop.f32.mrf.mxu0 }
 0x54a   : > { %6031 = vmatmul.mubr.msk.bf16.vlgmr.msra.gmra.mxu1 %vm1573_vm4, %v1726_v28  ;;  %v6559_v28 = vld [vmem:[%s7943_s4 + $0x38] sm:$0x1f]  }
 0x54b   : > { %6035 = vmatpush3.bf16.msra.mxu1 %v7100_v43  ;;  %6042 = vmatprep.mubr.msk.bf16.mxu1 %vm6742_vm3, %v6741_v62  ;;  %v6560_v29 = vld [vmem:[%s7944_s5 + $0x78] sm:$0xff]  }
 0x54c   : > { %6036 = vmatprep.subr.bf16.mxu1 %v6741_v62 }
 0x54f   : > { %6037 = vmatpush3.bf16.msra.mxu1 %v7106_v45 }
 0x550   : > { %6038 = vmatprep.subr.bf16.mxu1 %v6741_v62 }
 0x553   : > { %6039 = vmatpush3.bf16.msra.mxu1 %v7095_v30 }
 0x554   : > { %6040 = vmatprep.subr.bf16.mxu1 %v6741_v62 }
 0x557   : > { %6041 = vmatpush3.bf16.msra.mxu1 %v7116_v48 }
 0x558   : > { %6066 = vmatprep.subr.bf16.mxu1 %v6741_v62 }
 0x55a   : > { %6043 = vmatmul.mubr.msk.bf16.vlgmr.msra.gmra.mxu1 %vm777_vm2, %v6547_v31  ;;  %v6561_v31 = vld [vmem:[%s7944_s5 + $0x70] sm:$0xff]  }
 0x55b   : > { %6070 = vmatprep.mubr.msk.bf16.mxu1 %vm6742_vm3, %v6741_v62  ;;  %6067 = vmatpush3.bf16.msra.mxu1 %v6551_v40 }
 0x55c   : > { %6068 = vmatprep.subr.bf16.mxu1 %v6741_v62 }
 0x55f   : > { %6069 = vmatpush3.bf16.msra.mxu1 %v6552_v41 }
 0x560   : > { %6074 = vmatprep.subr.bf16.mxu1 %v6741_v62 }
 0x60a   : > { %v1781_v5 = vpop.f32.mrf.mxu1 }
 0x60b   : > { %v1788_v6 = vadd.f32 %v1781_v5, %v1668_v16 }
 0x60c   : > { %v6032_v7 = vpop.f32.mrf.mxu1 }
 0x60e   : > { %v1784_v8 = vpop.f32.mrf.mxu1 }
 0x60f   : > { %v1789_v9 = vadd.f32 %v1784_v8, %v1671_v22 }
 0x610   : > { %v6033_v10 = vpop.f32.mrf.mxu1 }
 0x61a   : > { %v1835_v20 = vpop.f32.mrf.mxu1 }
 0x61c   : > { %v6044_v34 = vpop.f32.mrf.mxu1 }
 0x61e   : > { %v1838_v35 = vpop.f32.mrf.mxu1 }
 0x61f   : > { %v1842_v36 = vpack.c.bf16 %v1838_v35, %v1835_v20 }
 0x620   : > { %v6045_v37 = vpop.f32.mrf.mxu1 }
 0x621   : > { %6051 = vmatmul.mubr.msk.bf16.vlgmr.msra.gmra.mxu0 %vm1573_vm4, %v1842_v36  ;;  %v6562_v36 = vld [vmem:[%s7943_s4 + $0x40] sm:$0x1f]   ;;  %v6563_v37 = vld [vmem:[%s7944_s5 + $0x88] sm:$0xff]  }
 0x622   : > { %6055 = vmatpush3.bf16.msra.mxu0 %v7100_v43  ;;  %6062 = vmatprep.mubr.msk.bf16.mxu0 %vm6742_vm3, %v6741_v62 }
 0x623   : > { %6056 = vmatprep.subr.bf16.mxu0 %v6741_v62 }
 0x626   : > { %6057 = vmatpush3.bf16.msra.mxu0 %v7106_v45 }
 0x627   : > { %6058 = vmatprep.subr.bf16.mxu0 %v6741_v62 }
 0x62a   : > { %6059 = vmatpush3.bf16.msra.mxu0 %v7095_v30 }
 0x62b   : > { %6060 = vmatprep.subr.bf16.mxu0 %v6741_v62 }
 0x62e   : > { %6061 = vmatpush3.bf16.msra.mxu0 %v7116_v48 }
 0x62f   : > { %6086 = vmatprep.subr.bf16.mxu0 %v6741_v62 }
 0x631   : > { %6063 = vmatmul.mubr.msk.bf16.vlgmr.msra.gmra.mxu0 %vm777_vm2, %v6550_v38  ;;  %v6564_v38 = vld [vmem:[%s7944_s5 + $0x80] sm:$0xff]  }
 0x632   : > { %6090 = vmatprep.mubr.msk.bf16.mxu0 %vm6742_vm3, %v6741_v62  ;;  %6087 = vmatpush3.bf16.msra.mxu0 %v6554_v54 }
 0x633   : > { %6088 = vmatprep.subr.bf16.mxu0 %v6741_v62 }
 0x636   : > { %6089 = vmatpush3.bf16.msra.mxu0 %v6555_v55 }
 0x637   : > { %6094 = vmatprep.subr.bf16.mxu0 %v6741_v62 }
 0x6e1   : > { %v1897_v3 = vpop.f32.mrf.mxu0 }
 0x6e2   : > { %v1904_v4 = vadd.f32 %v1897_v3, %v1788_v6 }
 0x6e3   : > { %v6052_v44 = vpop.f32.mrf.mxu0 }
 0x6e5   : > { %v1900_v42 = vpop.f32.mrf.mxu0 }
 0x6e6   : > { %v1905_v39 = vadd.f32 %v1900_v42, %v1789_v9 }
 0x6e7   : > { %v6053_v46 = vpop.f32.mrf.mxu0 }
 0x6f1   : > { %v1951_v47 = vpop.f32.mrf.mxu0 }
 0x6f3   : > { %v6064_v49 = vpop.f32.mrf.mxu0 }
 0x6f5   : > { %v1954_v50 = vpop.f32.mrf.mxu0 }
 0x6f6   : > { %v1958_v51 = vpack.c.bf16 %v1954_v50, %v1951_v47 }
 0x6f7   : > { %v6065_v52 = vpop.f32.mrf.mxu0 }
 0x6f8   : > { %6071 = vmatmul.mubr.msk.bf16.vlgmr.msra.gmra.mxu1 %vm1573_vm4, %v1958_v51  ;;  %v6565_v51 = vld [vmem:[%s7943_s4 + $0x48] sm:$0x1f]   ;;  %v6566_v52 = vld [vmem:[%s7944_s5 + $0x98] sm:$0xff]  }
 0x6f9   : > { %6075 = vmatpush3.bf16.msra.mxu1 %v7100_v43  ;;  %6082 = vmatprep.mubr.msk.bf16.mxu1 %vm6742_vm3, %v6741_v62 }
 0x6fa   : > { %6076 = vmatprep.subr.bf16.mxu1 %v6741_v62 }
 0x6fd   : > { %6077 = vmatpush3.bf16.msra.mxu1 %v7106_v45 }
 0x6fe   : > { %6078 = vmatprep.subr.bf16.mxu1 %v6741_v62 }
 0x701   : > { %6079 = vmatpush3.bf16.msra.mxu1 %v7095_v30 }
 0x702   : > { %6080 = vmatprep.subr.bf16.mxu1 %v6741_v62 }
 0x705   : > { %6081 = vmatpush3.bf16.msra.mxu1 %v7116_v48 }
 0x706   : > { %6106 = vmatprep.subr.bf16.mxu1 %v6741_v62 }
 0x708   : > { %6083 = vmatmul.mubr.msk.bf16.vlgmr.msra.gmra.mxu1 %vm777_vm2, %v6553_v53  ;;  %v6567_v53 = vld [vmem:[%s7944_s5 + $0x90] sm:$0xff]  }
 0x709   : > { %6110 = vmatprep.mubr.msk.bf16.mxu1 %vm6742_vm3, %v6741_v62  ;;  %6107 = vmatpush3.bf16.msra.mxu1 %v6557_v14 }
 0x70a   : > { %6108 = vmatprep.subr.bf16.mxu1 %v6741_v62 }
 0x70d   : > { %6109 = vmatpush3.bf16.msra.mxu1 %v6558_v15 }
 0x70e   : > { %6114 = vmatprep.subr.bf16.mxu1 %v6741_v62 }
 0x7b8   : > { %v2013_v56 = vpop.f32.mrf.mxu1 }
 0x7b9   : > { %v2020_v57 = vadd.f32 %v2013_v56, %v1904_v4 }
 0x7ba   : > { %v6072_v58 = vpop.f32.mrf.mxu1 }
 0x7bc   : > { %v2016_v59 = vpop.f32.mrf.mxu1 }
 0x7bd   : > { %v2021_v60 = vadd.f32 %v2016_v59, %v1905_v39 }
 0x7be   : > { %v6073_v61 = vpop.f32.mrf.mxu1 }
 0x7c8   : > { %v2067_v63 = vpop.f32.mrf.mxu1 }
 0x7ca   : > { %v6084_v0 = vpop.f32.mrf.mxu1 }
 0x7cc   : > { %v2070_v1 = vpop.f32.mrf.mxu1 }
 0x7cd   : > { %v2074_v11 = vpack.c.bf16 %v2070_v1, %v2067_v63 }
 0x7ce   : > { %v6085_v12 = vpop.f32.mrf.mxu1 }
 0x7cf   : > { %6091 = vmatmul.mubr.msk.bf16.vlgmr.msra.gmra.mxu0 %vm1573_vm4, %v2074_v11  ;;  %v6568_v11 = vld [vmem:[%s7943_s4 + $0x50] sm:$0x1f]   ;;  %v6569_v12 = vld [vmem:[%s7944_s5 + $0xa8] sm:$0xff]  }
 0x7d0   : > { %6095 = vmatpush3.bf16.msra.mxu0 %v7100_v43  ;;  %6102 = vmatprep.mubr.msk.bf16.mxu0 %vm6742_vm3, %v6741_v62 }
 0x7d1   : > { %6096 = vmatprep.subr.bf16.mxu0 %v6741_v62 }
 0x7d4   : > { %6097 = vmatpush3.bf16.msra.mxu0 %v7106_v45 }
 0x7d5   : > { %6098 = vmatprep.subr.bf16.mxu0 %v6741_v62 }
 0x7d8   : > { %6099 = vmatpush3.bf16.msra.mxu0 %v7095_v30 }
 0x7d9   : > { %6100 = vmatprep.subr.bf16.mxu0 %v6741_v62 }
 0x7dc   : > { %6101 = vmatpush3.bf16.msra.mxu0 %v7116_v48 }
 0x7dd   : > { %6126 = vmatprep.subr.bf16.mxu0 %v6741_v62 }
 0x7df   : > { %6103 = vmatmul.mubr.msk.bf16.vlgmr.msra.gmra.mxu0 %vm777_vm2, %v6556_v13  ;;  %v6570_v13 = vld [vmem:[%s7944_s5 + $0xa0] sm:$0xff]  }
 0x7e0   : > { %6130 = vmatprep.mubr.msk.bf16.mxu0 %vm6742_vm3, %v6741_v62  ;;  %6127 = vmatpush3.bf16.msra.mxu0 %v6560_v29 }
 0x7e1   : > { %6128 = vmatprep.subr.bf16.mxu0 %v6741_v62 }
 0x7e4   : > { %6129 = vmatpush3.bf16.msra.mxu0 %v6561_v31 }
 0x7e5   : > { %6134 = vmatprep.subr.bf16.mxu0 %v6741_v62 }
 0x88f   : > { %v2129_v16 = vpop.f32.mrf.mxu0 }
 0x890   : > { %v2136_v17 = vadd.f32 %v2129_v16, %v2020_v57 }
 0x891   : > { %v6092_v18 = vpop.f32.mrf.mxu0 }
 0x893   : > { %v2132_v19 = vpop.f32.mrf.mxu0 }
 0x894   : > { %v2137_v21 = vadd.f32 %v2132_v19, %v2021_v60 }
 0x895   : > { %v6093_v22 = vpop.f32.mrf.mxu0 }
 0x89f   : > { %v2183_v23 = vpop.f32.mrf.mxu0 }
 0x8a1   : > { %v6104_v24 = vpop.f32.mrf.mxu0 }
 0x8a3   : > { %v2186_v25 = vpop.f32.mrf.mxu0 }
 0x8a4   : > { %v2190_v26 = vpack.c.bf16 %v2186_v25, %v2183_v23 }
 0x8a5   : > { %v6105_v27 = vpop.f32.mrf.mxu0 }
 0x8a6   : > { %6111 = vmatmul.mubr.msk.bf16.vlgmr.msra.gmra.mxu1 %vm1573_vm4, %v2190_v26  ;;  %v6571_v26 = vld [vmem:[%s7943_s4 + $0x58] sm:$0x1f]  }
 0x8a7   : > { %6115 = vmatpush3.bf16.msra.mxu1 %v7100_v43  ;;  %6122 = vmatprep.mubr.msk.bf16.mxu1 %vm6742_vm3, %v6741_v62  ;;  %v6572_v27 = vld [vmem:[%s7944_s5 + $0xb8] sm:$0xff]  }
 0x8a8   : > { %6116 = vmatprep.subr.bf16.mxu1 %v6741_v62 }
 0x8ab   : > { %6117 = vmatpush3.bf16.msra.mxu1 %v7106_v45 }
 0x8ac   : > { %6118 = vmatprep.subr.bf16.mxu1 %v6741_v62 }
 0x8af   : > { %6119 = vmatpush3.bf16.msra.mxu1 %v7095_v30 }
 0x8b0   : > { %6120 = vmatprep.subr.bf16.mxu1 %v6741_v62 }
 0x8b3   : > { %6121 = vmatpush3.bf16.msra.mxu1 %v7116_v48 }
 0x8b4   : > { %6146 = vmatprep.subr.bf16.mxu1 %v6741_v62 }
 0x8b6   : > { %6123 = vmatmul.mubr.msk.bf16.vlgmr.msra.gmra.mxu1 %vm777_vm2, %v6559_v28  ;;  %v6573_v28 = vld [vmem:[%s7944_s5 + $0xb0] sm:$0xff]  }
 0x8b7   : > { %6150 = vmatprep.mubr.msk.bf16.mxu1 %vm6742_vm3, %v6741_v62  ;;  %6147 = vmatpush3.bf16.msra.mxu1 %v6563_v37 }
 0x8b8   : > { %6148 = vmatprep.subr.bf16.mxu1 %v6741_v62 }
 0x8bb   : > { %6149 = vmatpush3.bf16.msra.mxu1 %v6564_v38 }
 0x8bc   : > { %6154 = vmatprep.subr.bf16.mxu1 %v6741_v62 }
 0x966   : > { %v2245_v32 = vpop.f32.mrf.mxu1 }
 0x967   : > { %v2252_v33 = vadd.f32 %v2245_v32, %v2136_v17 }
 0x968   : > { %v6112_v5 = vpop.f32.mrf.mxu1 }
 0x96a   : > { %v2248_v6 = vpop.f32.mrf.mxu1 }
 0x96b   : > { %v2253_v7 = vadd.f32 %v2248_v6, %v2137_v21 }
 0x96c   : > { %v6113_v8 = vpop.f32.mrf.mxu1 }
 0x976   : > { %v2299_v9 = vpop.f32.mrf.mxu1 }
 0x978   : > { %v6124_v10 = vpop.f32.mrf.mxu1 }
 0x97a   : > { %v2302_v20 = vpop.f32.mrf.mxu1 }
 0x97b   : > { %v2306_v34 = vpack.c.bf16 %v2302_v20, %v2299_v9 }
 0x97c   : > { %v6125_v35 = vpop.f32.mrf.mxu1 }
 0x97d   : > { %6131 = vmatmul.mubr.msk.bf16.vlgmr.msra.gmra.mxu0 %vm1573_vm4, %v2306_v34  ;;  %v6574_v34 = vld [vmem:[%s7943_s4 + $0x60] sm:$0x1f]   ;;  %v6575_v35 = vld [vmem:[%s7944_s5 + $0xc8] sm:$0xff]  }
 0x97e   : > { %6135 = vmatpush3.bf16.msra.mxu0 %v7100_v43  ;;  %6142 = vmatprep.mubr.msk.bf16.mxu0 %vm6742_vm3, %v6741_v62 }
 0x97f   : > { %6136 = vmatprep.subr.bf16.mxu0 %v6741_v62 }
 0x982   : > { %6137 = vmatpush3.bf16.msra.mxu0 %v7106_v45 }
 0x983   : > { %6138 = vmatprep.subr.bf16.mxu0 %v6741_v62 }
 0x986   : > { %6139 = vmatpush3.bf16.msra.mxu0 %v7095_v30 }
 0x987   : > { %6140 = vmatprep.subr.bf16.mxu0 %v6741_v62 }
 0x98a   : > { %6141 = vmatpush3.bf16.msra.mxu0 %v7116_v48 }
 0x98b   : > { %6166 = vmatprep.subr.bf16.mxu0 %v6741_v62 }
 0x98d   : > { %6143 = vmatmul.mubr.msk.bf16.vlgmr.msra.gmra.mxu0 %vm777_vm2, %v6562_v36  ;;  %v6576_v36 = vld [vmem:[%s7944_s5 + $0xc0] sm:$0xff]  }
 0x98e   : > { %6170 = vmatprep.mubr.msk.bf16.mxu0 %vm6742_vm3, %v6741_v62  ;;  %6167 = vmatpush3.bf16.msra.mxu0 %v6566_v52 }
 0x98f   : > { %6168 = vmatprep.subr.bf16.mxu0 %v6741_v62 }
 0x992   : > { %6169 = vmatpush3.bf16.msra.mxu0 %v6567_v53 }
 0x993   : > { %6174 = vmatprep.subr.bf16.mxu0 %v6741_v62 }
 0xa3d   : > { %v2361_v40 = vpop.f32.mrf.mxu0 }
 0xa3e   : > { %v2368_v41 = vadd.f32 %v2361_v40, %v2252_v33 }
 0xa3f   : > { %v6132_v3 = vpop.f32.mrf.mxu0 }
 0xa41   : > { %v2364_v4 = vpop.f32.mrf.mxu0 }
 0xa42   : > { %v2369_v44 = vadd.f32 %v2364_v4, %v2253_v7 }
 0xa43   : > { %v6133_v42 = vpop.f32.mrf.mxu0 }
 0xa4d   : > { %v2415_v39 = vpop.f32.mrf.mxu0 }
 0xa4f   : > { %v6144_v46 = vpop.f32.mrf.mxu0 }
 0xa51   : > { %v2418_v47 = vpop.f32.mrf.mxu0 }
 0xa52   : > { %v2422_v49 = vpack.c.bf16 %v2418_v47, %v2415_v39 }
 0xa53   : > { %v6145_v50 = vpop.f32.mrf.mxu0 }
 0xa54   : > { %6151 = vmatmul.mubr.msk.bf16.vlgmr.msra.gmra.mxu1 %vm1573_vm4, %v2422_v49  ;;  %v6577_v49 = vld [vmem:[%s7943_s4 + $0x68] sm:$0x1f]   ;;  %v6578_v50 = vld [vmem:[%s7944_s5 + $0xd8] sm:$0xff]  }
 0xa55   : > { %6155 = vmatpush3.bf16.msra.mxu1 %v7100_v43  ;;  %6162 = vmatprep.mubr.msk.bf16.mxu1 %vm6742_vm3, %v6741_v62 }
 0xa56   : > { %6156 = vmatprep.subr.bf16.mxu1 %v6741_v62 }
 0xa59   : > { %6157 = vmatpush3.bf16.msra.mxu1 %v7106_v45 }
 0xa5a   : > { %6158 = vmatprep.subr.bf16.mxu1 %v6741_v62 }
 0xa5d   : > { %6159 = vmatpush3.bf16.msra.mxu1 %v7095_v30 }
 0xa5e   : > { %6160 = vmatprep.subr.bf16.mxu1 %v6741_v62 }
 0xa61   : > { %6161 = vmatpush3.bf16.msra.mxu1 %v7116_v48 }
 0xa62   : > { %6186 = vmatprep.subr.bf16.mxu1 %v6741_v62 }
 0xa64   : > { %6163 = vmatmul.mubr.msk.bf16.vlgmr.msra.gmra.mxu1 %vm777_vm2, %v6565_v51  ;;  %v6579_v51 = vld [vmem:[%s7944_s5 + $0xd0] sm:$0xff]  }
 0xa65   : > { %6190 = vmatprep.mubr.msk.bf16.mxu1 %vm6742_vm3, %v6741_v62  ;;  %6187 = vmatpush3.bf16.msra.mxu1 %v6569_v12 }
 0xa66   : > { %6188 = vmatprep.subr.bf16.mxu1 %v6741_v62 }
 0xa69   : > { %6189 = vmatpush3.bf16.msra.mxu1 %v6570_v13 }
 0xa6a   : > { %6194 = vmatprep.subr.bf16.mxu1 %v6741_v62 }
 0xb14   : > { %v2477_v54 = vpop.f32.mrf.mxu1 }
 0xb15   : > { %v2484_v55 = vadd.f32 %v2477_v54, %v2368_v41 }
 0xb16   : > { %v6152_v56 = vpop.f32.mrf.mxu1 }
 0xb18   : > { %v2480_v57 = vpop.f32.mrf.mxu1 }
 0xb19   : > { %v2485_v58 = vadd.f32 %v2480_v57, %v2369_v44 }
 0xb1a   : > { %v6153_v59 = vpop.f32.mrf.mxu1 }
 0xb24   : > { %v2531_v60 = vpop.f32.mrf.mxu1 }
 0xb26   : > { %v6164_v61 = vpop.f32.mrf.mxu1 }
 0xb28   : > { %v2534_v63 = vpop.f32.mrf.mxu1 }
 0xb29   : > { %v2538_v0 = vpack.c.bf16 %v2534_v63, %v2531_v60 }
 0xb2a   : > { %v6165_v1 = vpop.f32.mrf.mxu1 }
 0xb2b   : > { %6171 = vmatmul.mubr.msk.bf16.vlgmr.msra.gmra.mxu0 %vm1573_vm4, %v2538_v0  ;;  %v6580_v0 = vld [vmem:[%s7943_s4 + $0x70] sm:$0x1f]   ;;  %v6581_v1 = vld [vmem:[%s7944_s5 + $0xe8] sm:$0xff]  }
 0xb2c   : > { %6175 = vmatpush3.bf16.msra.mxu0 %v7100_v43  ;;  %6182 = vmatprep.mubr.msk.bf16.mxu0 %vm6742_vm3, %v6741_v62 }
 0xb2d   : > { %6176 = vmatprep.subr.bf16.mxu0 %v6741_v62 }
 0xb30   : > { %6177 = vmatpush3.bf16.msra.mxu0 %v7106_v45 }
 0xb31   : > { %6178 = vmatprep.subr.bf16.mxu0 %v6741_v62 }
 0xb34   : > { %6179 = vmatpush3.bf16.msra.mxu0 %v7095_v30 }
 0xb35   : > { %6180 = vmatprep.subr.bf16.mxu0 %v6741_v62 }
 0xb38   : > { %6181 = vmatpush3.bf16.msra.mxu0 %v7116_v48 }
 0xb39   : > { %6206 = vmatprep.subr.bf16.mxu0 %v6741_v62 }
 0xb3b   : > { %6183 = vmatmul.mubr.msk.bf16.vlgmr.msra.gmra.mxu0 %vm777_vm2, %v6568_v11  ;;  %v6582_v11 = vld [vmem:[%s7944_s5 + $0xe0] sm:$0xff]  }
 0xb3c   : > { %6210 = vmatprep.mubr.msk.bf16.mxu0 %vm6742_vm3, %v6741_v62  ;;  %6207 = vmatpush3.bf16.msra.mxu0 %v6572_v27 }
 0xb3d   : > { %6208 = vmatprep.subr.bf16.mxu0 %v6741_v62 }
 0xb40   : > { %6209 = vmatpush3.bf16.msra.mxu0 %v6573_v28 }
 0xb41   : > { %6214 = vmatprep.subr.bf16.mxu0 %v6741_v62 }
 0xbeb   : > { %v2593_v14 = vpop.f32.mrf.mxu0 }
 0xbec   : > { %v2600_v15 = vadd.f32 %v2593_v14, %v2484_v55 }
 0xbed   : > { %v6172_v16 = vpop.f32.mrf.mxu0 }
 0xbef   : > { %v2596_v17 = vpop.f32.mrf.mxu0 }
 0xbf0   : > { %v2601_v18 = vadd.f32 %v2596_v17, %v2485_v58 }
 0xbf1   : > { %v6173_v19 = vpop.f32.mrf.mxu0 }
 0xbfb   : > { %v2647_v21 = vpop.f32.mrf.mxu0 }
 0xbfd   : > { %v6184_v22 = vpop.f32.mrf.mxu0 }
 0xbff   : > { %v2650_v23 = vpop.f32.mrf.mxu0 }
 0xc00   : > { %v2654_v24 = vpack.c.bf16 %v2650_v23, %v2647_v21 }
 0xc01   : > { %v6185_v25 = vpop.f32.mrf.mxu0 }
 0xc02   : > { %6191 = vmatmul.mubr.msk.bf16.vlgmr.msra.gmra.mxu1 %vm1573_vm4, %v2654_v24  ;;  %v6583_v24 = vld [vmem:[%s7943_s4 + $0x78] sm:$0x1f]  }
 0xc03   : > { %6195 = vmatpush3.bf16.msra.mxu1 %v7100_v43  ;;  %6202 = vmatprep.mubr.msk.bf16.mxu1 %vm6742_vm3, %v6741_v62 }
 0xc04   : > { %6196 = vmatprep.subr.bf16.mxu1 %v6741_v62 }
 0xc07   : > { %6197 = vmatpush3.bf16.msra.mxu1 %v7106_v45 }
 0xc08   : > { %6198 = vmatprep.subr.bf16.mxu1 %v6741_v62 }
 0xc0b   : > { %6199 = vmatpush3.bf16.msra.mxu1 %v7095_v30 }
 0xc0c   : > { %6200 = vmatprep.subr.bf16.mxu1 %v6741_v62 }
 0xc0f   : > { %6201 = vmatpush3.bf16.msra.mxu1 %v7116_v48 }
 0xc10   : > { %6226 = vmatprep.subr.bf16.mxu1 %v6741_v62 }
 0xc12   : > { %6203 = vmatmul.mubr.msk.bf16.vlgmr.msra.gmra.mxu1 %vm777_vm2, %v6571_v26 }
 0xc13   : > { %6230 = vmatprep.mubr.msk.bf16.mxu1 %vm6742_vm3, %v6741_v62  ;;  %6227 = vmatpush3.bf16.msra.mxu1 %v6575_v35 }
 0xc14   : > { %6228 = vmatprep.subr.bf16.mxu1 %v6741_v62 }
 0xc17   : > { %6229 = vmatpush3.bf16.msra.mxu1 %v6576_v36 }
 0xc18   : > { %6234 = vmatprep.subr.bf16.mxu1 %v6741_v62 }
 0xcc2   : > { %v2709_v29 = vpop.f32.mrf.mxu1 }
 0xcc3   : > { %v2716_v31 = vadd.f32 %v2709_v29, %v2600_v15 }
 0xcc4   : > { %v6192_v32 = vpop.f32.mrf.mxu1 }
 0xcc6   : > { %v2712_v33 = vpop.f32.mrf.mxu1 }
 0xcc7   : > { %v2717_v5 = vadd.f32 %v2712_v33, %v2601_v18 }
 0xcc8   : > { %v6193_v6 = vpop.f32.mrf.mxu1 }
 0xcd2   : > { %v2763_v7 = vpop.f32.mrf.mxu1 }
 0xcd4   : > { %v6204_v8 = vpop.f32.mrf.mxu1 }
 0xcd6   : > { %v2766_v9 = vpop.f32.mrf.mxu1 }
 0xcd7   : > { %v2770_v10 = vpack.c.bf16 %v2766_v9, %v2763_v7  ;;  %v5343_v7 = vld [vmem:[%s7945_s6] ss:$0 sm:$0xff] }
 0xcd8   : > { %v6205_v20 = vpop.f32.mrf.mxu1 }
 0xcd9   : > { %6211 = vmatmul.mubr.msk.bf16.vlgmr.msra.gmra.mxu0 %vm1573_vm4, %v2770_v10 }
 0xcda   : > { %6215 = vmatpush3.bf16.msra.mxu0 %v7100_v43  ;;  %6222 = vmatprep.mubr.msk.bf16.mxu0 %vm6742_vm3, %v6741_v62 }
 0xcdb   : > { %6216 = vmatprep.subr.bf16.mxu0 %v6741_v62 }
 0xcde   : > { %6217 = vmatpush3.bf16.msra.mxu0 %v7106_v45 }
 0xcdf   : > { %6218 = vmatprep.subr.bf16.mxu0 %v6741_v62 }
 0xce2   : > { %6219 = vmatpush3.bf16.msra.mxu0 %v7095_v30 }
 0xce3   : > { %6220 = vmatprep.subr.bf16.mxu0 %v6741_v62 }
 0xce6   : > { %6221 = vmatpush3.bf16.msra.mxu0 %v7116_v48 }
 0xce7   : > { %6246 = vmatprep.subr.bf16.mxu0 %v6741_v62 }
 0xce9   : > { %6223 = vmatmul.mubr.msk.bf16.vlgmr.msra.gmra.mxu0 %vm777_vm2, %v6574_v34 }
 0xcea   : > { %6250 = vmatprep.mubr.msk.bf16.mxu0 %vm6742_vm3, %v6741_v62  ;;  %6247 = vmatpush3.bf16.msra.mxu0 %v6578_v50  ;;  %v6588_v50 = vld [vmem:[%s7947_s8 + $0x18] sm:$0xff]  }
 0xceb   : > { %6248 = vmatprep.subr.bf16.mxu0 %v6741_v62 }
 0xcee   : > { %6249 = vmatpush3.bf16.msra.mxu0 %v6579_v51  ;;  %v6587_v51 = vld [vmem:[%s7947_s8 + $0x30] sm:$0xff]  }
 0xcef   : > { %6254 = vmatprep.subr.bf16.mxu0 %v6741_v62 }
 0xd99   : > { %v2825_v37 = vpop.f32.mrf.mxu0 }
 0xd9a   : > { %v2832_v38 = vadd.f32 %v2825_v37, %v2716_v31 }
 0xd9b   : > { %v6212_v40 = vpop.f32.mrf.mxu0 }
 0xd9c   : > { %v6743_v40 = vmov 65535  }
 0xd9d   : > { %v2828_v41 = vpop.f32.mrf.mxu0 }
 0xd9e   : > { %v2833_v3 = vadd.f32 %v2828_v41, %v2717_v5  ;;  %v3319_v41 = vsel %vm3317_vm5, 4294967295, %v6743_v40  ;;  %v6606_v40 = vld [vmem:[%s7947_s8 + $0x80] sm:$0xff]  }
 0xd9f   : > { %v6213_v4 = vpop.f32.mrf.mxu0 }
 0xda9   : > { %v2879_v44 = vpop.f32.mrf.mxu0 }
 0xdab   : > { %v6224_v42 = vpop.f32.mrf.mxu0 }
 0xdad   : > { %v2882_v39 = vpop.f32.mrf.mxu0 }
 0xdae   : > { %v2886_v46 = vpack.c.bf16 %v2882_v39, %v2879_v44  ;;  %v3320_v44 = vsel %vm3318_vm6, %v3319_v41, 0  ;;  %v6607_v41 = vld [vmem:[%s7947_s8 + $0xb0] sm:$0xff]  }
 0xdaf   : > { %v6225_v47 = vpop.f32.mrf.mxu0 }
 0xdb0   : > { %6231 = vmatmul.mubr.msk.bf16.vlgmr.msra.gmra.mxu1 %vm1573_vm4, %v2886_v46  ;;  %v5345_v46 = vld [vmem:[%s7946_s7 + $0x1] sm:$0x1]  ;;  %v3312_v47 = vld [vmem:[%s7946_s7] sm:$0x1] }
 0xdb1   : > { %6235 = vmatpush3.bf16.msra.mxu1 %v7100_v43  ;;  %6242 = vmatprep.mubr.msk.bf16.mxu1 %vm6742_vm3, %v6741_v62 }
 0xdb2   : > { %6236 = vmatprep.subr.bf16.mxu1 %v6741_v62 }
 0xdb5   : > { %6237 = vmatpush3.bf16.msra.mxu1 %v7106_v45 }
 0xdb6   : > { %6238 = vmatprep.subr.bf16.mxu1 %v6741_v62 }
 0xdb9   : > { %6239 = vmatpush3.bf16.msra.mxu1 %v7095_v30 }
 0xdba   : > { %6240 = vmatprep.subr.bf16.mxu1 %v6741_v62 }
 0xdbd   : > { %6241 = vmatpush3.bf16.msra.mxu1 %v7116_v48 }
 0xdbe   : > { %6266 = vmatprep.subr.bf16.mxu1 %v6741_v62 }
 0xdc0   : > { %6243 = vmatmul.mubr.msk.bf16.vlgmr.msra.gmra.mxu1 %vm777_vm2, %v6577_v49  ;;  %v6586_v49 = vld [vmem:[%s7947_s8 + $0x38] sm:$0xff]  }
 0xdc1   : > { %6270 = vmatprep.mubr.msk.bf16.mxu1 %vm6742_vm3, %v6741_v62  ;;  %6267 = vmatpush3.bf16.msra.mxu1 %v6581_v1 }
 0xdc2   : > { %6268 = vmatprep.subr.bf16.mxu1 %v6741_v62 }
 0xdc5   : > { %6269 = vmatpush3.bf16.msra.mxu1 %v6582_v11 }
 0xdc6   : > { %6274 = vmatprep.subr.bf16.mxu1 %v6741_v62 }
 0xe70   : > { %v2941_v52 = vpop.f32.mrf.mxu1 }
 0xe71   : > { %v2948_v53 = vadd.f32 %v2941_v52, %v2832_v38  ;;  %v6590_v52 = vld [vmem:[%s7947_s8 + $0x10] sm:$0xff]  }
 0xe72   : > { %v6232_v54 = vpop.f32.mrf.mxu1 }
 0xe73   : > { %v6591_v54 = vld [vmem:[%s7947_s8 + $0x20] sm:$0xff]  }
 0xe74   : > { %v2944_v55 = vpop.f32.mrf.mxu1 }
 0xe75   : > { %v2949_v56 = vadd.f32 %v2944_v55, %v2833_v3  ;;  %v6592_v55 = vld [vmem:[%s7947_s8 + $0x8] sm:$0xff]  }
 0xe76   : > { %v6233_v57 = vpop.f32.mrf.mxu1 }
 0xe80   : > { %v2995_v58 = vpop.f32.mrf.mxu1 }
 0xe82   : > { %v6244_v59 = vpop.f32.mrf.mxu1 }
 0xe84   : > { %v2998_v60 = vpop.f32.mrf.mxu1 }
 0xe85   : > { %v3002_v61 = vpack.c.bf16 %v2998_v60, %v2995_v58 }
 0xe86   : > { %v6245_v63 = vpop.f32.mrf.mxu1 }
 0xe87   : > { %6251 = vmatmul.mubr.msk.bf16.vlgmr.msra.gmra.mxu0 %vm1573_vm4, %v3002_v61  ;;  %v6594_v61 = vld [vmem:[%s7947_s8 + $0x58] sm:$0xff]  }
 0xe88   : > { %6255 = vmatpush3.bf16.msra.mxu0 %v7100_v43  ;;  %6262 = vmatprep.mubr.msk.bf16.mxu0 %vm6742_vm3, %v6741_v62 }
 0xe89   : > { %6256 = vmatprep.subr.bf16.mxu0 %v6741_v62 }
 0xe8c   : > { %6257 = vmatpush3.bf16.msra.mxu0 %v7106_v45 }
 0xe8d   : > { %6258 = vmatprep.subr.bf16.mxu0 %v6741_v62 }
 0xe90   : > { %6259 = vmatpush3.bf16.msra.mxu0 %v7095_v30 }
 0xe91   : > { %6260 = vmatprep.subr.bf16.mxu0 %v6741_v62 }
 0xe94   : > { %6261 = vmatpush3.bf16.msra.mxu0 %v7116_v48 }
 0xe95   : > { %6286 = vmatprep.subr.bf16.mxu0 %v6741_v62 }
 0xe97   : > { %6263 = vmatmul.mubr.msk.bf16.vlgmr.msra.gmra.mxu0 %vm777_vm2, %v6580_v0 }
 0xe98   : > { %6290 = vmatprep.mubr.msk.bf16.mxu0 %vm6742_vm3, %v6741_v62 }
 0xf47   : > { %v3057_v12 = vpop.f32.mrf.mxu0 }
 0xf48   : > { %v3064_v13 = vadd.f32 %v3057_v12, %v2948_v53  ;;  %v6589_v53 = vld [vmem:[%s7947_s8 + $0x28] sm:$0xff]   ;;  %v6595_v12 = vld [vmem:[%s7947_s8 + $0x50] sm:$0xff]  }
 0xf49   : > { %v6252_v14 = vpop.f32.mrf.mxu0 }
 0xf4b   : > { %v3060_v15 = vpop.f32.mrf.mxu0 }
 0xf4c   : > { %v3065_v16 = vadd.f32 %v3060_v15, %v2949_v56  ;;  %v6593_v56 = vld [vmem:[%s7947_s8] sm:$0xff]  }
 0xf4d   : > { %v6253_v17 = vpop.f32.mrf.mxu0  ;;  %v5365_v15 = vld [vmem:[%s7946_s7 + $0x2] sm:$0x1] }
 0xf4e   : > { %v6596_v17 = vld [vmem:[%s7947_s8 + $0x48] sm:$0xff]  }
 0xf57   : > { %v3111_v18 = vpop.f32.mrf.mxu0 }
 0xf59   : > { %v6264_v19 = vpop.f32.mrf.mxu0 }
 0xf5a   : > { %v6598_v19 = vld [vmem:[%s7947_s8 + $0x40] sm:$0xff]  }
 0xf5b   : > { %v3114_v21 = vpop.f32.mrf.mxu0 }
 0xf5c   : > { %v3118_v22 = vpack.c.bf16 %v3114_v21, %v3111_v18  ;;  %v6597_v18 = vld [vmem:[%s7947_s8 + $0x78] sm:$0xff]   ;;  %v6599_v21 = vld [vmem:[%s7947_s8 + $0x70] sm:$0xff]  }
 0xf5d   : > { %v6265_v23 = vpop.f32.mrf.mxu0 }
 0xf5e   : > { %6271 = vmatmul.mubr.msk.bf16.vlgmr.msra.gmra.mxu1 %vm1573_vm4, %v3118_v22  ;;  %v6600_v22 = vld [vmem:[%s7947_s8 + $0x68] sm:$0xff]   ;;  %v6601_v23 = vld [vmem:[%s7947_s8 + $0x60] sm:$0xff]  }
 0xf5f   : > { %6275 = vmatpush3.bf16.msra.mxu1 %v7100_v43  ;;  %6282 = vmatprep.mubr.msk.bf16.mxu1 %vm6742_vm3, %v6741_v62  ;;  %v6584_v43 = vld [vmem:[%s7944_s5 + $0xf8] sm:$0xff]  }
 0xf60   : > { %6276 = vmatprep.subr.bf16.mxu1 %v6741_v62  ;;  %6287 = vmatpush3.bf16.msra.mxu0 %v6584_v43 }
 0xf61   : > { %6288 = vmatprep.subr.bf16.mxu0 %v6741_v62 }
 0xf63   : > { %6277 = vmatpush3.bf16.msra.mxu1 %v7106_v45 }
 0xf64   : > { %6278 = vmatprep.subr.bf16.mxu1 %v6741_v62 }
 0xf67   : > { %6279 = vmatpush3.bf16.msra.mxu1 %v7095_v30  ;;  %v6585_v30 = vld [vmem:[%s7944_s5 + $0xf0] sm:$0xff]  }
 0xf68   : > { %6280 = vmatprep.subr.bf16.mxu1 %v6741_v62  ;;  %6289 = vmatpush3.bf16.msra.mxu0 %v6585_v30 }
 0xf69   : > { %6294 = vmatprep.subr.bf16.mxu0 %v6741_v62 }
 0xf6b   : > { %6281 = vmatpush3.bf16.msra.mxu1 %v7116_v48 }
 0xf6c   : > { %6300 = vmatprep.subr.bf16.mxu1 %v6741_v62 }
 0xf6e   : > { %6283 = vmatmul.mubr.msk.bf16.vlgmr.msra.gmra.mxu1 %vm777_vm2, %v6583_v24 }
 0xf6f   : > { %6302 = vmatprep.mubr.msk.bf16.mxu1 %vm6742_vm3, %v6741_v62 }
0x101e   : > { %v3173_v45 = vpop.f32.mrf.mxu1 }
0x101f   : > { %v3180_v48 = vadd.f32 %v3173_v45, %v3064_v13 }
0x1020   : > { %v6272_v25 = vpop.f32.mrf.mxu1 }
0x1022   : > { %v3176_v26 = vpop.f32.mrf.mxu1 }
0x1023   : > { %v3181_v27 = vadd.f32 %v3176_v26, %v3065_v16  ;;  %v5380_v16 = vld [vmem:[%s7946_s7 + $0x3] sm:$0x1] }
0x1024   : > { %v6273_v28 = vpop.f32.mrf.mxu1 }
0x102e   : > { %v3227_v29 = vpop.f32.mrf.mxu1 }
0x1030   : > { %v6284_v31 = vpop.f32.mrf.mxu1 }
0x1032   : > { %v3230_v32 = vpop.f32.mrf.mxu1 }
0x1033   : > { %v3234_v33 = vpack.c.bf16 %v3230_v32, %v3227_v29 }
0x1034   : > { %v6285_v5 = vpop.f32.mrf.mxu1 }
0x1035   : > { %6291 = vmatmul.mubr.msk.bf16.vlgmr.msra.gmra.mxu0 %vm1573_vm4, %v3234_v33 }
0x1036   : > { %6296 = vmatprep.mubr.msk.bf16.mxu0 %vm6742_vm3, %v6741_v62 }
0x10f5   : > { %v3289_v6 = vpop.f32.mrf.mxu0 }
0x10f6   : > { %v3296_v8 = vadd.f32 %v3289_v6, %v3180_v48 }
0x10f7   : > { %v6292_v9 = vpop.f32.mrf.mxu0 }
0x10f8   : > { %v3305_v10 = vadd.f32 %v5343_v7, %v3296_v8  ;;  %v6602_v9 = vld [vmem:[%s7947_s8 + $0x98] sm:$0xff]  }
0x10f9   : > { %v3292_v20 = vpop.f32.mrf.mxu0 }
0x10fa   : > { %v3297_v34 = vadd.f32 %v3292_v20, %v3181_v27  ;;  %v3307_v36 = vmul.f32 0.01, %v3305_v10 }
0x10fb   : > { %v6293_v35 = vpop.f32.mrf.mxu0 }
0x10fc   : > { %v3306_v37 = vadd.f32 %v5343_v7, %v3297_v34  ;;  %v3309_v3 = vmax.f32 %v3305_v10, %v3307_v36  ;;  %v5395_v7 = vld [vmem:[%s7946_s7 + $0x4] sm:$0x1]  ;;  %v6603_v34 = vld [vmem:[%s7947_s8 + $0x90] sm:$0xff]   ;;  %v5410_v36 = vld [vmem:[%s7946_s7 + $0x5] sm:$0x1] }
0x10fe   : > { %v3308_v38 = vmul.f32 0.01, %v3306_v37 }
0x1100   : > { %v3310_v4 = vmax.f32 %v3306_v37, %v3308_v38  ;;  %v6604_v37 = vld [vmem:[%s7947_s8 + $0x88] sm:$0xff]   ;;  %v6605_v38 = vld [vmem:[%s7947_s8 + $0xb8] sm:$0xff]  }
0x1102   : > { %v3311_v42 = vpack.c.bf16 %v3310_v4, %v3309_v3  ;;  %v6608_v3 = vld [vmem:[%s7947_s8 + $0xa8] sm:$0xff]   ;;  %v6609_v4 = vld [vmem:[%s7947_s8 + $0xa0] sm:$0xff]  }
0x1104   : > { %v7509_v39 = vand.u32 %v3320_v44, %v3311_v42 }
0x1106   : > { %6295 = vmatpush3.bf16.msra.mxu0 %v7509_v39  ;;  %6301 = vmatpush3.bf16.msra.mxu1 %v7509_v39 }
0x1107   : > { %6306 = vmatprep.subr.bf16.mxu0 %v6741_v62  ;;  %6318 = vmatprep.subr.bf16.mxu1 %v6741_v62 }
0x1109   : > { %6303 = vmatmul.mubr.msk.bf16.vlgmr.msra.gmra.mxu1 %vm3313_vm7, %v5345_v46  ;;  %6297 = vmatmul.mubr.msk.bf16.vlgmr.msra.gmra.mxu0 %vm3313_vm7, %v3312_v47 }
0x110a   : > { %6307 = vmatpush3.bf16.msra.mxu0 %v6586_v49  ;;  %6319 = vmatpush3.bf16.msra.mxu1 %v6588_v50 }
0x110b   : > { %6308 = vmatprep.subr.bf16.mxu0 %v6741_v62  ;;  %6320 = vmatprep.subr.bf16.mxu1 %v6741_v62 }
0x110c   : > { %6314 = vmatprep.mubr.msk.bf16.mxu0 %vm6742_vm3, %v6741_v62  ;;  %6326 = vmatprep.mubr.msk.bf16.mxu1 %vm6742_vm3, %v6741_v62 }
0x110e   : > { %6309 = vmatpush3.bf16.msra.mxu0 %v6587_v51  ;;  %6321 = vmatpush3.bf16.msra.mxu1 %v6590_v52 }
0x110f   : > { %6310 = vmatprep.subr.bf16.mxu0 %v6741_v62  ;;  %6322 = vmatprep.subr.bf16.mxu1 %v6741_v62 }
0x1112   : > { %6311 = vmatpush3.bf16.msra.mxu0 %v6589_v53  ;;  %6323 = vmatpush3.bf16.msra.mxu1 %v6592_v55 }
0x1113   : > { %6312 = vmatprep.subr.bf16.mxu0 %v6741_v62  ;;  %6324 = vmatprep.subr.bf16.mxu1 %v6741_v62 }
0x1116   : > { %6313 = vmatpush3.bf16.msra.mxu0 %v6591_v54  ;;  %6325 = vmatpush3.bf16.msra.mxu1 %v6593_v56 }
0x1117   : > { %6330 = vmatprep.subr.bf16.mxu0 %v6741_v62  ;;  %6336 = vmatprep.subr.bf16.mxu1 %v6741_v62 }
0x11c9   : > { %v3412_v57 = vpop.f32.mrf.mxu1  ;;  %v3358_v58 = vpop.f32.mrf.mxu0 }
0x11ca   : > { %v3418_v59 = vpack.c.bf16 %v3412_v57, %v3412_v57  ;;  %v3364_v60 = vpack.c.bf16 %v3358_v58, %v3358_v58 }
0x11cb   : > { %v6304_v63 = vpop.f32.mrf.mxu1  ;;  %v6298_v0 = vpop.f32.mrf.mxu0 }
0x11cc   : > { %6315 = vmatmul.mubr.msk.bf16.vlgmr.msra.gmra.mxu0 %vm777_vm2, %v3418_v59  ;;  %6327 = vmatmul.mubr.msk.bf16.vlgmr.msra.gmra.mxu1 %vm777_vm2, %v3364_v60  ;;  %v6610_v0 = vld [vmem:[%s7947_s8 + $0xd8] sm:$0xff]  }
0x11cd   : > { %6331 = vmatpush3.bf16.msra.mxu0 %v7509_v39  ;;  %v3415_v1 = vpop.f32.mrf.mxu1  ;;  %6332 = vmatprep.mubr.msk.bf16.mxu0 %vm6742_vm3, %v6741_v62  ;;  %v3361_v11 = vpop.f32.mrf.mxu0 }
0x11ce   : > { %6348 = vmatprep.subr.bf16.mxu0 %v6741_v62  ;;  %6337 = vmatpush3.bf16.msra.mxu1 %v6594_v61  ;;  %v5425_v61 = vld [vmem:[%s7946_s7 + $0x6] sm:$0x1] }
0x11cf   : > { %v6305_v13 = vpop.f32.mrf.mxu1  ;;  %v6299_v14 = vpop.f32.mrf.mxu0  ;;  %6338 = vmatprep.subr.bf16.mxu1 %v6741_v62  ;;  %6344 = vmatprep.mubr.msk.bf16.mxu1 %vm6742_vm3, %v6741_v62 }
0x11d0   : > { %v5440_v14 = vld [vmem:[%s7946_s7 + $0x7] sm:$0x1] }
0x11d2   : > { %6339 = vmatpush3.bf16.msra.mxu1 %v6595_v12  ;;  %v6611_v12 = vld [vmem:[%s7947_s8 + $0xd0] sm:$0xff]  }
0x11d3   : > { %6340 = vmatprep.subr.bf16.mxu1 %v6741_v62 }
0x11d4   : > { %6333 = vmatmul.mubr.msk.bf16.vlgmr.msra.gmra.mxu0 %vm3313_vm7, %v5365_v15  ;;  %v6612_v15 = vld [vmem:[%s7947_s8 + $0xc8] sm:$0xff]  }
0x11d5   : > { %6349 = vmatpush3.bf16.msra.mxu0 %v7509_v39  ;;  %6350 = vmatprep.mubr.msk.bf16.mxu0 %vm6742_vm3, %v6741_v62 }
0x11d6   : > { %6354 = vmatprep.subr.bf16.mxu0 %v6741_v62  ;;  %6341 = vmatpush3.bf16.msra.mxu1 %v6596_v17  ;;  %v6614_v17 = vld [vmem:[%s7947_s8 + $0xc0] sm:$0xff]  }
0x11d7   : > { %6342 = vmatprep.subr.bf16.mxu1 %v6741_v62 }
0x11da   : > { %6343 = vmatpush3.bf16.msra.mxu1 %v6598_v19  ;;  %v6616_v19 = vld [vmem:[%s7947_s8 + $0xe8] sm:$0xff]  }
0x11db   : > { %6366 = vmatprep.subr.bf16.mxu1 %v6741_v62 }
0x11dc   : > { %6351 = vmatmul.mubr.msk.bf16.vlgmr.msra.gmra.mxu0 %vm3313_vm7, %v5380_v16  ;;  %v6613_v16 = vld [vmem:[%s7947_s8 + $0xf8] sm:$0xff]  }
0x11dd   : > { %6362 = vmatprep.mubr.msk.bf16.mxu0 %vm6742_vm3, %v6741_v62  ;;  %6355 = vmatpush3.bf16.msra.mxu0 %v6597_v18  ;;  %v6615_v18 = vld [vmem:[%s7947_s8 + $0xf0] sm:$0xff]  }
0x11de   : > { %6356 = vmatprep.subr.bf16.mxu0 %v6741_v62 }
0x11e1   : > { %6357 = vmatpush3.bf16.msra.mxu0 %v6599_v21  ;;  %v6617_v21 = vld [vmem:[%s7947_s8 + $0xe0] sm:$0xff]  }
0x11e2   : > { %6358 = vmatprep.subr.bf16.mxu0 %v6741_v62 }
0x11e5   : > { %6359 = vmatpush3.bf16.msra.mxu0 %v6600_v22 }
0x11e6   : > { %6360 = vmatprep.subr.bf16.mxu0 %v6741_v62 }
0x11e9   : > { %6361 = vmatpush3.bf16.msra.mxu0 %v6601_v23 }
0x11ea   : > { %6384 = vmatprep.subr.bf16.mxu0 %v6741_v62 }
0x128c   : > { %v3489_v24 = vpop.f32.mrf.mxu0  ;;  %v3556_v43 = vpop.f32.mrf.mxu1 }
0x128d   : > { %v3557_v30 = vadd.f32 %v3556_v43, %v3489_v24 }
0x128e   : > { %v6316_v45 = vpop.f32.mrf.mxu0  ;;  %v6328_v48 = vpop.f32.mrf.mxu1 }
0x1290   : > { %v3492_v25 = vpop.f32.mrf.mxu0  ;;  %v3559_v26 = vpop.f32.mrf.mxu1 }
0x1292   : > { %v6317_v27 = vpop.f32.mrf.mxu0  ;;  %v6329_v28 = vpop.f32.mrf.mxu1 }
0x1294   : > { %v3601_v29 = vpop.f32.mrf.mxu0 }
0x1295   : > { %v3607_v31 = vpack.c.bf16 %v3601_v29, %v3601_v29 }
0x1296   : > { %v6334_v32 = vpop.f32.mrf.mxu0 }
0x1297   : > { %6345 = vmatmul.mubr.msk.bf16.vlgmr.msra.gmra.mxu1 %vm777_vm2, %v3607_v31 }
0x1298   : > { %6367 = vmatpush3.bf16.msra.mxu1 %v7509_v39  ;;  %v3604_v33 = vpop.f32.mrf.mxu0  ;;  %6368 = vmatprep.mubr.msk.bf16.mxu1 %vm6742_vm3, %v6741_v62 }
0x1299   : > { %6372 = vmatprep.subr.bf16.mxu1 %v6741_v62 }
0x129a   : > { %v6335_v5 = vpop.f32.mrf.mxu0 }
0x129c   : > { %v3724_v6 = vpop.f32.mrf.mxu0 }
0x129d   : > { %v3730_v8 = vpack.c.bf16 %v3724_v6, %v3724_v6  ;;  %v5455_v6 = vld [vmem:[%s7946_s7 + $0x8] sm:$0x1] }
0x129e   : > { %v6352_v10 = vpop.f32.mrf.mxu0 }
0x129f   : > { %6363 = vmatmul.mubr.msk.bf16.vlgmr.msra.gmra.mxu0 %vm777_vm2, %v3730_v8  ;;  %6369 = vmatmul.mubr.msk.bf16.vlgmr.msra.gmra.mxu1 %vm3313_vm7, %v5395_v7  ;;  %v6618_v7 = vld [vmem:[%s7947_s8 + $0x118] sm:$0xff]  }
0x12a0   : > { %6385 = vmatpush3.bf16.msra.mxu0 %v7509_v39  ;;  %6386 = vmatprep.mubr.msk.bf16.mxu0 %vm6742_vm3, %v6741_v62  ;;  %v3727_v20 = vpop.f32.mrf.mxu0 }
0x12a1   : > { %6373 = vmatpush3.bf16.msra.mxu1 %v6602_v9  ;;  %6390 = vmatprep.subr.bf16.mxu0 %v6741_v62  ;;  %v6619_v20 = vld [vmem:[%s7947_s8 + $0x110] sm:$0xff]  }
0x12a2   : > { %6374 = vmatprep.subr.bf16.mxu1 %v6741_v62  ;;  %v6353_v35 = vpop.f32.mrf.mxu0  ;;  %6380 = vmatprep.mubr.msk.bf16.mxu1 %vm6742_vm3, %v6741_v62 }
0x12a3   : > { %v6621_v35 = vld [vmem:[%s7947_s8 + $0x100] sm:$0xff]  }
0x12a5   : > { %6375 = vmatpush3.bf16.msra.mxu1 %v6603_v34  ;;  %v6620_v34 = vld [vmem:[%s7947_s8 + $0x108] sm:$0xff]  }
0x12a6   : > { %6376 = vmatprep.subr.bf16.mxu1 %v6741_v62 }
0x12a7   : > { %6387 = vmatmul.mubr.msk.bf16.vlgmr.msra.gmra.mxu0 %vm3313_vm7, %v5410_v36  ;;  %v6622_v36 = vld [vmem:[%s7949_s10 + $0x60] ss:$16 sps:$4 sm:$0xff]  }
0x12a8   : > { %6398 = vmatprep.mubr.msk.bf16.mxu0 %vm6742_vm3, %v6741_v62  ;;  %6391 = vmatpush3.bf16.msra.mxu0 %v6605_v38  ;;  %v6627_v38 = vld [vmem:[%s7949_s10 + $0x6c] ss:$16 sps:$4 sm:$0xff]  }
0x12a9   : > { %6377 = vmatpush3.bf16.msra.mxu1 %v6604_v37  ;;  %6392 = vmatprep.subr.bf16.mxu0 %v6741_v62  ;;  %v6624_v37 = vld [vmem:[%s7949_s10 + $0x64] ss:$16 sps:$4 sm:$0xff]  }
0x12aa   : > { %6378 = vmatprep.subr.bf16.mxu1 %v6741_v62 }
0x12ac   : > { %6393 = vmatpush3.bf16.msra.mxu0 %v6607_v41 }
0x12ad   : > { %6379 = vmatpush3.bf16.msra.mxu1 %v6606_v40  ;;  %6394 = vmatprep.subr.bf16.mxu0 %v6741_v62  ;;  %v6628_v40 = vld [vmem:[%s7949_s10 + $0x40] ss:$16 sps:$4 sm:$0xff]  }
0x12ae   : > { %6402 = vmatprep.subr.bf16.mxu1 %v6741_v62 }
0x12b0   : > { %6395 = vmatpush3.bf16.msra.mxu0 %v6608_v3 }
0x12b1   : > { %6396 = vmatprep.subr.bf16.mxu0 %v6741_v62 }
0x12b4   : > { %6397 = vmatpush3.bf16.msra.mxu0 %v6609_v4 }
0x12b5   : > { %6420 = vmatprep.subr.bf16.mxu0 %v6741_v62 }
0x1357   : > { %v3678_v44 = vpop.f32.mrf.mxu1 }
0x1358   : > { %v3684_v42 = vadd.f32 %v3678_v44, %v3557_v30 }
0x1359   : > { %v6346_v46 = vpop.f32.mrf.mxu1 }
0x135b   : > { %v3681_v47 = vpop.f32.mrf.mxu1 }
0x135d   : > { %v6347_v49 = vpop.f32.mrf.mxu1 }
0x135e   : > { %v6625_v49 = vld [vmem:[%s7949_s10 + $0x68] ss:$16 sps:$4 sm:$0xff]  }
0x135f   : > { %v3801_v50 = vpop.f32.mrf.mxu0  ;;  %v3847_v51 = vpop.f32.mrf.mxu1 }
0x1360   : > { %v3807_v52 = vadd.f32 %v3801_v50, %v3684_v42  ;;  %v3853_v53 = vpack.c.bf16 %v3847_v51, %v3847_v51 }
0x1361   : > { %v6364_v54 = vpop.f32.mrf.mxu0  ;;  %v6370_v55 = vpop.f32.mrf.mxu1 }
0x1362   : > { %6381 = vmatmul.mubr.msk.bf16.vlgmr.msra.gmra.mxu1 %vm777_vm2, %v3853_v53 }
0x1363   : > { %6403 = vmatpush3.bf16.msra.mxu1 %v7509_v39  ;;  %v3804_v56 = vpop.f32.mrf.mxu0  ;;  %v3850_v57 = vpop.f32.mrf.mxu1  ;;  %6404 = vmatprep.mubr.msk.bf16.mxu1 %vm6742_vm3, %v6741_v62 }
0x1364   : > { %6408 = vmatprep.subr.bf16.mxu1 %v6741_v62  ;;  %v6631_v56 = vld [vmem:[%s7949_s10 + $0x48] ss:$16 sps:$4 sm:$0xff]  }
0x1365   : > { %v6365_v58 = vpop.f32.mrf.mxu0  ;;  %v6371_v59 = vpop.f32.mrf.mxu1 }
0x1367   : > { %v3970_v60 = vpop.f32.mrf.mxu0 }
0x1368   : > { %v3976_v63 = vpack.c.bf16 %v3970_v60, %v3970_v60  ;;  %v6636_v60 = vld [vmem:[%s7949_s10 + $0x24] ss:$16 sps:$4 sm:$0xff]  }
0x1369   : > { %v6388_v1 = vpop.f32.mrf.mxu0 }
0x136a   : > { %6399 = vmatmul.mubr.msk.bf16.vlgmr.msra.gmra.mxu0 %vm777_vm2, %v3976_v63  ;;  %6405 = vmatmul.mubr.msk.bf16.vlgmr.msra.gmra.mxu1 %vm3313_vm7, %v5425_v61  ;;  %v6639_v61 = vld [vmem:[%s7949_s10 + $0x2c] ss:$16 sps:$4 sm:$0xff]   ;;  %v6634_v63 = vld [vmem:[%s7949_s10 + $0x20] ss:$16 sps:$4 sm:$0xff]  }
0x136b   : > { %6421 = vmatpush3.bf16.msra.mxu0 %v7509_v39  ;;  %6422 = vmatprep.mubr.msk.bf16.mxu0 %vm6742_vm3, %v6741_v62  ;;  %v3973_v11 = vpop.f32.mrf.mxu0  ;;  %v6645_v1 = vld [vmem:[%s7949_s10 + $0xc] ss:$16 sps:$4 sm:$0xff]  }
0x136c   : > { %6409 = vmatpush3.bf16.msra.mxu1 %v6610_v0  ;;  %6426 = vmatprep.subr.bf16.mxu0 %v6741_v62  ;;  %v6642_v0 = vld [vmem:[%s7949_s10 + $0x4] ss:$16 sps:$4 sm:$0xff]   ;;  %v6640_v11 = vld [vmem:[%s7949_s10] ss:$16 sps:$4 sm:$0xff]  }
0x136d   : > { %6410 = vmatprep.subr.bf16.mxu1 %v6741_v62  ;;  %v6389_v13 = vpop.f32.mrf.mxu0  ;;  %6416 = vmatprep.mubr.msk.bf16.mxu1 %vm6742_vm3, %v6741_v62 }
0x136e   : > { %v6646_v13 = vld [vmem:[%s7951_s12 + $0x78] sm:$0xff]  }
0x1370   : > { %6411 = vmatpush3.bf16.msra.mxu1 %v6611_v12  ;;  %v6643_v12 = vld [vmem:[%s7949_s10 + $0x8] ss:$16 sps:$4 sm:$0xff]  }
0x1371   : > { %6412 = vmatprep.subr.bf16.mxu1 %v6741_v62 }
0x1372   : > { %6423 = vmatmul.mubr.msk.bf16.vlgmr.msra.gmra.mxu0 %vm3313_vm7, %v5440_v14  ;;  %v6647_v14 = vld [vmem:[%s7951_s12 + $0xf8] sm:$0xff]  }
0x1373   : > { %6434 = vmatprep.mubr.msk.bf16.mxu0 %vm6742_vm3, %v6741_v62  ;;  %6427 = vmatpush3.bf16.msra.mxu0 %v6613_v16  ;;  %v4423_v16 = vld [vmem:[%s7948_s9] sm:$0x1] }
0x1374   : > { %6413 = vmatpush3.bf16.msra.mxu1 %v6612_v15  ;;  %6428 = vmatprep.subr.bf16.mxu0 %v6741_v62 }
0x1375   : > { %6414 = vmatprep.subr.bf16.mxu1 %v6741_v62 }
0x1377   : > { %6429 = vmatpush3.bf16.msra.mxu0 %v6615_v18 }
0x1378   : > { %6415 = vmatpush3.bf16.msra.mxu1 %v6614_v17  ;;  %6430 = vmatprep.subr.bf16.mxu0 %v6741_v62 }
0x1379   : > { %6438 = vmatprep.subr.bf16.mxu1 %v6741_v62 }
0x137b   : > { %6431 = vmatpush3.bf16.msra.mxu0 %v6616_v19 }
0x137c   : > { %6432 = vmatprep.subr.bf16.mxu0 %v6741_v62 }
0x137f   : > { %6433 = vmatpush3.bf16.msra.mxu0 %v6617_v21 }
0x1380   : > { %4557 = vmatprep.subr.bf16.mxu0 %v6624_v37  ;;  %v6670_v37 = vld [vmem:[%s7951_s12 + $0x48] sm:$0xff]  }
0x1422   : > { %v3924_v22 = vpop.f32.mrf.mxu1 }
0x1423   : > { %v3930_v23 = vadd.f32 %v3924_v22, %v3807_v52  ;;  %v6633_v52 = vld [vmem:[%s7949_s10 + $0x4c] ss:$16 sps:$4 sm:$0xff]  }
0x1424   : > { %v6382_v24 = vpop.f32.mrf.mxu1 }
0x1426   : > { %v3927_v43 = vpop.f32.mrf.mxu1 }
0x1427   : > { %v6648_v43 = vld [vmem:[%s7951_s12 + $0x38] sm:$0xff]  }
0x1428   : > { %v6383_v30 = vpop.f32.mrf.mxu1 }
0x1429   : > { %v6649_v30 = vld [vmem:[%s7951_s12 + $0xb8] sm:$0xff]  }
0x142a   : > { %v4047_v45 = vpop.f32.mrf.mxu0  ;;  %v4093_v48 = vpop.f32.mrf.mxu1 }
0x142b   : > { %v4053_v25 = vadd.f32 %v4047_v45, %v3930_v23  ;;  %v4099_v26 = vpack.c.bf16 %v4093_v48, %v4093_v48  ;;  %v6650_v48 = vld [vmem:[%s7951_s12 + $0x70] sm:$0xff]  }
0x142c   : > { %v6400_v27 = vpop.f32.mrf.mxu0  ;;  %v6406_v28 = vpop.f32.mrf.mxu1 }
0x142d   : > { %6417 = vmatmul.mubr.msk.bf16.vlgmr.msra.gmra.mxu1 %vm777_vm2, %v4099_v26  ;;  %v6652_v26 = vld [vmem:[%s7951_s12 + $0x30] sm:$0xff]   ;;  %v6654_v28 = vld [vmem:[%s7951_s12 + $0x68] sm:$0xff]  }
0x142e   : > { %6439 = vmatpush3.bf16.msra.mxu1 %v7509_v39  ;;  %v4050_v29 = vpop.f32.mrf.mxu0  ;;  %v4096_v31 = vpop.f32.mrf.mxu1  ;;  %6440 = vmatprep.mubr.msk.bf16.mxu1 %vm6742_vm3, %v6741_v62  ;;  %v6653_v27 = vld [vmem:[%s7951_s12 + $0xb0] sm:$0xff]  }
0x142f   : > { %6444 = vmatprep.subr.bf16.mxu1 %v6741_v62  ;;  %v6655_v29 = vld [vmem:[%s7951_s12 + $0xe8] sm:$0xff]  }
0x1430   : > { %v6401_v32 = vpop.f32.mrf.mxu0  ;;  %v6407_v33 = vpop.f32.mrf.mxu1  ;;  %v6656_v31 = vld [vmem:[%s7951_s12 + $0x28] sm:$0xff]  }
0x1431   : > { %v6657_v32 = vld [vmem:[%s7951_s12 + $0xa8] sm:$0xff]   ;;  %v6658_v33 = vld [vmem:[%s7951_s12 + $0x60] sm:$0xff]  }
0x1432   : > { %v4216_v5 = vpop.f32.mrf.mxu0 }
0x1433   : > { %v4222_v8 = vpack.c.bf16 %v4216_v5, %v4216_v5  ;;  %v6659_v5 = vld [vmem:[%s7951_s12 + $0xe0] sm:$0xff]  }
0x1434   : > { %v6424_v39 = vpop.f32.mrf.mxu0 }
0x1435   : > { %6435 = vmatmul.mubr.msk.bf16.vlgmr.msra.gmra.mxu0 %vm777_vm2, %v4222_v8  ;;  %6441 = vmatmul.mubr.msk.bf16.vlgmr.msra.gmra.mxu1 %vm3313_vm7, %v5455_v6  ;;  %v6660_v6 = vld [vmem:[%s7951_s12 + $0x20] sm:$0xff]   ;;  %v6662_v8 = vld [vmem:[%s7951_s12 + $0x58] sm:$0xff]  }
0x1436   : > { %6445 = vmatpush3.bf16.msra.mxu1 %v6618_v7  ;;  %v4219_v9 = vpop.f32.mrf.mxu0  ;;  %6452 = vmatprep.mubr.msk.bf16.mxu1 %vm6742_vm3, %v6741_v62  ;;  %v6661_v7 = vld [vmem:[%s7951_s12 + $0xa0] sm:$0xff]   ;;  %v6663_v39 = vld [vmem:[%s7951_s12 + $0xd8] sm:$0xff]  }
0x1437   : > { %6446 = vmatprep.subr.bf16.mxu1 %v6741_v62  ;;  %4581 = vmatprep.mubr.bf16.mxu0 %v6740_v2  ;;  %v6664_v9 = vld [vmem:[%s7951_s12 + $0x18] sm:$0xff]  }
0x1438   : > { %v6425_v10 = vpop.f32.mrf.mxu0  ;;  %4558 = vmatpush1.bf16.msra.mxu0 %v6622_v36  ;;  %v6669_v36 = vld [vmem:[%s7951_s12 + $0x90] sm:$0xff]  }
0x1439   : > { %v6665_v10 = vld [vmem:[%s7951_s12 + $0x98] sm:$0xff]  }
0x143a   : > { %6447 = vmatpush3.bf16.msra.mxu1 %v6619_v20  ;;  %v6666_v20 = vld [vmem:[%s7951_s12 + $0x50] sm:$0xff]  }
0x143b   : > { %6448 = vmatprep.subr.bf16.mxu1 %v6741_v62 }
0x143e   : > { %6449 = vmatpush3.bf16.msra.mxu1 %v6620_v34  ;;  %v6667_v34 = vld [vmem:[%s7951_s12 + $0xd0] sm:$0xff]  }
0x143f   : > { %6450 = vmatprep.subr.bf16.mxu1 %v6741_v62  ;;  %v6630_v62 = vld [vmem:[%s7949_s10 + $0x44] ss:$16 sps:$4 sm:$0xff]  }
0x1440   : > { %4559 = vmatprep.subr.bf16.mxu0 %v6630_v62  ;;  %v6672_v62 = vld [vmem:[%s7951_s12 + $0x8] sm:$0xff]  }
0x1441   : > { %4560 = vmatpush1.bf16.msra.mxu0 %v6628_v40  ;;  %v6673_v40 = vld [vmem:[%s7951_s12 + $0x88] sm:$0xff]  }
0x1442   : > { %6451 = vmatpush3.bf16.msra.mxu1 %v6621_v35  ;;  %4561 = vmatprep.subr.bf16.mxu0 %v6636_v60  ;;  %v6668_v35 = vld [vmem:[%s7951_s12 + $0x10] sm:$0xff]  }
0x1443   : > { %4598 = vmatprep.subr.bf16.mxu1 %v6627_v38  ;;  %v6671_v38 = vld [vmem:[%s7951_s12 + $0xc8] sm:$0xff]  }
0x1445   : > { %4562 = vmatpush1.bf16.msra.mxu0 %v6634_v63 }
0x1446   : > { %4563 = vmatprep.subr.bf16.mxu0 %v6642_v0 }
0x1449   : > { %4564 = vmatpush1.bf16.msra.mxu0 %v6640_v11 }
0x144a   : > { %5786 = vmatprep.subr.bf16.mxu0 %v6646_v13 }
0x14ed   : > { %v4170_v41 = vpop.f32.mrf.mxu1 }
0x14ee   : > { %v4176_v3 = vadd.f32 %v4170_v41, %v4053_v25  ;;  %v6651_v25 = vld [vmem:[%s7951_s12 + $0xf0] sm:$0xff]   ;;  %v6674_v41 = vld [vmem:[%s7951_s12 + $0x40] sm:$0xff]  }
0x14ef   : > { %v6418_v4 = vpop.f32.mrf.mxu1 }
0x14f0   : > { %v6676_v4 = vld [vmem:[%s7951_s12] sm:$0xff]  }
0x14f1   : > { %v4173_v44 = vpop.f32.mrf.mxu1 }
0x14f2   : > { %v6677_v44 = vld [vmem:[%s7951_s12 + $0x80] sm:$0xff]  }
0x14f3   : > { %v6419_v42 = vpop.f32.mrf.mxu1 }
0x14f4   : > { %v4526_v42 = vlaneseq }
0x14f5   : > { %v4293_v46 = vpop.f32.mrf.mxu0  ;;  %v4339_v47 = vpop.f32.mrf.mxu1 }
0x14f6   : > { %v4299_v50 = vadd.f32 %v4293_v46, %v4176_v3  ;;  %v4345_v51 = vpack.c.bf16 %v4339_v47, %v4339_v47  ;;  %v6675_v3 = vld [vmem:[%s7951_s12 + $0xc0] sm:$0xff]   ;;  %v4527_v46 = vshrl.u32 %v4526_v42, 7 }
0x14f7   : > { %v6442_v53 = vpop.f32.mrf.mxu1  ;;  %v6436_v54 = vpop.f32.mrf.mxu0 }
0x14f8   : > { %6453 = vmatmul.mubr.msk.bf16.vlgmr.msra.gmra.mxu1 %vm777_vm2, %v4345_v51  ;;  %v4528_v47 = vsub.s32 0, %v4527_v46  ;;  %v4532_v51 = vsub.s32 1, %v4527_v46 }
0x14f9   : > { %v4342_v55 = vpop.f32.mrf.mxu1  ;;  %4599 = vmatpush1.bf16.msra.mxu1 %v6625_v49  ;;  %v4296_v57 = vpop.f32.mrf.mxu0  ;;  %4622 = vmatprep.mubr.bf16.mxu1 %v6740_v2  ;;  %v6637_v2 = vld [vmem:[%s7949_s10 + $0x28] ss:$16 sps:$4 sm:$0xff]   ;;  %v4536_v49 = vsub.s32 2, %v4527_v46 }
0x14fa   : > { %4600 = vmatprep.subr.bf16.mxu1 %v6633_v52  ;;  %v4540_v52 = vsub.s32 3, %v4527_v46 }
0x14fb   : > { %v6443_v58 = vpop.f32.mrf.mxu1  ;;  %v6437_v59 = vpop.f32.mrf.mxu0 }
0x14fd   : > { %4601 = vmatpush1.bf16.msra.mxu1 %v6631_v56 }
0x14fe   : > { %4602 = vmatprep.subr.bf16.mxu1 %v6639_v61 }
0x1501   : > { %4603 = vmatpush1.bf16.msra.mxu1 %v6637_v2 }
0x1502   : > { %4604 = vmatprep.subr.bf16.mxu1 %v6645_v1 }
0x1505   : > { %4605 = vmatpush1.bf16.msra.mxu1 %v6643_v12 }
0x1506   : > { %5808 = vmatprep.subr.bf16.mxu1 %v6647_v14 }
0x15b8   : > { %v4416_v15 = vpop.f32.mrf.mxu1 }
0x15b9   : > { %v4422_v17 = vadd.f32 %v4416_v15, %v4299_v50  ;;  %v4444_v50 = vld [vmem:[%s7950_s11] sm:$0xf] }
0x15ba   : > { %v6454_v18 = vpop.f32.mrf.mxu1  ;;  %v4529_v53 = vrot.slane %v4444_v50, %v4528_v47  ;;  %v4537_v54 = vrot.slane %v4444_v50, %v4536_v49  ;;  %v4533_v55 = vrot.slane %v4444_v50, %v4532_v51  ;;  %v4541_v56 = vrot.slane %v4444_v50, %v4540_v52 }
0x15bb   : > { %v4424_v19 = vadd.f32 %v4423_v16, %v4422_v17 }
0x15bc   : > { %v4419_v21 = vpop.f32.mrf.mxu1 }
0x15bd   : > { %v4425_v22 = vmul.f32 0.01, %v4424_v19 }
0x15be   : > { %v6455_v23 = vpop.f32.mrf.mxu1 }
0x15bf   : > { %v4426_v24 = vmax.f32 %v4424_v19, %v4425_v22 }
0x15c1   : > { %v4427_v45 = vpack.c.bf16 %v4426_v24, %v4426_v24 }
0x15c3   : > { %5486 = vmatmul.mubr.msk.bf16.vlgmr.msra.gmra.mxu0 %vm777_vm2, %v4427_v45  ;;  %5487 = vmatmul.mubr.msk.bf16.vlgmr.msra.gmra.mxu1 %vm777_vm2, %v4427_v45 }
0x15c4   : > { %5787 = vmatpush3.bf16.msra.mxu0 %v6648_v43  ;;  %5809 = vmatpush3.bf16.msra.mxu1 %v6649_v30 }
0x15c5   : > { %5788 = vmatprep.subr.bf16.mxu0 %v6650_v48  ;;  %5810 = vmatprep.subr.bf16.mxu1 %v6651_v25  ;;  %v4707_v25 = vld [vmem:[%s7952_s13] sm:$0x1] }
0x15c8   : > { %5789 = vmatpush3.bf16.msra.mxu0 %v6652_v26  ;;  %5811 = vmatpush3.bf16.msra.mxu1 %v6653_v27 }
0x15c9   : > { %5790 = vmatprep.subr.bf16.mxu0 %v6654_v28  ;;  %5812 = vmatprep.subr.bf16.mxu1 %v6655_v29 }
0x15cc   : > { %5791 = vmatpush3.bf16.msra.mxu0 %v6656_v31  ;;  %5813 = vmatpush3.bf16.msra.mxu1 %v6657_v32 }
0x15cd   : > { %5792 = vmatprep.subr.bf16.mxu0 %v6658_v33  ;;  %5814 = vmatprep.subr.bf16.mxu1 %v6659_v5 }
0x15d0   : > { %5793 = vmatpush3.bf16.msra.mxu0 %v6660_v6  ;;  %5815 = vmatpush3.bf16.msra.mxu1 %v6661_v7 }
0x15d1   : > { %5794 = vmatprep.subr.bf16.mxu0 %v6662_v8  ;;  %5816 = vmatprep.subr.bf16.mxu1 %v6663_v39 }
0x15d4   : > { %5795 = vmatpush3.bf16.msra.mxu0 %v6664_v9  ;;  %5817 = vmatpush3.bf16.msra.mxu1 %v6665_v10 }
0x15d5   : > { %5796 = vmatprep.subr.bf16.mxu0 %v6666_v20  ;;  %5818 = vmatprep.subr.bf16.mxu1 %v6667_v34 }
0x15d8   : > { %5797 = vmatpush3.bf16.msra.mxu0 %v6668_v35  ;;  %5819 = vmatpush3.bf16.msra.mxu1 %v6669_v36 }
0x15d9   : > { %5798 = vmatprep.subr.bf16.mxu0 %v6670_v37  ;;  %5820 = vmatprep.subr.bf16.mxu1 %v6671_v38 }
0x15dc   : > { %5799 = vmatpush3.bf16.msra.mxu0 %v6672_v62  ;;  %5821 = vmatpush3.bf16.msra.mxu1 %v6673_v40 }
0x15dd   : > { %5800 = vmatprep.subr.bf16.mxu0 %v6674_v41  ;;  %5822 = vmatprep.subr.bf16.mxu1 %v6675_v3 }
0x15e0   : > { %5801 = vmatpush3.bf16.msra.mxu0 %v6676_v4  ;;  %5823 = vmatpush3.bf16.msra.mxu1 %v6677_v44 }
0x1683   : > { %v4583_v57 = vpop.f32.mrf.mxu0  ;;  %v4624_v58 = vpop.f32.mrf.mxu1 }
0x1684   : > { %v4584_v59 = vadd.f32 %v4583_v57, %v4529_v53  ;;  %v4625_v60 = vadd.f32 %v4624_v58, %v4537_v54 }
0x1685   : > { %v4585_v61 = vpop.f32.mrf.mxu0  ;;  %v4626_v63 = vpop.f32.mrf.mxu1 }
0x1686   : > { %v4631_v2 = vmul.f32 0.01, %v4584_v59  ;;  %v4633_v0 = vmul.f32 0.01, %v4625_v60  ;;  %v4586_v1 = vadd.f32 %v4585_v61, %v4533_v55  ;;  %v4627_v11 = vadd.f32 %v4626_v63, %v4541_v56 }
0x1687   : > { %v4587_v12 = vpop.f32.mrf.mxu0  ;;  %v4628_v13 = vpop.f32.mrf.mxu1 }
0x1688   : > { %v4632_v14 = vmul.f32 0.01, %v4586_v1  ;;  %v4634_v15 = vmul.f32 0.01, %v4627_v11  ;;  %v4635_v16 = vmax.f32 %v4584_v59, %v4631_v2  ;;  %v4637_v17 = vmax.f32 %v4625_v60, %v4633_v0 }
0x1689   : > { %v4588_v18 = vpop.f32.mrf.mxu0  ;;  %v4629_v19 = vpop.f32.mrf.mxu1 }
0x168a   : > { %v4636_v21 = vmax.f32 %v4586_v1, %v4632_v14  ;;  %v4638_v22 = vmax.f32 %v4627_v11, %v4634_v15  ;;  %v4639_v43 = vpack.c.bf16 %v4635_v16, %v4635_v16  ;;  %v4641_v30 = vpack.c.bf16 %v4637_v17, %v4637_v17 }
0x168c   : > { %v4640_v23 = vpack.c.bf16 %v4636_v21, %v4636_v21  ;;  %v4642_v24 = vpack.c.bf16 %v4638_v22, %v4638_v22 }
0x168e   : > { %4932 = vmatprep.mubr.bf16.mxu0 %v4640_v23  ;;  %4972 = vmatprep.mubr.bf16.mxu1 %v4642_v24 }
0x168f   : > { %4933 = vmatmul.mubr.bf16.vlgmr.msra.gmra.mxu0 %v4639_v43  ;;  %4973 = vmatmul.mubr.bf16.vlgmr.msra.gmra.mxu1 %v4641_v30 }
0x174f   : > { %v5802_v45 = vpop.f32.mrf.mxu0  ;;  %v5824_v48 = vpop.f32.mrf.mxu1 }
0x1751   : > { %v5803_v26 = vpop.f32.mrf.mxu0  ;;  %v5825_v27 = vpop.f32.mrf.mxu1 }
0x1752   : > { %v5804_v28 = vadd.f32 %v5803_v26, %v5802_v45  ;;  %v5826_v33 = vadd.f32 %v5825_v27, %v5824_v48 }
0x1753   : > { %v5805_v29 = vpop.f32.mrf.mxu0  ;;  %v5827_v31 = vpop.f32.mrf.mxu1 }
0x1754   : > { %v4935_v32 = vadd.f32 %v5804_v28, %v4707_v25 }
0x1755   : > { %v5806_v5 = vpop.f32.mrf.mxu0  ;;  %v5828_v6 = vpop.f32.mrf.mxu1 }
0x1756   : > { %v4975_v7 = vadd.f32 %v5826_v33, %v4935_v32 }
0x1758   : > { %4980 = vst [vmem:[%s459_s15] sm:$0x1] %v4975_v7 }
0x1759   : > { %6691 = shalt.err (!%p6688_p3)
}
0x175a   : > { %s6692_s2 = scalar_lea.hbm %s4992_s0, 16  ;;  %s6696_s15 = scalar_lea.hbm %s7953_s14, 32 }
0x175b   : > { %p6693_p4 = scmp.ne.s32.totalorder %s4992_s0, %s6692_s2  ;;  %p6697_p9 = scmp.lt.s32.totalorder %s4992_s0, %s7953_s14 }
0x175c   : > { %p6698_p10 = scmp.lt.s32.totalorder %s6696_s15, %s6692_s2 }
0x175d   : > { %p6694_p7 = pnand %p6693_p4, %p6858_p5 }
0x175e   : > { %p6699_p11 = por %p6698_p10, %p6697_p9 }
0x175f   : > { %p6695_p8 = pneg %p6694_p7 }
0x1761   : > { %p6700_p12 = pnand %p6699_p11, %p6695_p8 }
0x1763   : > { %6703 = shalt.err (!%p6700_p12)
}
0x1764   : > { %6457 = dma.vmem_to_hbm [thread:$0]  (%p6858_p5), %s4995_s28, 16, %s4992_s0, %s4982_s21  }
0x1765 PF: > { %p6463_p13 = scmp.ge.s32.totalorder %s6738_s16, 2  ;;  %s5006_s1 = sand.u32 1, %s6726_s29  }
0x1766   : > { %s5007_s25 = scalar_lea.sflag [#allocation3], %s5006_s1 }
0x1767   : > { %p6460_p0 = pnand %p6463_p13, %p6862_p6 }
0x1769   : > { %p6461_p1 = pneg %p6460_p0 }
0x176b   : > { %6721 = dma.done.wait (%p6461_p1), %s5007_s25, 16  }
0x176c   : > { %6723 = vsyncadd (%p6461_p1), %s5007_s25, 4294967280  ;;  %s7965_s2 = sld [smem:[#allocation5_spill]]  ;;  %p24_p2 = scmp.ge.s32.totalorder %s6845_s19, 4  }
0x176d   : > { %s7966_s15 = sld [smem:[#allocation6_spill]]  ;;  %s7967_s29 = smov %s6730_s30 }
0x176e   : > { %s7969_s16 = smov %s6845_s19  ;;  %26 = sbr.rel (!%p24_p2) target bundleno = 7 (0x7), region = 163 }
0x1772   : > { %s7968_s30 = smov %s7965_s2 }
0x1773   :  { %5011 = vsyncpa [#allocation3], 1 }
0x1774   :  { %5013 = vsyncpa [#allocation3 + $0x1], 1 }

</bundles_post_ra>
